<compile_context>
chip_gen: v7x
topology: tpu7x:2x2x1
jax: 0.10.0
libtpu: 0.0.40
codegen_flags: <defaults>
</compile_context>

<pallas_src>
import functools

import jax
import jax.numpy as jnp
import numpy as np
from jax.experimental import pallas as pl
from jax.experimental.pallas import tpu as pltpu

EPS = 1e-5  # PyTorch InstanceNorm2d default eps


# ----------------------------------------------------------------------------
# Pallas kernel: LocalFeatureFused (3x [conv1x1 -> InstanceNorm -> ReLU]) + max
# ----------------------------------------------------------------------------
def _lff_kernel(x_ref, w1_ref, w2_ref, w3_ref, o_ref,
                g0_ref, g1_ref, g2_ref, r0_ref, r1_ref, r2_ref,
                st1_ref, st2_ref, st3_ref, *, num_k, inv_m):
    """x_ref: (K, Cin, TILE_N) bf16; w*: (Cout, Cin) bf16;
    o_ref: (C_last, TILE_N) f32.  grid = (batch, pass, n_tile)."""
    p = pl.program_id(1)            # pass: 0/1/2 = stats L1/L2/L3, 3 = output
    t = pl.program_id(2)            # N tile
    nt = pl.num_programs(2)
    tile_n = x_ref.shape[-1]

    w1 = w1_ref[...]
    w2 = w2_ref[...]
    w3 = w3_ref[...]
    ones_row = jnp.ones((1, tile_n), jnp.bfloat16)

    def gram(h):
        # (C, TILE_N) bf16 -> (C, C) f32, lane-axis contraction on the MXU.
        return jax.lax.dot_general(h, h, (((1,), (1,)), ((), ())),
                                   preferred_element_type=jnp.float32)

    def rowsum(h):
        # (C, TILE_N) bf16 -> (1, C) f32 on the MXU (keeps VPU/XLU free).
        return jax.lax.dot_general(ones_row, h, (((1,), (1,)), ((), ())),
                                   preferred_element_type=jnp.float32)

    def accumulate(g_ref, r_ref, make_h):
        @pl.when(t == 0)
        def _():
            g_ref[...] = jnp.zeros_like(g_ref)
            r_ref[...] = jnp.zeros_like(r_ref)
        g_acc = g_ref[...]
        r_acc = r_ref[...]
        for k in range(num_k):
            h = make_h(k)
            g_acc = g_acc + gram(h)
            r_acc = r_acc + rowsum(h)
        g_ref[...] = g_acc
        r_ref[...] = r_acc

    def derive_stats(w_bf16, g_ref, r_ref, st_ref):
        # mu = W @ rowsum / M ;  E[h^2] = diag(W G W^T) / M  (tiny, once/pass)
        wf = w_bf16.astype(jnp.float32)                               # (C, Cp)
        mu = jnp.sum(wf * r_ref[...], axis=1, keepdims=True) * inv_m  # (C, 1)
        a = jnp.dot(wf, g_ref[...])                                   # (C, Cp)
        e2 = jnp.sum(a * wf, axis=1, keepdims=True) * inv_m           # (C, 1)
        var = jnp.maximum(e2 - mu * mu, 0.0)   # clamp f32 cancellation
        st_ref[0] = mu
        st_ref[1] = jax.lax.rsqrt(var + EPS)

    def conv_in_relu(w_bf16, h_bf16, st_ref):
        h = jnp.dot(w_bf16, h_bf16, preferred_element_type=jnp.float32)
        h = (h - st_ref[0]) * st_ref[1]
        return jnp.maximum(h, 0.0)                  # (C, TILE_N) f32

    def h1(k):  # layer-1 activation, kept bf16
        return conv_in_relu(w1, x_ref[k], st1_ref).astype(jnp.bfloat16)

    def h2(k):  # layer-2 activation, kept bf16
        return conv_in_relu(w2, h1(k), st2_ref).astype(jnp.bfloat16)

    # Pass 0: Gram / rowsum of the raw input -> layer-1 stats.
    @pl.when(p == 0)
    def _():
        accumulate(g0_ref, r0_ref, lambda k: x_ref[k])

        @pl.when(t == nt - 1)
        def _():
            derive_stats(w1, g0_ref, r0_ref, st1_ref)

    # Pass 1: Gram / rowsum of layer-1 activations -> layer-2 stats.
    @pl.when(p == 1)
    def _():
        accumulate(g1_ref, r1_ref, h1)

        @pl.when(t == nt - 1)
        def _():
            derive_stats(w2, g1_ref, r1_ref, st2_ref)

    # Pass 2: Gram / rowsum of layer-2 activations -> layer-3 stats.
    @pl.when(p == 2)
    def _():
        accumulate(g2_ref, r2_ref, h2)

        @pl.when(t == nt - 1)
        def _():
            derive_stats(w3, g2_ref, r2_ref, st3_ref)

    # Pass 3: layer-3 normalise + ReLU with the max over K fused into a
    # running maximum; single lane-dense (C_last, TILE_N) store.
    @pl.when(p == 3)
    def _():
        acc = conv_in_relu(w3, h2(0), st3_ref)
        for k in range(1, num_k):
            acc = jnp.maximum(acc, conv_in_relu(w3, h2(k), st3_ref))
        o_ref[...] = acc.astype(o_ref.dtype)


def _pick_tile_n(n):
    # Prefer lane-dense tiles (multiples of 128) dividing N; the per-k design
    # keeps the working set tiny, so one modest tile policy works on
    # v5e/v6e/v7x alike.  Fall back to a single full-width tile for toy N.
    for t in (1024, 512, 256, 128):
        if n % t == 0:
            return t
    return n


def local_feature_fused(x_bkcn, weights, *, tile_n=None):
    """x_bkcn: (B, K, Cin, N) features; weights: PyTorch-layout (Cout, Cin)
    1x1-conv weights.  Returns (B, C_last, N) float32 (LocalFeatureFused)."""
    B, K, cin, N = x_bkcn.shape
    w1, w2, w3 = [jnp.asarray(w, jnp.bfloat16) for w in weights]
    c1, c2, c3 = w1.shape[0], w2.shape[0], w3.shape[0]
    assert w1.shape[1] == cin and w2.shape[1] == c1 and w3.shape[1] == c2

    if tile_n is None:
        tile_n = _pick_tile_n(N)
    assert N % tile_n == 0, (N, tile_n)
    num_tiles = N // tile_n
    x = x_bkcn.astype(jnp.bfloat16)

    kernel = functools.partial(_lff_kernel, num_k=K, inv_m=1.0 / float(K * N))
    return pl.pallas_call(
        kernel,
        out_shape=jax.ShapeDtypeStruct((B, c3, N), jnp.float32),
        grid=(B, 4, num_tiles),            # batch x pass x N-tile
        in_specs=[
            pl.BlockSpec((None, K, cin, tile_n), lambda b, p, t: (b, 0, 0, t)),
            pl.BlockSpec((c1, cin), lambda b, p, t: (0, 0)),
            pl.BlockSpec((c2, c1), lambda b, p, t: (0, 0)),
            pl.BlockSpec((c3, c2), lambda b, p, t: (0, 0)),
        ],
        out_specs=pl.BlockSpec((None, c3, tile_n), lambda b, p, t: (b, 0, t)),
        scratch_shapes=[
            pltpu.VMEM((cin, cin), jnp.float32),   # G0 = x x^T
            pltpu.VMEM((c1, c1), jnp.float32),     # G1 = h1 h1^T
            pltpu.VMEM((c2, c2), jnp.float32),     # G2 = h2 h2^T
            pltpu.VMEM((1, cin), jnp.float32),     # rowsum(x)
            pltpu.VMEM((1, c1), jnp.float32),      # rowsum(h1)
            pltpu.VMEM((1, c2), jnp.float32),      # rowsum(h2)
            pltpu.VMEM((2, c1, 1), jnp.float32),   # [mu, inv_std] layer 1
            pltpu.VMEM((2, c2, 1), jnp.float32),   # [mu, inv_std] layer 2
            pltpu.VMEM((2, c3, 1), jnp.float32),   # [mu, inv_std] layer 3
        ],
        compiler_params=pltpu.CompilerParams(
            dimension_semantics=("parallel", "arbitrary", "arbitrary"),
        ),
    )(x, w1, w2, w3)


# ----------------------------------------------------------------------------
# JAX glue: sample_and_group (M=-1 ball query) + PPF angle features
# ----------------------------------------------------------------------------
def _ball_query(xyz, radius, K):
    """xyz: (B, N, 3) -> grouped indices (B, N, K), NgeNet ball_query semantics."""
    B, N, _ = xyz.shape
    diff = xyz[:, :, None, :] - xyz[:, None, :, :]
    dists = jnp.sqrt(jnp.sum(diff * diff, axis=-1))
    idx = jnp.broadcast_to(jnp.arange(N, dtype=jnp.int32)[None, None, :], (B, N, N))
    idx = jnp.where(dists > radius, N, idx)
    idx = jnp.sort(idx, axis=-1)[:, :, :K]
    first = idx[:, :, 0:1]
    idx = jnp.where(idx == N, first, idx)
    return idx


def _angle(v1, v2):
    v1, v2 = jnp.broadcast_arrays(v1, v2)
    cross = jnp.cross(v1, v2)
    cross_norm = jnp.sqrt(jnp.sum(cross * cross, axis=-1))
    dot = jnp.sum(v1 * v2, axis=-1)
    return jnp.arctan2(cross_norm, dot)


def build_ppf_features(coords, feats, k, radius):
    """coords, feats: (B, 3, N) -> (B, N, K, 10) float32: the tensor
    LocalFeatureFused receives (before the channels-first permute)."""
    xyz = jnp.transpose(coords, (0, 2, 1))        # (B, N, 3)
    normals = jnp.transpose(feats, (0, 2, 1))     # (B, N, 3)

    idx = _ball_query(xyz, radius, k)             # (B, N, K)
    gather = jax.vmap(lambda pts, ind: pts[ind])
    grouped_xyz = gather(xyz, idx) - xyz[:, :, None, :]   # (B, N, K, 3)
    grouped_normals = gather(normals, idx)                # (B, N, K, 3)

    nr = normals[:, :, None, :]
    nr_d = _angle(nr, grouped_xyz)
    ni_d = _angle(grouped_normals, grouped_xyz)
    nr_ni = _angle(nr, grouped_normals)
    d_norm = jnp.sqrt(jnp.sum(grouped_xyz * grouped_xyz, axis=-1))
    ppf = jnp.stack([nr_d, ni_d, nr_ni, d_norm], axis=-1)        # (B, N, K, 4)

    c_rep = jnp.broadcast_to(xyz[:, :, None, :], grouped_xyz.shape)
    return jnp.concatenate([c_rep, grouped_xyz, ppf], axis=-1)   # (B, N, K, 10)


def ppf_forward(coords, feats, weights, k, radius, *, tile_n=None):
    """PPF.forward: coords, feats (B, 3, N) -> (B, feats_dim[-1], N)."""
    npts = build_ppf_features(coords, feats, k, radius)          # (B, N, K, 10)
    # bf16 cast upstream of the layout transpose so XLA fuses it; (B, K, C, N)
    # puts per-k slabs on the kernel's (free-to-slice) leading axis and points
    # on the lane axis.
    x = jnp.transpose(npts.astype(jnp.bfloat16), (0, 2, 3, 1))   # (B, K, 10, N)
    return local_feature_fused(x, weights, tile_n=tile_n)


# ----------------------------------------------------------------------------
# Pure-JAX f32 reference mirroring the PyTorch module (for verification)
# ----------------------------------------------------------------------------
def reference_forward(coords, feats, weights, k, radius):
    npts = build_ppf_features(coords, feats, k, radius)          # (B, N, K, 10)
    x = jnp.transpose(npts, (0, 3, 2, 1))                        # (B, 10, K, N)
    for w in weights:
        x = jnp.einsum("oc,bckn->bokn", w, x,
                       precision=jax.lax.Precision.HIGHEST)
        mu = jnp.mean(x, axis=(2, 3), keepdims=True)
        var = jnp.mean((x - mu) ** 2, axis=(2, 3), keepdims=True)
        x = jnp.maximum((x - mu) / jnp.sqrt(var + EPS), 0.0)
    return jnp.max(x, axis=2)                                    # (B, C_last, N)


# ----------------------------------------------------------------------------
if __name__ == "__main__":
    K, RADIUS = 8, 0.75
    FEATS_DIM = (16, 16, 32)   # PPF(feats_dim=[16, 16, 32], k=8, radius=0.75)

    key = jax.random.PRNGKey(0)
    k_c, k_n, k_w = jax.random.split(key, 3)

    def make_inputs(b, n):
        kc = jax.random.fold_in(k_c, n)
        kn = jax.random.fold_in(k_n, n)
        coords = jax.random.uniform(kc, (b, 3, n), jnp.float32)
        normals = jax.random.normal(kn, (b, 3, n), jnp.float32)
        normals = normals / jnp.linalg.norm(normals, axis=1, keepdims=True)
        return coords, normals

    # Deterministic Conv2d(in, out, 1, bias=False) weights, PyTorch (out, in) layout.
    weights = []
    in_dim = 10
    for wk, out_dim in zip(jax.random.split(k_w, len(FEATS_DIM)), FEATS_DIM):
        scale = 1.0 / np.sqrt(in_dim)
        weights.append(jax.random.uniform(wk, (out_dim, in_dim), jnp.float32,
                                          minval=-scale, maxval=scale))
        in_dim = out_dim

    # Main check: N >= 128 with an explicit 128-wide tile so the lane-aligned,
    # multi-tile two-pass-stats path is exercised (N=256 -> 2 tiles per pass).
    coords, normals = make_inputs(2, 256)
    out = ppf_forward(coords, normals, weights, K, RADIUS, tile_n=128)
    out = jax.block_until_ready(out)
    assert out.shape == (2, FEATS_DIM[-1], 256), out.shape
    ref = reference_forward(coords, normals, weights, K, RADIUS)
    # Kernel runs bf16 MXU matmuls / bf16 intermediates (f32 stats); reference
    # is full-f32, so allow a bf16-sized tolerance.
    np.testing.assert_allclose(np.asarray(out), np.asarray(ref),
                               rtol=5e-2, atol=5e-2)

    # Toy-shape fallback (N not a multiple of 128 -> single full-width tile).
    coords_s, normals_s = make_inputs(2, 16)
    out_s = jax.block_until_ready(
        ppf_forward(coords_s, normals_s, weights, K, RADIUS))
    ref_s = reference_forward(coords_s, normals_s, weights, K, RADIUS)
    np.testing.assert_allclose(np.asarray(out_s), np.asarray(ref_s),
                               rtol=5e-2, atol=5e-2)

    print("KERNEL_OK")
</pallas_src>

<mosaic_0001>
module attributes {stable_mosaic.version = 11 : i64} {
  func.func @_lff_kernel(%arg0: i32, %arg1: i32, %arg2: i32, %arg3: memref<1x8x10x128xbf16, #tpu.memory_space<vmem>>, %arg4: memref<16x10xbf16, #tpu.memory_space<vmem>>, %arg5: memref<16x16xbf16, #tpu.memory_space<vmem>>, %arg6: memref<32x16xbf16, #tpu.memory_space<vmem>>, %arg7: memref<1x32x128xf32, #tpu.memory_space<vmem>>, %arg8: memref<10x10xf32, #tpu.memory_space<vmem>>, %arg9: memref<16x16xf32, #tpu.memory_space<vmem>>, %arg10: memref<16x16xf32, #tpu.memory_space<vmem>>, %arg11: memref<1x10xf32, #tpu.memory_space<vmem>>, %arg12: memref<1x16xf32, #tpu.memory_space<vmem>>, %arg13: memref<1x16xf32, #tpu.memory_space<vmem>>, %arg14: memref<2x16x1xf32, #tpu.memory_space<vmem>>, %arg15: memref<2x16x1xf32, #tpu.memory_space<vmem>>, %arg16: memref<2x32x1xf32, #tpu.memory_space<vmem>>) attributes {dimension_semantics = [#tpu.dimension_semantics<parallel>, #tpu.dimension_semantics<arbitrary>, #tpu.dimension_semantics<arbitrary>], iteration_bounds = array<i64: 2, 4, 2>, scalar_prefetch = 0 : i64, scratch_operands = 9 : i64, tpu.core_type = #tpu.core_type<tc>, window_params = [{transform_indices = @transform_0, window_bounds = array<i64: 1, 8, 10, 128>}, {pipeline_mode = #tpu.pipeline_mode<synchronous>, transform_indices = @transform_1, window_bounds = array<i64: 16, 10>}, {pipeline_mode = #tpu.pipeline_mode<synchronous>, transform_indices = @transform_2, window_bounds = array<i64: 16, 16>}, {pipeline_mode = #tpu.pipeline_mode<synchronous>, transform_indices = @transform_3, window_bounds = array<i64: 32, 16>}, {transform_indices = @transform_4, window_bounds = array<i64: 1, 32, 128>}]} {
    %c0 = arith.constant 0 : index
    %c0_0 = arith.constant 0 : index
    %0 = vector.load %arg4[%c0, %c0_0] : memref<16x10xbf16, #tpu.memory_space<vmem>>, vector<16x10xbf16>
    %c0_1 = arith.constant 0 : index
    %c0_2 = arith.constant 0 : index
    %1 = vector.load %arg5[%c0_1, %c0_2] : memref<16x16xbf16, #tpu.memory_space<vmem>>, vector<16x16xbf16>
    %c0_3 = arith.constant 0 : index
    %c0_4 = arith.constant 0 : index
    %2 = vector.load %arg6[%c0_3, %c0_4] : memref<32x16xbf16, #tpu.memory_space<vmem>>, vector<32x16xbf16>
    %cst = arith.constant 1.000000e+00 : bf16
    %3 = vector.broadcast %cst : bf16 to vector<1x128xbf16>
    %c0_i32 = arith.constant 0 : i32
    %4 = arith.cmpi eq, %arg1, %c0_i32 : i32
    %5 = arith.extui %4 : i1 to i32
    %c0_i32_5 = arith.constant 0 : i32
    %6 = arith.cmpi ne, %5, %c0_i32_5 : i32
    scf.if %6 {
      %c0_i32_9 = arith.constant 0 : i32
      %16 = arith.cmpi eq, %arg2, %c0_i32_9 : i32
      %17 = arith.extui %16 : i1 to i32
      %c0_i32_10 = arith.constant 0 : i32
      %18 = arith.cmpi ne, %17, %c0_i32_10 : i32
      scf.if %18 {
        %cst_62 = arith.constant 0.000000e+00 : f32
        %74 = vector.broadcast %cst_62 : f32 to vector<10x10xf32>
        %c0_63 = arith.constant 0 : index
        %c0_64 = arith.constant 0 : index
        %75 = vector.load %arg8[%c0_63, %c0_64] : memref<10x10xf32, #tpu.memory_space<vmem>>, vector<10x10xf32>
        tpu.vector_store %arg8[%c0_63, %c0_64], %74 {strides = array<i32>} : memref<10x10xf32, #tpu.memory_space<vmem>>, vector<10x10xf32>,
        %cst_65 = arith.constant 0.000000e+00 : f32
        %76 = vector.broadcast %cst_65 : f32 to vector<1x10xf32>
        %c0_66 = arith.constant 0 : index
        %c0_67 = arith.constant 0 : index
        %77 = vector.load %arg11[%c0_66, %c0_67] : memref<1x10xf32, #tpu.memory_space<vmem>>, vector<1x10xf32>
        tpu.vector_store %arg11[%c0_66, %c0_67], %76 {strides = array<i32>} : memref<1x10xf32, #tpu.memory_space<vmem>>, vector<1x10xf32>,
      } else {
      }
      %c0_11 = arith.constant 0 : index
      %c0_12 = arith.constant 0 : index
      %19 = vector.load %arg8[%c0_11, %c0_12] : memref<10x10xf32, #tpu.memory_space<vmem>>, vector<10x10xf32>
      %c0_13 = arith.constant 0 : index
      %c0_14 = arith.constant 0 : index
      %20 = vector.load %arg11[%c0_13, %c0_14] : memref<1x10xf32, #tpu.memory_space<vmem>>, vector<1x10xf32>
      %c0_15 = arith.constant 0 : index
      %c0_16 = arith.constant 0 : index
      %c0_17 = arith.constant 0 : index
      %c0_18 = arith.constant 0 : index
      %21 = vector.load %arg3[%c0_15, %c0_16, %c0_17, %c0_18] : memref<1x8x10x128xbf16, #tpu.memory_space<vmem>>, vector<1x1x10x128xbf16>
      %22 = vector.shape_cast %21 : vector<1x1x10x128xbf16> to vector<10x128xbf16>
      %cst_19 = arith.constant dense<0.000000e+00> : vector<10x10xf32>
      %23 = tpu.matmul %22, %22, %cst_19 {dimension_numbers = #tpu.dot_dimension_numbers<[1], [1], [0], [0], [0, 0, 1, 0], [], []>} : vector<10x128xbf16>, vector<10x128xbf16>, vector<10x10xf32> -> vector<10x10xf32>
      %24 = arith.addf %19, %23 : vector<10x10xf32>
      %cst_20 = arith.constant dense<0.000000e+00> : vector<1x10xf32>
      %25 = tpu.matmul %3, %22, %cst_20 {dimension_numbers = #tpu.dot_dimension_numbers<[1], [1], [0], [0], [0, 0, 1, 0], [], []>} : vector<1x128xbf16>, vector<10x128xbf16>, vector<1x10xf32> -> vector<1x10xf32>
      %26 = arith.addf %20, %25 : vector<1x10xf32>
      %c0_21 = arith.constant 0 : index
      %c1 = arith.constant 1 : index
      %c0_22 = arith.constant 0 : index
      %c0_23 = arith.constant 0 : index
      %27 = vector.load %arg3[%c0_21, %c1, %c0_22, %c0_23] : memref<1x8x10x128xbf16, #tpu.memory_space<vmem>>, vector<1x1x10x128xbf16>
      %28 = vector.shape_cast %27 : vector<1x1x10x128xbf16> to vector<10x128xbf16>
      %cst_24 = arith.constant dense<0.000000e+00> : vector<10x10xf32>
      %29 = tpu.matmul %28, %28, %cst_24 {dimension_numbers = #tpu.dot_dimension_numbers<[1], [1], [0], [0], [0, 0, 1, 0], [], []>} : vector<10x128xbf16>, vector<10x128xbf16>, vector<10x10xf32> -> vector<10x10xf32>
      %30 = arith.addf %24, %29 : vector<10x10xf32>
      %cst_25 = arith.constant dense<0.000000e+00> : vector<1x10xf32>
      %31 = tpu.matmul %3, %28, %cst_25 {dimension_numbers = #tpu.dot_dimension_numbers<[1], [1], [0], [0], [0, 0, 1, 0], [], []>} : vector<1x128xbf16>, vector<10x128xbf16>, vector<1x10xf32> -> vector<1x10xf32>
      %32 = arith.addf %26, %31 : vector<1x10xf32>
      %c0_26 = arith.constant 0 : index
      %c2 = arith.constant 2 : index
      %c0_27 = arith.constant 0 : index
      %c0_28 = arith.constant 0 : index
      %33 = vector.load %arg3[%c0_26, %c2, %c0_27, %c0_28] : memref<1x8x10x128xbf16, #tpu.memory_space<vmem>>, vector<1x1x10x128xbf16>
      %34 = vector.shape_cast %33 : vector<1x1x10x128xbf16> to vector<10x128xbf16>
      %cst_29 = arith.constant dense<0.000000e+00> : vector<10x10xf32>
      %35 = tpu.matmul %34, %34, %cst_29 {dimension_numbers = #tpu.dot_dimension_numbers<[1], [1], [0], [0], [0, 0, 1, 0], [], []>} : vector<10x128xbf16>, vector<10x128xbf16>, vector<10x10xf32> -> vector<10x10xf32>
      %36 = arith.addf %30, %35 : vector<10x10xf32>
      %cst_30 = arith.constant dense<0.000000e+00> : vector<1x10xf32>
      %37 = tpu.matmul %3, %34, %cst_30 {dimension_numbers = #tpu.dot_dimension_numbers<[1], [1], [0], [0], [0, 0, 1, 0], [], []>} : vector<1x128xbf16>, vector<10x128xbf16>, vector<1x10xf32> -> vector<1x10xf32>
      %38 = arith.addf %32, %37 : vector<1x10xf32>
      %c0_31 = arith.constant 0 : index
      %c3 = arith.constant 3 : index
      %c0_32 = arith.constant 0 : index
      %c0_33 = arith.constant 0 : index
      %39 = vector.load %arg3[%c0_31, %c3, %c0_32, %c0_33] : memref<1x8x10x128xbf16, #tpu.memory_space<vmem>>, vector<1x1x10x128xbf16>
      %40 = vector.shape_cast %39 : vector<1x1x10x128xbf16> to vector<10x128xbf16>
      %cst_34 = arith.constant dense<0.000000e+00> : vector<10x10xf32>
      %41 = tpu.matmul %40, %40, %cst_34 {dimension_numbers = #tpu.dot_dimension_numbers<[1], [1], [0], [0], [0, 0, 1, 0], [], []>} : vector<10x128xbf16>, vector<10x128xbf16>, vector<10x10xf32> -> vector<10x10xf32>
      %42 = arith.addf %36, %41 : vector<10x10xf32>
      %cst_35 = arith.constant dense<0.000000e+00> : vector<1x10xf32>
      %43 = tpu.matmul %3, %40, %cst_35 {dimension_numbers = #tpu.dot_dimension_numbers<[1], [1], [0], [0], [0, 0, 1, 0], [], []>} : vector<1x128xbf16>, vector<10x128xbf16>, vector<1x10xf32> -> vector<1x10xf32>
      %44 = arith.addf %38, %43 : vector<1x10xf32>
      %c0_36 = arith.constant 0 : index
      %c4 = arith.constant 4 : index
      %c0_37 = arith.constant 0 : index
      %c0_38 = arith.constant 0 : index
      %45 = vector.load %arg3[%c0_36, %c4, %c0_37, %c0_38] : memref<1x8x10x128xbf16, #tpu.memory_space<vmem>>, vector<1x1x10x128xbf16>
      %46 = vector.shape_cast %45 : vector<1x1x10x128xbf16> to vector<10x128xbf16>
      %cst_39 = arith.constant dense<0.000000e+00> : vector<10x10xf32>
      %47 = tpu.matmul %46, %46, %cst_39 {dimension_numbers = #tpu.dot_dimension_numbers<[1], [1], [0], [0], [0, 0, 1, 0], [], []>} : vector<10x128xbf16>, vector<10x128xbf16>, vector<10x10xf32> -> vector<10x10xf32>
      %48 = arith.addf %42, %47 : vector<10x10xf32>
      %cst_40 = arith.constant dense<0.000000e+00> : vector<1x10xf32>
      %49 = tpu.matmul %3, %46, %cst_40 {dimension_numbers = #tpu.dot_dimension_numbers<[1], [1], [0], [0], [0, 0, 1, 0], [], []>} : vector<1x128xbf16>, vector<10x128xbf16>, vector<1x10xf32> -> vector<1x10xf32>
      %50 = arith.addf %44, %49 : vector<1x10xf32>
      %c0_41 = arith.constant 0 : index
      %c5 = arith.constant 5 : index
      %c0_42 = arith.constant 0 : index
      %c0_43 = arith.constant 0 : index
      %51 = vector.load %arg3[%c0_41, %c5, %c0_42, %c0_43] : memref<1x8x10x128xbf16, #tpu.memory_space<vmem>>, vector<1x1x10x128xbf16>
      %52 = vector.shape_cast %51 : vector<1x1x10x128xbf16> to vector<10x128xbf16>
      %cst_44 = arith.constant dense<0.000000e+00> : vector<10x10xf32>
      %53 = tpu.matmul %52, %52, %cst_44 {dimension_numbers = #tpu.dot_dimension_numbers<[1], [1], [0], [0], [0, 0, 1, 0], [], []>} : vector<10x128xbf16>, vector<10x128xbf16>, vector<10x10xf32> -> vector<10x10xf32>
      %54 = arith.addf %48, %53 : vector<10x10xf32>
      %cst_45 = arith.constant dense<0.000000e+00> : vector<1x10xf32>
      %55 = tpu.matmul %3, %52, %cst_45 {dimension_numbers = #tpu.dot_dimension_numbers<[1], [1], [0], [0], [0, 0, 1, 0], [], []>} : vector<1x128xbf16>, vector<10x128xbf16>, vector<1x10xf32> -> vector<1x10xf32>
      %56 = arith.addf %50, %55 : vector<1x10xf32>
      %c0_46 = arith.constant 0 : index
      %c6 = arith.constant 6 : index
      %c0_47 = arith.constant 0 : index
      %c0_48 = arith.constant 0 : index
      %57 = vector.load %arg3[%c0_46, %c6, %c0_47, %c0_48] : memref<1x8x10x128xbf16, #tpu.memory_space<vmem>>, vector<1x1x10x128xbf16>
      %58 = vector.shape_cast %57 : vector<1x1x10x128xbf16> to vector<10x128xbf16>
      %cst_49 = arith.constant dense<0.000000e+00> : vector<10x10xf32>
      %59 = tpu.matmul %58, %58, %cst_49 {dimension_numbers = #tpu.dot_dimension_numbers<[1], [1], [0], [0], [0, 0, 1, 0], [], []>} : vector<10x128xbf16>, vector<10x128xbf16>, vector<10x10xf32> -> vector<10x10xf32>
      %60 = arith.addf %54, %59 : vector<10x10xf32>
      %cst_50 = arith.constant dense<0.000000e+00> : vector<1x10xf32>
      %61 = tpu.matmul %3, %58, %cst_50 {dimension_numbers = #tpu.dot_dimension_numbers<[1], [1], [0], [0], [0, 0, 1, 0], [], []>} : vector<1x128xbf16>, vector<10x128xbf16>, vector<1x10xf32> -> vector<1x10xf32>
      %62 = arith.addf %56, %61 : vector<1x10xf32>
      %c0_51 = arith.constant 0 : index
      %c7 = arith.constant 7 : index
      %c0_52 = arith.constant 0 : index
      %c0_53 = arith.constant 0 : index
      %63 = vector.load %arg3[%c0_51, %c7, %c0_52, %c0_53] : memref<1x8x10x128xbf16, #tpu.memory_space<vmem>>, vector<1x1x10x128xbf16>
      %64 = vector.shape_cast %63 : vector<1x1x10x128xbf16> to vector<10x128xbf16>
      %cst_54 = arith.constant dense<0.000000e+00> : vector<10x10xf32>
      %65 = tpu.matmul %64, %64, %cst_54 {dimension_numbers = #tpu.dot_dimension_numbers<[1], [1], [0], [0], [0, 0, 1, 0], [], []>} : vector<10x128xbf16>, vector<10x128xbf16>, vector<10x10xf32> -> vector<10x10xf32>
      %66 = arith.addf %60, %65 : vector<10x10xf32>
      %cst_55 = arith.constant dense<0.000000e+00> : vector<1x10xf32>
      %67 = tpu.matmul %3, %64, %cst_55 {dimension_numbers = #tpu.dot_dimension_numbers<[1], [1], [0], [0], [0, 0, 1, 0], [], []>} : vector<1x128xbf16>, vector<10x128xbf16>, vector<1x10xf32> -> vector<1x10xf32>
      %68 = arith.addf %62, %67 : vector<1x10xf32>
      %c0_56 = arith.constant 0 : index
      %c0_57 = arith.constant 0 : index
      %69 = vector.load %arg8[%c0_56, %c0_57] : memref<10x10xf32, #tpu.memory_space<vmem>>, vector<10x10xf32>
      tpu.vector_store %arg8[%c0_56, %c0_57], %66 {strides = array<i32>} : memref<10x10xf32, #tpu.memory_space<vmem>>, vector<10x10xf32>,
      %c0_58 = arith.constant 0 : index
      %c0_59 = arith.constant 0 : index
      %70 = vector.load %arg11[%c0_58, %c0_59] : memref<1x10xf32, #tpu.memory_space<vmem>>, vector<1x10xf32>
      tpu.vector_store %arg11[%c0_58, %c0_59], %68 {strides = array<i32>} : memref<1x10xf32, #tpu.memory_space<vmem>>, vector<1x10xf32>,
      %c1_i32_60 = arith.constant 1 : i32
      %71 = arith.cmpi eq, %arg2, %c1_i32_60 : i32
      %72 = arith.extui %71 : i1 to i32
      %c0_i32_61 = arith.constant 0 : i32
      %73 = arith.cmpi ne, %72, %c0_i32_61 : i32
      scf.if %73 {
        %74 = arith.extf %0 : vector<16x10xbf16> to vector<16x10xf32>
        %c0_62 = arith.constant 0 : index
        %c0_63 = arith.constant 0 : index
        %75 = vector.load %arg11[%c0_62, %c0_63] : memref<1x10xf32, #tpu.memory_space<vmem>>, vector<1x10xf32>
        %76 = vector.broadcast %75 : vector<1x10xf32> to vector<16x10xf32>
        %77 = arith.mulf %74, %76 : vector<16x10xf32>
        %cst_64 = arith.constant dense<0.000000e+00> : vector<16xf32>
        %78 = vector.multi_reduction <add>, %77, %cst_64 [1] : vector<16x10xf32> to vector<16xf32>
        %79 = vector.shape_cast %78 : vector<16xf32> to vector<16x1xf32>
        %cst_65 = arith.constant 4.8828125E-4 : f32
        %80 = vector.broadcast %cst_65 : f32 to vector<16x1xf32>
        %81 = arith.mulf %79, %80 : vector<16x1xf32>
        %c0_66 = arith.constant 0 : index
        %c0_67 = arith.constant 0 : index
        %82 = vector.load %arg8[%c0_66, %c0_67] : memref<10x10xf32, #tpu.memory_space<vmem>>, vector<10x10xf32>
        %cst_68 = arith.constant dense<0.000000e+00> : vector<16x10xf32>
        %83 = tpu.matmul %74, %82, %cst_68 {dimension_numbers = #tpu.dot_dimension_numbers<[1], [0], [0], [1], [0, 0, 1, 1], [], []>} : vector<16x10xf32>, vector<10x10xf32>, vector<16x10xf32> -> vector<16x10xf32>
        %84 = arith.mulf %83, %74 : vector<16x10xf32>
        %cst_69 = arith.constant dense<0.000000e+00> : vector<16xf32>
        %85 = vector.multi_reduction <add>, %84, %cst_69 [1] : vector<16x10xf32> to vector<16xf32>
        %86 = vector.shape_cast %85 : vector<16xf32> to vector<16x1xf32>
        %cst_70 = arith.constant 4.8828125E-4 : f32
        %87 = vector.broadcast %cst_70 : f32 to vector<16x1xf32>
        %88 = arith.mulf %86, %87 : vector<16x1xf32>
        %89 = arith.mulf %81, %81 : vector<16x1xf32>
        %90 = arith.subf %88, %89 : vector<16x1xf32>
        %cst_71 = arith.constant 0.000000e+00 : f32
        %91 = vector.broadcast %cst_71 : f32 to vector<16x1xf32>
        %92 = arith.maximumf %90, %91 : vector<16x1xf32>
        %c0_72 = arith.constant 0 : index
        %c0_73 = arith.constant 0 : index
        %c0_74 = arith.constant 0 : index
        %93 = vector.load %arg14[%c0_72, %c0_73, %c0_74] : memref<2x16x1xf32, #tpu.memory_space<vmem>>, vector<1x16x1xf32>
        %94 = vector.shape_cast %93 : vector<1x16x1xf32> to vector<16x1xf32>
        %95 = vector.shape_cast %81 : vector<16x1xf32> to vector<1x16x1xf32>
        tpu.vector_store %arg14[%c0_72, %c0_73, %c0_74], %95 {strides = array<i32>} : memref<2x16x1xf32, #tpu.memory_space<vmem>>, vector<1x16x1xf32>,
        %cst_75 = arith.constant 9.99999974E-6 : f32
        %96 = vector.broadcast %cst_75 : f32 to vector<16x1xf32>
        %97 = arith.addf %92, %96 : vector<16x1xf32>
        %98 = math.rsqrt %97 : vector<16x1xf32>
        %c1_76 = arith.constant 1 : index
        %c0_77 = arith.constant 0 : index
        %c0_78 = arith.constant 0 : index
        %99 = vector.load %arg14[%c1_76, %c0_77, %c0_78] : memref<2x16x1xf32, #tpu.memory_space<vmem>>, vector<1x16x1xf32>
        %100 = vector.shape_cast %99 : vector<1x16x1xf32> to vector<16x1xf32>
        %101 = vector.shape_cast %98 : vector<16x1xf32> to vector<1x16x1xf32>
        tpu.vector_store %arg14[%c1_76, %c0_77, %c0_78], %101 {strides = array<i32>} : memref<2x16x1xf32, #tpu.memory_space<vmem>>, vector<1x16x1xf32>,
      } else {
      }
    } else {
    }
    %c1_i32 = arith.constant 1 : i32
    %7 = arith.cmpi eq, %arg1, %c1_i32 : i32
    %8 = arith.extui %7 : i1 to i32
    %c0_i32_6 = arith.constant 0 : i32
    %9 = arith.cmpi ne, %8, %c0_i32_6 : i32
    scf.if %9 {
      %c0_i32_9 = arith.constant 0 : i32
      %16 = arith.cmpi eq, %arg2, %c0_i32_9 : i32
      %17 = arith.extui %16 : i1 to i32
      %c0_i32_10 = arith.constant 0 : i32
      %18 = arith.cmpi ne, %17, %c0_i32_10 : i32
      scf.if %18 {
        %cst_126 = arith.constant 0.000000e+00 : f32
        %170 = vector.broadcast %cst_126 : f32 to vector<16x16xf32>
        %c0_127 = arith.constant 0 : index
        %c0_128 = arith.constant 0 : index
        %171 = vector.load %arg9[%c0_127, %c0_128] : memref<16x16xf32, #tpu.memory_space<vmem>>, vector<16x16xf32>
        tpu.vector_store %arg9[%c0_127, %c0_128], %170 {strides = array<i32>} : memref<16x16xf32, #tpu.memory_space<vmem>>, vector<16x16xf32>,
        %cst_129 = arith.constant 0.000000e+00 : f32
        %172 = vector.broadcast %cst_129 : f32 to vector<1x16xf32>
        %c0_130 = arith.constant 0 : index
        %c0_131 = arith.constant 0 : index
        %173 = vector.load %arg12[%c0_130, %c0_131] : memref<1x16xf32, #tpu.memory_space<vmem>>, vector<1x16xf32>
        tpu.vector_store %arg12[%c0_130, %c0_131], %172 {strides = array<i32>} : memref<1x16xf32, #tpu.memory_space<vmem>>, vector<1x16xf32>,
      } else {
      }
      %c0_11 = arith.constant 0 : index
      %c0_12 = arith.constant 0 : index
      %19 = vector.load %arg9[%c0_11, %c0_12] : memref<16x16xf32, #tpu.memory_space<vmem>>, vector<16x16xf32>
      %c0_13 = arith.constant 0 : index
      %c0_14 = arith.constant 0 : index
      %20 = vector.load %arg12[%c0_13, %c0_14] : memref<1x16xf32, #tpu.memory_space<vmem>>, vector<1x16xf32>
      %c0_15 = arith.constant 0 : index
      %c0_16 = arith.constant 0 : index
      %c0_17 = arith.constant 0 : index
      %c0_18 = arith.constant 0 : index
      %21 = vector.load %arg3[%c0_15, %c0_16, %c0_17, %c0_18] : memref<1x8x10x128xbf16, #tpu.memory_space<vmem>>, vector<1x1x10x128xbf16>
      %22 = vector.shape_cast %21 : vector<1x1x10x128xbf16> to vector<10x128xbf16>
      %cst_19 = arith.constant dense<0.000000e+00> : vector<16x128xf32>
      %23 = tpu.matmul %0, %22, %cst_19 {dimension_numbers = #tpu.dot_dimension_numbers<[1], [0], [0], [1], [0, 0, 1, 1], [], []>} : vector<16x10xbf16>, vector<10x128xbf16>, vector<16x128xf32> -> vector<16x128xf32>
      %c0_20 = arith.constant 0 : index
      %c0_21 = arith.constant 0 : index
      %c0_22 = arith.constant 0 : index
      %24 = vector.load %arg14[%c0_20, %c0_21, %c0_22] : memref<2x16x1xf32, #tpu.memory_space<vmem>>, vector<1x16x1xf32>
      %25 = vector.shape_cast %24 : vector<1x16x1xf32> to vector<16x1xf32>
      %26 = vector.broadcast %25 : vector<16x1xf32> to vector<16x128xf32>
      %27 = arith.subf %23, %26 : vector<16x128xf32>
      %c1 = arith.constant 1 : index
      %c0_23 = arith.constant 0 : index
      %c0_24 = arith.constant 0 : index
      %28 = vector.load %arg14[%c1, %c0_23, %c0_24] : memref<2x16x1xf32, #tpu.memory_space<vmem>>, vector<1x16x1xf32>
      %29 = vector.shape_cast %28 : vector<1x16x1xf32> to vector<16x1xf32>
      %30 = vector.broadcast %29 : vector<16x1xf32> to vector<16x128xf32>
      %31 = arith.mulf %27, %30 : vector<16x128xf32>
      %cst_25 = arith.constant 0.000000e+00 : f32
      %32 = vector.broadcast %cst_25 : f32 to vector<16x128xf32>
      %33 = arith.maximumf %31, %32 : vector<16x128xf32>
      %34 = arith.truncf %33 : vector<16x128xf32> to vector<16x128xbf16>
      %cst_26 = arith.constant dense<0.000000e+00> : vector<16x16xf32>
      %35 = tpu.matmul %34, %34, %cst_26 {dimension_numbers = #tpu.dot_dimension_numbers<[1], [1], [0], [0], [0, 0, 1, 0], [], []>} : vector<16x128xbf16>, vector<16x128xbf16>, vector<16x16xf32> -> vector<16x16xf32>
      %36 = arith.addf %19, %35 : vector<16x16xf32>
      %cst_27 = arith.constant dense<0.000000e+00> : vector<1x16xf32>
      %37 = tpu.matmul %3, %34, %cst_27 {dimension_numbers = #tpu.dot_dimension_numbers<[1], [1], [0], [0], [0, 0, 1, 0], [], []>} : vector<1x128xbf16>, vector<16x128xbf16>, vector<1x16xf32> -> vector<1x16xf32>
      %38 = arith.addf %20, %37 : vector<1x16xf32>
      %c0_28 = arith.constant 0 : index
      %c1_29 = arith.constant 1 : index
      %c0_30 = arith.constant 0 : index
      %c0_31 = arith.constant 0 : index
      %39 = vector.load %arg3[%c0_28, %c1_29, %c0_30, %c0_31] : memref<1x8x10x128xbf16, #tpu.memory_space<vmem>>, vector<1x1x10x128xbf16>
      %40 = vector.shape_cast %39 : vector<1x1x10x128xbf16> to vector<10x128xbf16>
      %cst_32 = arith.constant dense<0.000000e+00> : vector<16x128xf32>
      %41 = tpu.matmul %0, %40, %cst_32 {dimension_numbers = #tpu.dot_dimension_numbers<[1], [0], [0], [1], [0, 0, 1, 1], [], []>} : vector<16x10xbf16>, vector<10x128xbf16>, vector<16x128xf32> -> vector<16x128xf32>
      %c0_33 = arith.constant 0 : index
      %c0_34 = arith.constant 0 : index
      %c0_35 = arith.constant 0 : index
      %42 = vector.load %arg14[%c0_33, %c0_34, %c0_35] : memref<2x16x1xf32, #tpu.memory_space<vmem>>, vector<1x16x1xf32>
      %43 = vector.shape_cast %42 : vector<1x16x1xf32> to vector<16x1xf32>
      %44 = vector.broadcast %43 : vector<16x1xf32> to vector<16x128xf32>
      %45 = arith.subf %41, %44 : vector<16x128xf32>
      %c1_36 = arith.constant 1 : index
      %c0_37 = arith.constant 0 : index
      %c0_38 = arith.constant 0 : index
      %46 = vector.load %arg14[%c1_36, %c0_37, %c0_38] : memref<2x16x1xf32, #tpu.memory_space<vmem>>, vector<1x16x1xf32>
      %47 = vector.shape_cast %46 : vector<1x16x1xf32> to vector<16x1xf32>
      %48 = vector.broadcast %47 : vector<16x1xf32> to vector<16x128xf32>
      %49 = arith.mulf %45, %48 : vector<16x128xf32>
      %cst_39 = arith.constant 0.000000e+00 : f32
      %50 = vector.broadcast %cst_39 : f32 to vector<16x128xf32>
      %51 = arith.maximumf %49, %50 : vector<16x128xf32>
      %52 = arith.truncf %51 : vector<16x128xf32> to vector<16x128xbf16>
      %cst_40 = arith.constant dense<0.000000e+00> : vector<16x16xf32>
      %53 = tpu.matmul %52, %52, %cst_40 {dimension_numbers = #tpu.dot_dimension_numbers<[1], [1], [0], [0], [0, 0, 1, 0], [], []>} : vector<16x128xbf16>, vector<16x128xbf16>, vector<16x16xf32> -> vector<16x16xf32>
      %54 = arith.addf %36, %53 : vector<16x16xf32>
      %cst_41 = arith.constant dense<0.000000e+00> : vector<1x16xf32>
      %55 = tpu.matmul %3, %52, %cst_41 {dimension_numbers = #tpu.dot_dimension_numbers<[1], [1], [0], [0], [0, 0, 1, 0], [], []>} : vector<1x128xbf16>, vector<16x128xbf16>, vector<1x16xf32> -> vector<1x16xf32>
      %56 = arith.addf %38, %55 : vector<1x16xf32>
      %c0_42 = arith.constant 0 : index
      %c2 = arith.constant 2 : index
      %c0_43 = arith.constant 0 : index
      %c0_44 = arith.constant 0 : index
      %57 = vector.load %arg3[%c0_42, %c2, %c0_43, %c0_44] : memref<1x8x10x128xbf16, #tpu.memory_space<vmem>>, vector<1x1x10x128xbf16>
      %58 = vector.shape_cast %57 : vector<1x1x10x128xbf16> to vector<10x128xbf16>
      %cst_45 = arith.constant dense<0.000000e+00> : vector<16x128xf32>
      %59 = tpu.matmul %0, %58, %cst_45 {dimension_numbers = #tpu.dot_dimension_numbers<[1], [0], [0], [1], [0, 0, 1, 1], [], []>} : vector<16x10xbf16>, vector<10x128xbf16>, vector<16x128xf32> -> vector<16x128xf32>
      %c0_46 = arith.constant 0 : index
      %c0_47 = arith.constant 0 : index
      %c0_48 = arith.constant 0 : index
      %60 = vector.load %arg14[%c0_46, %c0_47, %c0_48] : memref<2x16x1xf32, #tpu.memory_space<vmem>>, vector<1x16x1xf32>
      %61 = vector.shape_cast %60 : vector<1x16x1xf32> to vector<16x1xf32>
      %62 = vector.broadcast %61 : vector<16x1xf32> to vector<16x128xf32>
      %63 = arith.subf %59, %62 : vector<16x128xf32>
      %c1_49 = arith.constant 1 : index
      %c0_50 = arith.constant 0 : index
      %c0_51 = arith.constant 0 : index
      %64 = vector.load %arg14[%c1_49, %c0_50, %c0_51] : memref<2x16x1xf32, #tpu.memory_space<vmem>>, vector<1x16x1xf32>
      %65 = vector.shape_cast %64 : vector<1x16x1xf32> to vector<16x1xf32>
      %66 = vector.broadcast %65 : vector<16x1xf32> to vector<16x128xf32>
      %67 = arith.mulf %63, %66 : vector<16x128xf32>
      %cst_52 = arith.constant 0.000000e+00 : f32
      %68 = vector.broadcast %cst_52 : f32 to vector<16x128xf32>
      %69 = arith.maximumf %67, %68 : vector<16x128xf32>
      %70 = arith.truncf %69 : vector<16x128xf32> to vector<16x128xbf16>
      %cst_53 = arith.constant dense<0.000000e+00> : vector<16x16xf32>
      %71 = tpu.matmul %70, %70, %cst_53 {dimension_numbers = #tpu.dot_dimension_numbers<[1], [1], [0], [0], [0, 0, 1, 0], [], []>} : vector<16x128xbf16>, vector<16x128xbf16>, vector<16x16xf32> -> vector<16x16xf32>
      %72 = arith.addf %54, %71 : vector<16x16xf32>
      %cst_54 = arith.constant dense<0.000000e+00> : vector<1x16xf32>
      %73 = tpu.matmul %3, %70, %cst_54 {dimension_numbers = #tpu.dot_dimension_numbers<[1], [1], [0], [0], [0, 0, 1, 0], [], []>} : vector<1x128xbf16>, vector<16x128xbf16>, vector<1x16xf32> -> vector<1x16xf32>
      %74 = arith.addf %56, %73 : vector<1x16xf32>
      %c0_55 = arith.constant 0 : index
      %c3 = arith.constant 3 : index
      %c0_56 = arith.constant 0 : index
      %c0_57 = arith.constant 0 : index
      %75 = vector.load %arg3[%c0_55, %c3, %c0_56, %c0_57] : memref<1x8x10x128xbf16, #tpu.memory_space<vmem>>, vector<1x1x10x128xbf16>
      %76 = vector.shape_cast %75 : vector<1x1x10x128xbf16> to vector<10x128xbf16>
      %cst_58 = arith.constant dense<0.000000e+00> : vector<16x128xf32>
      %77 = tpu.matmul %0, %76, %cst_58 {dimension_numbers = #tpu.dot_dimension_numbers<[1], [0], [0], [1], [0, 0, 1, 1], [], []>} : vector<16x10xbf16>, vector<10x128xbf16>, vector<16x128xf32> -> vector<16x128xf32>
      %c0_59 = arith.constant 0 : index
      %c0_60 = arith.constant 0 : index
      %c0_61 = arith.constant 0 : index
      %78 = vector.load %arg14[%c0_59, %c0_60, %c0_61] : memref<2x16x1xf32, #tpu.memory_space<vmem>>, vector<1x16x1xf32>
      %79 = vector.shape_cast %78 : vector<1x16x1xf32> to vector<16x1xf32>
      %80 = vector.broadcast %79 : vector<16x1xf32> to vector<16x128xf32>
      %81 = arith.subf %77, %80 : vector<16x128xf32>
      %c1_62 = arith.constant 1 : index
      %c0_63 = arith.constant 0 : index
      %c0_64 = arith.constant 0 : index
      %82 = vector.load %arg14[%c1_62, %c0_63, %c0_64] : memref<2x16x1xf32, #tpu.memory_space<vmem>>, vector<1x16x1xf32>
      %83 = vector.shape_cast %82 : vector<1x16x1xf32> to vector<16x1xf32>
      %84 = vector.broadcast %83 : vector<16x1xf32> to vector<16x128xf32>
      %85 = arith.mulf %81, %84 : vector<16x128xf32>
      %cst_65 = arith.constant 0.000000e+00 : f32
      %86 = vector.broadcast %cst_65 : f32 to vector<16x128xf32>
      %87 = arith.maximumf %85, %86 : vector<16x128xf32>
      %88 = arith.truncf %87 : vector<16x128xf32> to vector<16x128xbf16>
      %cst_66 = arith.constant dense<0.000000e+00> : vector<16x16xf32>
      %89 = tpu.matmul %88, %88, %cst_66 {dimension_numbers = #tpu.dot_dimension_numbers<[1], [1], [0], [0], [0, 0, 1, 0], [], []>} : vector<16x128xbf16>, vector<16x128xbf16>, vector<16x16xf32> -> vector<16x16xf32>
      %90 = arith.addf %72, %89 : vector<16x16xf32>
      %cst_67 = arith.constant dense<0.000000e+00> : vector<1x16xf32>
      %91 = tpu.matmul %3, %88, %cst_67 {dimension_numbers = #tpu.dot_dimension_numbers<[1], [1], [0], [0], [0, 0, 1, 0], [], []>} : vector<1x128xbf16>, vector<16x128xbf16>, vector<1x16xf32> -> vector<1x16xf32>
      %92 = arith.addf %74, %91 : vector<1x16xf32>
      %c0_68 = arith.constant 0 : index
      %c4 = arith.constant 4 : index
      %c0_69 = arith.constant 0 : index
      %c0_70 = arith.constant 0 : index
      %93 = vector.load %arg3[%c0_68, %c4, %c0_69, %c0_70] : memref<1x8x10x128xbf16, #tpu.memory_space<vmem>>, vector<1x1x10x128xbf16>
      %94 = vector.shape_cast %93 : vector<1x1x10x128xbf16> to vector<10x128xbf16>
      %cst_71 = arith.constant dense<0.000000e+00> : vector<16x128xf32>
      %95 = tpu.matmul %0, %94, %cst_71 {dimension_numbers = #tpu.dot_dimension_numbers<[1], [0], [0], [1], [0, 0, 1, 1], [], []>} : vector<16x10xbf16>, vector<10x128xbf16>, vector<16x128xf32> -> vector<16x128xf32>
      %c0_72 = arith.constant 0 : index
      %c0_73 = arith.constant 0 : index
      %c0_74 = arith.constant 0 : index
      %96 = vector.load %arg14[%c0_72, %c0_73, %c0_74] : memref<2x16x1xf32, #tpu.memory_space<vmem>>, vector<1x16x1xf32>
      %97 = vector.shape_cast %96 : vector<1x16x1xf32> to vector<16x1xf32>
      %98 = vector.broadcast %97 : vector<16x1xf32> to vector<16x128xf32>
      %99 = arith.subf %95, %98 : vector<16x128xf32>
      %c1_75 = arith.constant 1 : index
      %c0_76 = arith.constant 0 : index
      %c0_77 = arith.constant 0 : index
      %100 = vector.load %arg14[%c1_75, %c0_76, %c0_77] : memref<2x16x1xf32, #tpu.memory_space<vmem>>, vector<1x16x1xf32>
      %101 = vector.shape_cast %100 : vector<1x16x1xf32> to vector<16x1xf32>
      %102 = vector.broadcast %101 : vector<16x1xf32> to vector<16x128xf32>
      %103 = arith.mulf %99, %102 : vector<16x128xf32>
      %cst_78 = arith.constant 0.000000e+00 : f32
      %104 = vector.broadcast %cst_78 : f32 to vector<16x128xf32>
      %105 = arith.maximumf %103, %104 : vector<16x128xf32>
      %106 = arith.truncf %105 : vector<16x128xf32> to vector<16x128xbf16>
      %cst_79 = arith.constant dense<0.000000e+00> : vector<16x16xf32>
      %107 = tpu.matmul %106, %106, %cst_79 {dimension_numbers = #tpu.dot_dimension_numbers<[1], [1], [0], [0], [0, 0, 1, 0], [], []>} : vector<16x128xbf16>, vector<16x128xbf16>, vector<16x16xf32> -> vector<16x16xf32>
      %108 = arith.addf %90, %107 : vector<16x16xf32>
      %cst_80 = arith.constant dense<0.000000e+00> : vector<1x16xf32>
      %109 = tpu.matmul %3, %106, %cst_80 {dimension_numbers = #tpu.dot_dimension_numbers<[1], [1], [0], [0], [0, 0, 1, 0], [], []>} : vector<1x128xbf16>, vector<16x128xbf16>, vector<1x16xf32> -> vector<1x16xf32>
      %110 = arith.addf %92, %109 : vector<1x16xf32>
      %c0_81 = arith.constant 0 : index
      %c5 = arith.constant 5 : index
      %c0_82 = arith.constant 0 : index
      %c0_83 = arith.constant 0 : index
      %111 = vector.load %arg3[%c0_81, %c5, %c0_82, %c0_83] : memref<1x8x10x128xbf16, #tpu.memory_space<vmem>>, vector<1x1x10x128xbf16>
      %112 = vector.shape_cast %111 : vector<1x1x10x128xbf16> to vector<10x128xbf16>
      %cst_84 = arith.constant dense<0.000000e+00> : vector<16x128xf32>
      %113 = tpu.matmul %0, %112, %cst_84 {dimension_numbers = #tpu.dot_dimension_numbers<[1], [0], [0], [1], [0, 0, 1, 1], [], []>} : vector<16x10xbf16>, vector<10x128xbf16>, vector<16x128xf32> -> vector<16x128xf32>
      %c0_85 = arith.constant 0 : index
      %c0_86 = arith.constant 0 : index
      %c0_87 = arith.constant 0 : index
      %114 = vector.load %arg14[%c0_85, %c0_86, %c0_87] : memref<2x16x1xf32, #tpu.memory_space<vmem>>, vector<1x16x1xf32>
      %115 = vector.shape_cast %114 : vector<1x16x1xf32> to vector<16x1xf32>
      %116 = vector.broadcast %115 : vector<16x1xf32> to vector<16x128xf32>
      %117 = arith.subf %113, %116 : vector<16x128xf32>
      %c1_88 = arith.constant 1 : index
      %c0_89 = arith.constant 0 : index
      %c0_90 = arith.constant 0 : index
      %118 = vector.load %arg14[%c1_88, %c0_89, %c0_90] : memref<2x16x1xf32, #tpu.memory_space<vmem>>, vector<1x16x1xf32>
      %119 = vector.shape_cast %118 : vector<1x16x1xf32> to vector<16x1xf32>
      %120 = vector.broadcast %119 : vector<16x1xf32> to vector<16x128xf32>
      %121 = arith.mulf %117, %120 : vector<16x128xf32>
      %cst_91 = arith.constant 0.000000e+00 : f32
      %122 = vector.broadcast %cst_91 : f32 to vector<16x128xf32>
      %123 = arith.maximumf %121, %122 : vector<16x128xf32>
      %124 = arith.truncf %123 : vector<16x128xf32> to vector<16x128xbf16>
      %cst_92 = arith.constant dense<0.000000e+00> : vector<16x16xf32>
      %125 = tpu.matmul %124, %124, %cst_92 {dimension_numbers = #tpu.dot_dimension_numbers<[1], [1], [0], [0], [0, 0, 1, 0], [], []>} : vector<16x128xbf16>, vector<16x128xbf16>, vector<16x16xf32> -> vector<16x16xf32>
      %126 = arith.addf %108, %125 : vector<16x16xf32>
      %cst_93 = arith.constant dense<0.000000e+00> : vector<1x16xf32>
      %127 = tpu.matmul %3, %124, %cst_93 {dimension_numbers = #tpu.dot_dimension_numbers<[1], [1], [0], [0], [0, 0, 1, 0], [], []>} : vector<1x128xbf16>, vector<16x128xbf16>, vector<1x16xf32> -> vector<1x16xf32>
      %128 = arith.addf %110, %127 : vector<1x16xf32>
      %c0_94 = arith.constant 0 : index
      %c6 = arith.constant 6 : index
      %c0_95 = arith.constant 0 : index
      %c0_96 = arith.constant 0 : index
      %129 = vector.load %arg3[%c0_94, %c6, %c0_95, %c0_96] : memref<1x8x10x128xbf16, #tpu.memory_space<vmem>>, vector<1x1x10x128xbf16>
      %130 = vector.shape_cast %129 : vector<1x1x10x128xbf16> to vector<10x128xbf16>
      %cst_97 = arith.constant dense<0.000000e+00> : vector<16x128xf32>
      %131 = tpu.matmul %0, %130, %cst_97 {dimension_numbers = #tpu.dot_dimension_numbers<[1], [0], [0], [1], [0, 0, 1, 1], [], []>} : vector<16x10xbf16>, vector<10x128xbf16>, vector<16x128xf32> -> vector<16x128xf32>
      %c0_98 = arith.constant 0 : index
      %c0_99 = arith.constant 0 : index
      %c0_100 = arith.constant 0 : index
      %132 = vector.load %arg14[%c0_98, %c0_99, %c0_100] : memref<2x16x1xf32, #tpu.memory_space<vmem>>, vector<1x16x1xf32>
      %133 = vector.shape_cast %132 : vector<1x16x1xf32> to vector<16x1xf32>
      %134 = vector.broadcast %133 : vector<16x1xf32> to vector<16x128xf32>
      %135 = arith.subf %131, %134 : vector<16x128xf32>
      %c1_101 = arith.constant 1 : index
      %c0_102 = arith.constant 0 : index
      %c0_103 = arith.constant 0 : index
      %136 = vector.load %arg14[%c1_101, %c0_102, %c0_103] : memref<2x16x1xf32, #tpu.memory_space<vmem>>, vector<1x16x1xf32>
      %137 = vector.shape_cast %136 : vector<1x16x1xf32> to vector<16x1xf32>
      %138 = vector.broadcast %137 : vector<16x1xf32> to vector<16x128xf32>
      %139 = arith.mulf %135, %138 : vector<16x128xf32>
      %cst_104 = arith.constant 0.000000e+00 : f32
      %140 = vector.broadcast %cst_104 : f32 to vector<16x128xf32>
      %141 = arith.maximumf %139, %140 : vector<16x128xf32>
      %142 = arith.truncf %141 : vector<16x128xf32> to vector<16x128xbf16>
      %cst_105 = arith.constant dense<0.000000e+00> : vector<16x16xf32>
      %143 = tpu.matmul %142, %142, %cst_105 {dimension_numbers = #tpu.dot_dimension_numbers<[1], [1], [0], [0], [0, 0, 1, 0], [], []>} : vector<16x128xbf16>, vector<16x128xbf16>, vector<16x16xf32> -> vector<16x16xf32>
      %144 = arith.addf %126, %143 : vector<16x16xf32>
      %cst_106 = arith.constant dense<0.000000e+00> : vector<1x16xf32>
      %145 = tpu.matmul %3, %142, %cst_106 {dimension_numbers = #tpu.dot_dimension_numbers<[1], [1], [0], [0], [0, 0, 1, 0], [], []>} : vector<1x128xbf16>, vector<16x128xbf16>, vector<1x16xf32> -> vector<1x16xf32>
      %146 = arith.addf %128, %145 : vector<1x16xf32>
      %c0_107 = arith.constant 0 : index
      %c7 = arith.constant 7 : index
      %c0_108 = arith.constant 0 : index
      %c0_109 = arith.constant 0 : index
      %147 = vector.load %arg3[%c0_107, %c7, %c0_108, %c0_109] : memref<1x8x10x128xbf16, #tpu.memory_space<vmem>>, vector<1x1x10x128xbf16>
      %148 = vector.shape_cast %147 : vector<1x1x10x128xbf16> to vector<10x128xbf16>
      %cst_110 = arith.constant dense<0.000000e+00> : vector<16x128xf32>
      %149 = tpu.matmul %0, %148, %cst_110 {dimension_numbers = #tpu.dot_dimension_numbers<[1], [0], [0], [1], [0, 0, 1, 1], [], []>} : vector<16x10xbf16>, vector<10x128xbf16>, vector<16x128xf32> -> vector<16x128xf32>
      %c0_111 = arith.constant 0 : index
      %c0_112 = arith.constant 0 : index
      %c0_113 = arith.constant 0 : index
      %150 = vector.load %arg14[%c0_111, %c0_112, %c0_113] : memref<2x16x1xf32, #tpu.memory_space<vmem>>, vector<1x16x1xf32>
      %151 = vector.shape_cast %150 : vector<1x16x1xf32> to vector<16x1xf32>
      %152 = vector.broadcast %151 : vector<16x1xf32> to vector<16x128xf32>
      %153 = arith.subf %149, %152 : vector<16x128xf32>
      %c1_114 = arith.constant 1 : index
      %c0_115 = arith.constant 0 : index
      %c0_116 = arith.constant 0 : index
      %154 = vector.load %arg14[%c1_114, %c0_115, %c0_116] : memref<2x16x1xf32, #tpu.memory_space<vmem>>, vector<1x16x1xf32>
      %155 = vector.shape_cast %154 : vector<1x16x1xf32> to vector<16x1xf32>
      %156 = vector.broadcast %155 : vector<16x1xf32> to vector<16x128xf32>
      %157 = arith.mulf %153, %156 : vector<16x128xf32>
      %cst_117 = arith.constant 0.000000e+00 : f32
      %158 = vector.broadcast %cst_117 : f32 to vector<16x128xf32>
      %159 = arith.maximumf %157, %158 : vector<16x128xf32>
      %160 = arith.truncf %159 : vector<16x128xf32> to vector<16x128xbf16>
      %cst_118 = arith.constant dense<0.000000e+00> : vector<16x16xf32>
      %161 = tpu.matmul %160, %160, %cst_118 {dimension_numbers = #tpu.dot_dimension_numbers<[1], [1], [0], [0], [0, 0, 1, 0], [], []>} : vector<16x128xbf16>, vector<16x128xbf16>, vector<16x16xf32> -> vector<16x16xf32>
      %162 = arith.addf %144, %161 : vector<16x16xf32>
      %cst_119 = arith.constant dense<0.000000e+00> : vector<1x16xf32>
      %163 = tpu.matmul %3, %160, %cst_119 {dimension_numbers = #tpu.dot_dimension_numbers<[1], [1], [0], [0], [0, 0, 1, 0], [], []>} : vector<1x128xbf16>, vector<16x128xbf16>, vector<1x16xf32> -> vector<1x16xf32>
      %164 = arith.addf %146, %163 : vector<1x16xf32>
      %c0_120 = arith.constant 0 : index
      %c0_121 = arith.constant 0 : index
      %165 = vector.load %arg9[%c0_120, %c0_121] : memref<16x16xf32, #tpu.memory_space<vmem>>, vector<16x16xf32>
      tpu.vector_store %arg9[%c0_120, %c0_121], %162 {strides = array<i32>} : memref<16x16xf32, #tpu.memory_space<vmem>>, vector<16x16xf32>,
      %c0_122 = arith.constant 0 : index
      %c0_123 = arith.constant 0 : index
      %166 = vector.load %arg12[%c0_122, %c0_123] : memref<1x16xf32, #tpu.memory_space<vmem>>, vector<1x16xf32>
      tpu.vector_store %arg12[%c0_122, %c0_123], %164 {strides = array<i32>} : memref<1x16xf32, #tpu.memory_space<vmem>>, vector<1x16xf32>,
      %c1_i32_124 = arith.constant 1 : i32
      %167 = arith.cmpi eq, %arg2, %c1_i32_124 : i32
      %168 = arith.extui %167 : i1 to i32
      %c0_i32_125 = arith.constant 0 : i32
      %169 = arith.cmpi ne, %168, %c0_i32_125 : i32
      scf.if %169 {
        %170 = arith.extf %1 : vector<16x16xbf16> to vector<16x16xf32>
        %c0_126 = arith.constant 0 : index
        %c0_127 = arith.constant 0 : index
        %171 = vector.load %arg12[%c0_126, %c0_127] : memref<1x16xf32, #tpu.memory_space<vmem>>, vector<1x16xf32>
        %172 = vector.broadcast %171 : vector<1x16xf32> to vector<16x16xf32>
        %173 = arith.mulf %170, %172 : vector<16x16xf32>
        %cst_128 = arith.constant dense<0.000000e+00> : vector<16xf32>
        %174 = vector.multi_reduction <add>, %173, %cst_128 [1] : vector<16x16xf32> to vector<16xf32>
        %175 = vector.shape_cast %174 : vector<16xf32> to vector<16x1xf32>
        %cst_129 = arith.constant 4.8828125E-4 : f32
        %176 = vector.broadcast %cst_129 : f32 to vector<16x1xf32>
        %177 = arith.mulf %175, %176 : vector<16x1xf32>
        %c0_130 = arith.constant 0 : index
        %c0_131 = arith.constant 0 : index
        %178 = vector.load %arg9[%c0_130, %c0_131] : memref<16x16xf32, #tpu.memory_space<vmem>>, vector<16x16xf32>
        %cst_132 = arith.constant dense<0.000000e+00> : vector<16x16xf32>
        %179 = tpu.matmul %170, %178, %cst_132 {dimension_numbers = #tpu.dot_dimension_numbers<[1], [0], [0], [1], [0, 0, 1, 1], [], []>} : vector<16x16xf32>, vector<16x16xf32>, vector<16x16xf32> -> vector<16x16xf32>
        %180 = arith.mulf %179, %170 : vector<16x16xf32>
        %cst_133 = arith.constant dense<0.000000e+00> : vector<16xf32>
        %181 = vector.multi_reduction <add>, %180, %cst_133 [1] : vector<16x16xf32> to vector<16xf32>
        %182 = vector.shape_cast %181 : vector<16xf32> to vector<16x1xf32>
        %cst_134 = arith.constant 4.8828125E-4 : f32
        %183 = vector.broadcast %cst_134 : f32 to vector<16x1xf32>
        %184 = arith.mulf %182, %183 : vector<16x1xf32>
        %185 = arith.mulf %177, %177 : vector<16x1xf32>
        %186 = arith.subf %184, %185 : vector<16x1xf32>
        %cst_135 = arith.constant 0.000000e+00 : f32
        %187 = vector.broadcast %cst_135 : f32 to vector<16x1xf32>
        %188 = arith.maximumf %186, %187 : vector<16x1xf32>
        %c0_136 = arith.constant 0 : index
        %c0_137 = arith.constant 0 : index
        %c0_138 = arith.constant 0 : index
        %189 = vector.load %arg15[%c0_136, %c0_137, %c0_138] : memref<2x16x1xf32, #tpu.memory_space<vmem>>, vector<1x16x1xf32>
        %190 = vector.shape_cast %189 : vector<1x16x1xf32> to vector<16x1xf32>
        %191 = vector.shape_cast %177 : vector<16x1xf32> to vector<1x16x1xf32>
        tpu.vector_store %arg15[%c0_136, %c0_137, %c0_138], %191 {strides = array<i32>} : memref<2x16x1xf32, #tpu.memory_space<vmem>>, vector<1x16x1xf32>,
        %cst_139 = arith.constant 9.99999974E-6 : f32
        %192 = vector.broadcast %cst_139 : f32 to vector<16x1xf32>
        %193 = arith.addf %188, %192 : vector<16x1xf32>
        %194 = math.rsqrt %193 : vector<16x1xf32>
        %c1_140 = arith.constant 1 : index
        %c0_141 = arith.constant 0 : index
        %c0_142 = arith.constant 0 : index
        %195 = vector.load %arg15[%c1_140, %c0_141, %c0_142] : memref<2x16x1xf32, #tpu.memory_space<vmem>>, vector<1x16x1xf32>
        %196 = vector.shape_cast %195 : vector<1x16x1xf32> to vector<16x1xf32>
        %197 = vector.shape_cast %194 : vector<16x1xf32> to vector<1x16x1xf32>
        tpu.vector_store %arg15[%c1_140, %c0_141, %c0_142], %197 {strides = array<i32>} : memref<2x16x1xf32, #tpu.memory_space<vmem>>, vector<1x16x1xf32>,
      } else {
      }
    } else {
    }
    %c2_i32 = arith.constant 2 : i32
    %10 = arith.cmpi eq, %arg1, %c2_i32 : i32
    %11 = arith.extui %10 : i1 to i32
    %c0_i32_7 = arith.constant 0 : i32
    %12 = arith.cmpi ne, %11, %c0_i32_7 : i32
    scf.if %12 {
      %c0_i32_9 = arith.constant 0 : i32
      %16 = arith.cmpi eq, %arg2, %c0_i32_9 : i32
      %17 = arith.extui %16 : i1 to i32
      %c0_i32_10 = arith.constant 0 : i32
      %18 = arith.cmpi ne, %17, %c0_i32_10 : i32
      scf.if %18 {
        %cst_190 = arith.constant 0.000000e+00 : f32
        %266 = vector.broadcast %cst_190 : f32 to vector<16x16xf32>
        %c0_191 = arith.constant 0 : index
        %c0_192 = arith.constant 0 : index
        %267 = vector.load %arg10[%c0_191, %c0_192] : memref<16x16xf32, #tpu.memory_space<vmem>>, vector<16x16xf32>
        tpu.vector_store %arg10[%c0_191, %c0_192], %266 {strides = array<i32>} : memref<16x16xf32, #tpu.memory_space<vmem>>, vector<16x16xf32>,
        %cst_193 = arith.constant 0.000000e+00 : f32
        %268 = vector.broadcast %cst_193 : f32 to vector<1x16xf32>
        %c0_194 = arith.constant 0 : index
        %c0_195 = arith.constant 0 : index
        %269 = vector.load %arg13[%c0_194, %c0_195] : memref<1x16xf32, #tpu.memory_space<vmem>>, vector<1x16xf32>
        tpu.vector_store %arg13[%c0_194, %c0_195], %268 {strides = array<i32>} : memref<1x16xf32, #tpu.memory_space<vmem>>, vector<1x16xf32>,
      } else {
      }
      %c0_11 = arith.constant 0 : index
      %c0_12 = arith.constant 0 : index
      %19 = vector.load %arg10[%c0_11, %c0_12] : memref<16x16xf32, #tpu.memory_space<vmem>>, vector<16x16xf32>
      %c0_13 = arith.constant 0 : index
      %c0_14 = arith.constant 0 : index
      %20 = vector.load %arg13[%c0_13, %c0_14] : memref<1x16xf32, #tpu.memory_space<vmem>>, vector<1x16xf32>
      %c0_15 = arith.constant 0 : index
      %c0_16 = arith.constant 0 : index
      %c0_17 = arith.constant 0 : index
      %c0_18 = arith.constant 0 : index
      %21 = vector.load %arg3[%c0_15, %c0_16, %c0_17, %c0_18] : memref<1x8x10x128xbf16, #tpu.memory_space<vmem>>, vector<1x1x10x128xbf16>
      %22 = vector.shape_cast %21 : vector<1x1x10x128xbf16> to vector<10x128xbf16>
      %cst_19 = arith.constant dense<0.000000e+00> : vector<16x128xf32>
      %23 = tpu.matmul %0, %22, %cst_19 {dimension_numbers = #tpu.dot_dimension_numbers<[1], [0], [0], [1], [0, 0, 1, 1], [], []>} : vector<16x10xbf16>, vector<10x128xbf16>, vector<16x128xf32> -> vector<16x128xf32>
      %c0_20 = arith.constant 0 : index
      %c0_21 = arith.constant 0 : index
      %c0_22 = arith.constant 0 : index
      %24 = vector.load %arg14[%c0_20, %c0_21, %c0_22] : memref<2x16x1xf32, #tpu.memory_space<vmem>>, vector<1x16x1xf32>
      %25 = vector.shape_cast %24 : vector<1x16x1xf32> to vector<16x1xf32>
      %26 = vector.broadcast %25 : vector<16x1xf32> to vector<16x128xf32>
      %27 = arith.subf %23, %26 : vector<16x128xf32>
      %c1 = arith.constant 1 : index
      %c0_23 = arith.constant 0 : index
      %c0_24 = arith.constant 0 : index
      %28 = vector.load %arg14[%c1, %c0_23, %c0_24] : memref<2x16x1xf32, #tpu.memory_space<vmem>>, vector<1x16x1xf32>
      %29 = vector.shape_cast %28 : vector<1x16x1xf32> to vector<16x1xf32>
      %30 = vector.broadcast %29 : vector<16x1xf32> to vector<16x128xf32>
      %31 = arith.mulf %27, %30 : vector<16x128xf32>
      %cst_25 = arith.constant 0.000000e+00 : f32
      %32 = vector.broadcast %cst_25 : f32 to vector<16x128xf32>
      %33 = arith.maximumf %31, %32 : vector<16x128xf32>
      %34 = arith.truncf %33 : vector<16x128xf32> to vector<16x128xbf16>
      %cst_26 = arith.constant dense<0.000000e+00> : vector<16x128xf32>
      %35 = tpu.matmul %1, %34, %cst_26 {dimension_numbers = #tpu.dot_dimension_numbers<[1], [0], [0], [1], [0, 0, 1, 1], [], []>} : vector<16x16xbf16>, vector<16x128xbf16>, vector<16x128xf32> -> vector<16x128xf32>
      %c0_27 = arith.constant 0 : index
      %c0_28 = arith.constant 0 : index
      %c0_29 = arith.constant 0 : index
      %36 = vector.load %arg15[%c0_27, %c0_28, %c0_29] : memref<2x16x1xf32, #tpu.memory_space<vmem>>, vector<1x16x1xf32>
      %37 = vector.shape_cast %36 : vector<1x16x1xf32> to vector<16x1xf32>
      %38 = vector.broadcast %37 : vector<16x1xf32> to vector<16x128xf32>
      %39 = arith.subf %35, %38 : vector<16x128xf32>
      %c1_30 = arith.constant 1 : index
      %c0_31 = arith.constant 0 : index
      %c0_32 = arith.constant 0 : index
      %40 = vector.load %arg15[%c1_30, %c0_31, %c0_32] : memref<2x16x1xf32, #tpu.memory_space<vmem>>, vector<1x16x1xf32>
      %41 = vector.shape_cast %40 : vector<1x16x1xf32> to vector<16x1xf32>
      %42 = vector.broadcast %41 : vector<16x1xf32> to vector<16x128xf32>
      %43 = arith.mulf %39, %42 : vector<16x128xf32>
      %cst_33 = arith.constant 0.000000e+00 : f32
      %44 = vector.broadcast %cst_33 : f32 to vector<16x128xf32>
      %45 = arith.maximumf %43, %44 : vector<16x128xf32>
      %46 = arith.truncf %45 : vector<16x128xf32> to vector<16x128xbf16>
      %cst_34 = arith.constant dense<0.000000e+00> : vector<16x16xf32>
      %47 = tpu.matmul %46, %46, %cst_34 {dimension_numbers = #tpu.dot_dimension_numbers<[1], [1], [0], [0], [0, 0, 1, 0], [], []>} : vector<16x128xbf16>, vector<16x128xbf16>, vector<16x16xf32> -> vector<16x16xf32>
      %48 = arith.addf %19, %47 : vector<16x16xf32>
      %cst_35 = arith.constant dense<0.000000e+00> : vector<1x16xf32>
      %49 = tpu.matmul %3, %46, %cst_35 {dimension_numbers = #tpu.dot_dimension_numbers<[1], [1], [0], [0], [0, 0, 1, 0], [], []>} : vector<1x128xbf16>, vector<16x128xbf16>, vector<1x16xf32> -> vector<1x16xf32>
      %50 = arith.addf %20, %49 : vector<1x16xf32>
      %c0_36 = arith.constant 0 : index
      %c1_37 = arith.constant 1 : index
      %c0_38 = arith.constant 0 : index
      %c0_39 = arith.constant 0 : index
      %51 = vector.load %arg3[%c0_36, %c1_37, %c0_38, %c0_39] : memref<1x8x10x128xbf16, #tpu.memory_space<vmem>>, vector<1x1x10x128xbf16>
      %52 = vector.shape_cast %51 : vector<1x1x10x128xbf16> to vector<10x128xbf16>
      %cst_40 = arith.constant dense<0.000000e+00> : vector<16x128xf32>
      %53 = tpu.matmul %0, %52, %cst_40 {dimension_numbers = #tpu.dot_dimension_numbers<[1], [0], [0], [1], [0, 0, 1, 1], [], []>} : vector<16x10xbf16>, vector<10x128xbf16>, vector<16x128xf32> -> vector<16x128xf32>
      %c0_41 = arith.constant 0 : index
      %c0_42 = arith.constant 0 : index
      %c0_43 = arith.constant 0 : index
      %54 = vector.load %arg14[%c0_41, %c0_42, %c0_43] : memref<2x16x1xf32, #tpu.memory_space<vmem>>, vector<1x16x1xf32>
      %55 = vector.shape_cast %54 : vector<1x16x1xf32> to vector<16x1xf32>
      %56 = vector.broadcast %55 : vector<16x1xf32> to vector<16x128xf32>
      %57 = arith.subf %53, %56 : vector<16x128xf32>
      %c1_44 = arith.constant 1 : index
      %c0_45 = arith.constant 0 : index
      %c0_46 = arith.constant 0 : index
      %58 = vector.load %arg14[%c1_44, %c0_45, %c0_46] : memref<2x16x1xf32, #tpu.memory_space<vmem>>, vector<1x16x1xf32>
      %59 = vector.shape_cast %58 : vector<1x16x1xf32> to vector<16x1xf32>
      %60 = vector.broadcast %59 : vector<16x1xf32> to vector<16x128xf32>
      %61 = arith.mulf %57, %60 : vector<16x128xf32>
      %cst_47 = arith.constant 0.000000e+00 : f32
      %62 = vector.broadcast %cst_47 : f32 to vector<16x128xf32>
      %63 = arith.maximumf %61, %62 : vector<16x128xf32>
      %64 = arith.truncf %63 : vector<16x128xf32> to vector<16x128xbf16>
      %cst_48 = arith.constant dense<0.000000e+00> : vector<16x128xf32>
      %65 = tpu.matmul %1, %64, %cst_48 {dimension_numbers = #tpu.dot_dimension_numbers<[1], [0], [0], [1], [0, 0, 1, 1], [], []>} : vector<16x16xbf16>, vector<16x128xbf16>, vector<16x128xf32> -> vector<16x128xf32>
      %c0_49 = arith.constant 0 : index
      %c0_50 = arith.constant 0 : index
      %c0_51 = arith.constant 0 : index
      %66 = vector.load %arg15[%c0_49, %c0_50, %c0_51] : memref<2x16x1xf32, #tpu.memory_space<vmem>>, vector<1x16x1xf32>
      %67 = vector.shape_cast %66 : vector<1x16x1xf32> to vector<16x1xf32>
      %68 = vector.broadcast %67 : vector<16x1xf32> to vector<16x128xf32>
      %69 = arith.subf %65, %68 : vector<16x128xf32>
      %c1_52 = arith.constant 1 : index
      %c0_53 = arith.constant 0 : index
      %c0_54 = arith.constant 0 : index
      %70 = vector.load %arg15[%c1_52, %c0_53, %c0_54] : memref<2x16x1xf32, #tpu.memory_space<vmem>>, vector<1x16x1xf32>
      %71 = vector.shape_cast %70 : vector<1x16x1xf32> to vector<16x1xf32>
      %72 = vector.broadcast %71 : vector<16x1xf32> to vector<16x128xf32>
      %73 = arith.mulf %69, %72 : vector<16x128xf32>
      %cst_55 = arith.constant 0.000000e+00 : f32
      %74 = vector.broadcast %cst_55 : f32 to vector<16x128xf32>
      %75 = arith.maximumf %73, %74 : vector<16x128xf32>
      %76 = arith.truncf %75 : vector<16x128xf32> to vector<16x128xbf16>
      %cst_56 = arith.constant dense<0.000000e+00> : vector<16x16xf32>
      %77 = tpu.matmul %76, %76, %cst_56 {dimension_numbers = #tpu.dot_dimension_numbers<[1], [1], [0], [0], [0, 0, 1, 0], [], []>} : vector<16x128xbf16>, vector<16x128xbf16>, vector<16x16xf32> -> vector<16x16xf32>
      %78 = arith.addf %48, %77 : vector<16x16xf32>
      %cst_57 = arith.constant dense<0.000000e+00> : vector<1x16xf32>
      %79 = tpu.matmul %3, %76, %cst_57 {dimension_numbers = #tpu.dot_dimension_numbers<[1], [1], [0], [0], [0, 0, 1, 0], [], []>} : vector<1x128xbf16>, vector<16x128xbf16>, vector<1x16xf32> -> vector<1x16xf32>
      %80 = arith.addf %50, %79 : vector<1x16xf32>
      %c0_58 = arith.constant 0 : index
      %c2 = arith.constant 2 : index
      %c0_59 = arith.constant 0 : index
      %c0_60 = arith.constant 0 : index
      %81 = vector.load %arg3[%c0_58, %c2, %c0_59, %c0_60] : memref<1x8x10x128xbf16, #tpu.memory_space<vmem>>, vector<1x1x10x128xbf16>
      %82 = vector.shape_cast %81 : vector<1x1x10x128xbf16> to vector<10x128xbf16>
      %cst_61 = arith.constant dense<0.000000e+00> : vector<16x128xf32>
      %83 = tpu.matmul %0, %82, %cst_61 {dimension_numbers = #tpu.dot_dimension_numbers<[1], [0], [0], [1], [0, 0, 1, 1], [], []>} : vector<16x10xbf16>, vector<10x128xbf16>, vector<16x128xf32> -> vector<16x128xf32>
      %c0_62 = arith.constant 0 : index
      %c0_63 = arith.constant 0 : index
      %c0_64 = arith.constant 0 : index
      %84 = vector.load %arg14[%c0_62, %c0_63, %c0_64] : memref<2x16x1xf32, #tpu.memory_space<vmem>>, vector<1x16x1xf32>
      %85 = vector.shape_cast %84 : vector<1x16x1xf32> to vector<16x1xf32>
      %86 = vector.broadcast %85 : vector<16x1xf32> to vector<16x128xf32>
      %87 = arith.subf %83, %86 : vector<16x128xf32>
      %c1_65 = arith.constant 1 : index
      %c0_66 = arith.constant 0 : index
      %c0_67 = arith.constant 0 : index
      %88 = vector.load %arg14[%c1_65, %c0_66, %c0_67] : memref<2x16x1xf32, #tpu.memory_space<vmem>>, vector<1x16x1xf32>
      %89 = vector.shape_cast %88 : vector<1x16x1xf32> to vector<16x1xf32>
      %90 = vector.broadcast %89 : vector<16x1xf32> to vector<16x128xf32>
      %91 = arith.mulf %87, %90 : vector<16x128xf32>
      %cst_68 = arith.constant 0.000000e+00 : f32
      %92 = vector.broadcast %cst_68 : f32 to vector<16x128xf32>
      %93 = arith.maximumf %91, %92 : vector<16x128xf32>
      %94 = arith.truncf %93 : vector<16x128xf32> to vector<16x128xbf16>
      %cst_69 = arith.constant dense<0.000000e+00> : vector<16x128xf32>
      %95 = tpu.matmul %1, %94, %cst_69 {dimension_numbers = #tpu.dot_dimension_numbers<[1], [0], [0], [1], [0, 0, 1, 1], [], []>} : vector<16x16xbf16>, vector<16x128xbf16>, vector<16x128xf32> -> vector<16x128xf32>
      %c0_70 = arith.constant 0 : index
      %c0_71 = arith.constant 0 : index
      %c0_72 = arith.constant 0 : index
      %96 = vector.load %arg15[%c0_70, %c0_71, %c0_72] : memref<2x16x1xf32, #tpu.memory_space<vmem>>, vector<1x16x1xf32>
      %97 = vector.shape_cast %96 : vector<1x16x1xf32> to vector<16x1xf32>
      %98 = vector.broadcast %97 : vector<16x1xf32> to vector<16x128xf32>
      %99 = arith.subf %95, %98 : vector<16x128xf32>
      %c1_73 = arith.constant 1 : index
      %c0_74 = arith.constant 0 : index
      %c0_75 = arith.constant 0 : index
      %100 = vector.load %arg15[%c1_73, %c0_74, %c0_75] : memref<2x16x1xf32, #tpu.memory_space<vmem>>, vector<1x16x1xf32>
      %101 = vector.shape_cast %100 : vector<1x16x1xf32> to vector<16x1xf32>
      %102 = vector.broadcast %101 : vector<16x1xf32> to vector<16x128xf32>
      %103 = arith.mulf %99, %102 : vector<16x128xf32>
      %cst_76 = arith.constant 0.000000e+00 : f32
      %104 = vector.broadcast %cst_76 : f32 to vector<16x128xf32>
      %105 = arith.maximumf %103, %104 : vector<16x128xf32>
      %106 = arith.truncf %105 : vector<16x128xf32> to vector<16x128xbf16>
      %cst_77 = arith.constant dense<0.000000e+00> : vector<16x16xf32>
      %107 = tpu.matmul %106, %106, %cst_77 {dimension_numbers = #tpu.dot_dimension_numbers<[1], [1], [0], [0], [0, 0, 1, 0], [], []>} : vector<16x128xbf16>, vector<16x128xbf16>, vector<16x16xf32> -> vector<16x16xf32>
      %108 = arith.addf %78, %107 : vector<16x16xf32>
      %cst_78 = arith.constant dense<0.000000e+00> : vector<1x16xf32>
      %109 = tpu.matmul %3, %106, %cst_78 {dimension_numbers = #tpu.dot_dimension_numbers<[1], [1], [0], [0], [0, 0, 1, 0], [], []>} : vector<1x128xbf16>, vector<16x128xbf16>, vector<1x16xf32> -> vector<1x16xf32>
      %110 = arith.addf %80, %109 : vector<1x16xf32>
      %c0_79 = arith.constant 0 : index
      %c3 = arith.constant 3 : index
      %c0_80 = arith.constant 0 : index
      %c0_81 = arith.constant 0 : index
      %111 = vector.load %arg3[%c0_79, %c3, %c0_80, %c0_81] : memref<1x8x10x128xbf16, #tpu.memory_space<vmem>>, vector<1x1x10x128xbf16>
      %112 = vector.shape_cast %111 : vector<1x1x10x128xbf16> to vector<10x128xbf16>
      %cst_82 = arith.constant dense<0.000000e+00> : vector<16x128xf32>
      %113 = tpu.matmul %0, %112, %cst_82 {dimension_numbers = #tpu.dot_dimension_numbers<[1], [0], [0], [1], [0, 0, 1, 1], [], []>} : vector<16x10xbf16>, vector<10x128xbf16>, vector<16x128xf32> -> vector<16x128xf32>
      %c0_83 = arith.constant 0 : index
      %c0_84 = arith.constant 0 : index
      %c0_85 = arith.constant 0 : index
      %114 = vector.load %arg14[%c0_83, %c0_84, %c0_85] : memref<2x16x1xf32, #tpu.memory_space<vmem>>, vector<1x16x1xf32>
      %115 = vector.shape_cast %114 : vector<1x16x1xf32> to vector<16x1xf32>
      %116 = vector.broadcast %115 : vector<16x1xf32> to vector<16x128xf32>
      %117 = arith.subf %113, %116 : vector<16x128xf32>
      %c1_86 = arith.constant 1 : index
      %c0_87 = arith.constant 0 : index
      %c0_88 = arith.constant 0 : index
      %118 = vector.load %arg14[%c1_86, %c0_87, %c0_88] : memref<2x16x1xf32, #tpu.memory_space<vmem>>, vector<1x16x1xf32>
      %119 = vector.shape_cast %118 : vector<1x16x1xf32> to vector<16x1xf32>
      %120 = vector.broadcast %119 : vector<16x1xf32> to vector<16x128xf32>
      %121 = arith.mulf %117, %120 : vector<16x128xf32>
      %cst_89 = arith.constant 0.000000e+00 : f32
      %122 = vector.broadcast %cst_89 : f32 to vector<16x128xf32>
      %123 = arith.maximumf %121, %122 : vector<16x128xf32>
      %124 = arith.truncf %123 : vector<16x128xf32> to vector<16x128xbf16>
      %cst_90 = arith.constant dense<0.000000e+00> : vector<16x128xf32>
      %125 = tpu.matmul %1, %124, %cst_90 {dimension_numbers = #tpu.dot_dimension_numbers<[1], [0], [0], [1], [0, 0, 1, 1], [], []>} : vector<16x16xbf16>, vector<16x128xbf16>, vector<16x128xf32> -> vector<16x128xf32>
      %c0_91 = arith.constant 0 : index
      %c0_92 = arith.constant 0 : index
      %c0_93 = arith.constant 0 : index
      %126 = vector.load %arg15[%c0_91, %c0_92, %c0_93] : memref<2x16x1xf32, #tpu.memory_space<vmem>>, vector<1x16x1xf32>
      %127 = vector.shape_cast %126 : vector<1x16x1xf32> to vector<16x1xf32>
      %128 = vector.broadcast %127 : vector<16x1xf32> to vector<16x128xf32>
      %129 = arith.subf %125, %128 : vector<16x128xf32>
      %c1_94 = arith.constant 1 : index
      %c0_95 = arith.constant 0 : index
      %c0_96 = arith.constant 0 : index
      %130 = vector.load %arg15[%c1_94, %c0_95, %c0_96] : memref<2x16x1xf32, #tpu.memory_space<vmem>>, vector<1x16x1xf32>
      %131 = vector.shape_cast %130 : vector<1x16x1xf32> to vector<16x1xf32>
      %132 = vector.broadcast %131 : vector<16x1xf32> to vector<16x128xf32>
      %133 = arith.mulf %129, %132 : vector<16x128xf32>
      %cst_97 = arith.constant 0.000000e+00 : f32
      %134 = vector.broadcast %cst_97 : f32 to vector<16x128xf32>
      %135 = arith.maximumf %133, %134 : vector<16x128xf32>
      %136 = arith.truncf %135 : vector<16x128xf32> to vector<16x128xbf16>
      %cst_98 = arith.constant dense<0.000000e+00> : vector<16x16xf32>
      %137 = tpu.matmul %136, %136, %cst_98 {dimension_numbers = #tpu.dot_dimension_numbers<[1], [1], [0], [0], [0, 0, 1, 0], [], []>} : vector<16x128xbf16>, vector<16x128xbf16>, vector<16x16xf32> -> vector<16x16xf32>
      %138 = arith.addf %108, %137 : vector<16x16xf32>
      %cst_99 = arith.constant dense<0.000000e+00> : vector<1x16xf32>
      %139 = tpu.matmul %3, %136, %cst_99 {dimension_numbers = #tpu.dot_dimension_numbers<[1], [1], [0], [0], [0, 0, 1, 0], [], []>} : vector<1x128xbf16>, vector<16x128xbf16>, vector<1x16xf32> -> vector<1x16xf32>
      %140 = arith.addf %110, %139 : vector<1x16xf32>
      %c0_100 = arith.constant 0 : index
      %c4 = arith.constant 4 : index
      %c0_101 = arith.constant 0 : index
      %c0_102 = arith.constant 0 : index
      %141 = vector.load %arg3[%c0_100, %c4, %c0_101, %c0_102] : memref<1x8x10x128xbf16, #tpu.memory_space<vmem>>, vector<1x1x10x128xbf16>
      %142 = vector.shape_cast %141 : vector<1x1x10x128xbf16> to vector<10x128xbf16>
      %cst_103 = arith.constant dense<0.000000e+00> : vector<16x128xf32>
      %143 = tpu.matmul %0, %142, %cst_103 {dimension_numbers = #tpu.dot_dimension_numbers<[1], [0], [0], [1], [0, 0, 1, 1], [], []>} : vector<16x10xbf16>, vector<10x128xbf16>, vector<16x128xf32> -> vector<16x128xf32>
      %c0_104 = arith.constant 0 : index
      %c0_105 = arith.constant 0 : index
      %c0_106 = arith.constant 0 : index
      %144 = vector.load %arg14[%c0_104, %c0_105, %c0_106] : memref<2x16x1xf32, #tpu.memory_space<vmem>>, vector<1x16x1xf32>
      %145 = vector.shape_cast %144 : vector<1x16x1xf32> to vector<16x1xf32>
      %146 = vector.broadcast %145 : vector<16x1xf32> to vector<16x128xf32>
      %147 = arith.subf %143, %146 : vector<16x128xf32>
      %c1_107 = arith.constant 1 : index
      %c0_108 = arith.constant 0 : index
      %c0_109 = arith.constant 0 : index
      %148 = vector.load %arg14[%c1_107, %c0_108, %c0_109] : memref<2x16x1xf32, #tpu.memory_space<vmem>>, vector<1x16x1xf32>
      %149 = vector.shape_cast %148 : vector<1x16x1xf32> to vector<16x1xf32>
      %150 = vector.broadcast %149 : vector<16x1xf32> to vector<16x128xf32>
      %151 = arith.mulf %147, %150 : vector<16x128xf32>
      %cst_110 = arith.constant 0.000000e+00 : f32
      %152 = vector.broadcast %cst_110 : f32 to vector<16x128xf32>
      %153 = arith.maximumf %151, %152 : vector<16x128xf32>
      %154 = arith.truncf %153 : vector<16x128xf32> to vector<16x128xbf16>
      %cst_111 = arith.constant dense<0.000000e+00> : vector<16x128xf32>
      %155 = tpu.matmul %1, %154, %cst_111 {dimension_numbers = #tpu.dot_dimension_numbers<[1], [0], [0], [1], [0, 0, 1, 1], [], []>} : vector<16x16xbf16>, vector<16x128xbf16>, vector<16x128xf32> -> vector<16x128xf32>
      %c0_112 = arith.constant 0 : index
      %c0_113 = arith.constant 0 : index
      %c0_114 = arith.constant 0 : index
      %156 = vector.load %arg15[%c0_112, %c0_113, %c0_114] : memref<2x16x1xf32, #tpu.memory_space<vmem>>, vector<1x16x1xf32>
      %157 = vector.shape_cast %156 : vector<1x16x1xf32> to vector<16x1xf32>
      %158 = vector.broadcast %157 : vector<16x1xf32> to vector<16x128xf32>
      %159 = arith.subf %155, %158 : vector<16x128xf32>
      %c1_115 = arith.constant 1 : index
      %c0_116 = arith.constant 0 : index
      %c0_117 = arith.constant 0 : index
      %160 = vector.load %arg15[%c1_115, %c0_116, %c0_117] : memref<2x16x1xf32, #tpu.memory_space<vmem>>, vector<1x16x1xf32>
      %161 = vector.shape_cast %160 : vector<1x16x1xf32> to vector<16x1xf32>
      %162 = vector.broadcast %161 : vector<16x1xf32> to vector<16x128xf32>
      %163 = arith.mulf %159, %162 : vector<16x128xf32>
      %cst_118 = arith.constant 0.000000e+00 : f32
      %164 = vector.broadcast %cst_118 : f32 to vector<16x128xf32>
      %165 = arith.maximumf %163, %164 : vector<16x128xf32>
      %166 = arith.truncf %165 : vector<16x128xf32> to vector<16x128xbf16>
      %cst_119 = arith.constant dense<0.000000e+00> : vector<16x16xf32>
      %167 = tpu.matmul %166, %166, %cst_119 {dimension_numbers = #tpu.dot_dimension_numbers<[1], [1], [0], [0], [0, 0, 1, 0], [], []>} : vector<16x128xbf16>, vector<16x128xbf16>, vector<16x16xf32> -> vector<16x16xf32>
      %168 = arith.addf %138, %167 : vector<16x16xf32>
      %cst_120 = arith.constant dense<0.000000e+00> : vector<1x16xf32>
      %169 = tpu.matmul %3, %166, %cst_120 {dimension_numbers = #tpu.dot_dimension_numbers<[1], [1], [0], [0], [0, 0, 1, 0], [], []>} : vector<1x128xbf16>, vector<16x128xbf16>, vector<1x16xf32> -> vector<1x16xf32>
      %170 = arith.addf %140, %169 : vector<1x16xf32>
      %c0_121 = arith.constant 0 : index
      %c5 = arith.constant 5 : index
      %c0_122 = arith.constant 0 : index
      %c0_123 = arith.constant 0 : index
      %171 = vector.load %arg3[%c0_121, %c5, %c0_122, %c0_123] : memref<1x8x10x128xbf16, #tpu.memory_space<vmem>>, vector<1x1x10x128xbf16>
      %172 = vector.shape_cast %171 : vector<1x1x10x128xbf16> to vector<10x128xbf16>
      %cst_124 = arith.constant dense<0.000000e+00> : vector<16x128xf32>
      %173 = tpu.matmul %0, %172, %cst_124 {dimension_numbers = #tpu.dot_dimension_numbers<[1], [0], [0], [1], [0, 0, 1, 1], [], []>} : vector<16x10xbf16>, vector<10x128xbf16>, vector<16x128xf32> -> vector<16x128xf32>
      %c0_125 = arith.constant 0 : index
      %c0_126 = arith.constant 0 : index
      %c0_127 = arith.constant 0 : index
      %174 = vector.load %arg14[%c0_125, %c0_126, %c0_127] : memref<2x16x1xf32, #tpu.memory_space<vmem>>, vector<1x16x1xf32>
      %175 = vector.shape_cast %174 : vector<1x16x1xf32> to vector<16x1xf32>
      %176 = vector.broadcast %175 : vector<16x1xf32> to vector<16x128xf32>
      %177 = arith.subf %173, %176 : vector<16x128xf32>
      %c1_128 = arith.constant 1 : index
      %c0_129 = arith.constant 0 : index
      %c0_130 = arith.constant 0 : index
      %178 = vector.load %arg14[%c1_128, %c0_129, %c0_130] : memref<2x16x1xf32, #tpu.memory_space<vmem>>, vector<1x16x1xf32>
      %179 = vector.shape_cast %178 : vector<1x16x1xf32> to vector<16x1xf32>
      %180 = vector.broadcast %179 : vector<16x1xf32> to vector<16x128xf32>
      %181 = arith.mulf %177, %180 : vector<16x128xf32>
      %cst_131 = arith.constant 0.000000e+00 : f32
      %182 = vector.broadcast %cst_131 : f32 to vector<16x128xf32>
      %183 = arith.maximumf %181, %182 : vector<16x128xf32>
      %184 = arith.truncf %183 : vector<16x128xf32> to vector<16x128xbf16>
      %cst_132 = arith.constant dense<0.000000e+00> : vector<16x128xf32>
      %185 = tpu.matmul %1, %184, %cst_132 {dimension_numbers = #tpu.dot_dimension_numbers<[1], [0], [0], [1], [0, 0, 1, 1], [], []>} : vector<16x16xbf16>, vector<16x128xbf16>, vector<16x128xf32> -> vector<16x128xf32>
      %c0_133 = arith.constant 0 : index
      %c0_134 = arith.constant 0 : index
      %c0_135 = arith.constant 0 : index
      %186 = vector.load %arg15[%c0_133, %c0_134, %c0_135] : memref<2x16x1xf32, #tpu.memory_space<vmem>>, vector<1x16x1xf32>
      %187 = vector.shape_cast %186 : vector<1x16x1xf32> to vector<16x1xf32>
      %188 = vector.broadcast %187 : vector<16x1xf32> to vector<16x128xf32>
      %189 = arith.subf %185, %188 : vector<16x128xf32>
      %c1_136 = arith.constant 1 : index
      %c0_137 = arith.constant 0 : index
      %c0_138 = arith.constant 0 : index
      %190 = vector.load %arg15[%c1_136, %c0_137, %c0_138] : memref<2x16x1xf32, #tpu.memory_space<vmem>>, vector<1x16x1xf32>
      %191 = vector.shape_cast %190 : vector<1x16x1xf32> to vector<16x1xf32>
      %192 = vector.broadcast %191 : vector<16x1xf32> to vector<16x128xf32>
      %193 = arith.mulf %189, %192 : vector<16x128xf32>
      %cst_139 = arith.constant 0.000000e+00 : f32
      %194 = vector.broadcast %cst_139 : f32 to vector<16x128xf32>
      %195 = arith.maximumf %193, %194 : vector<16x128xf32>
      %196 = arith.truncf %195 : vector<16x128xf32> to vector<16x128xbf16>
      %cst_140 = arith.constant dense<0.000000e+00> : vector<16x16xf32>
      %197 = tpu.matmul %196, %196, %cst_140 {dimension_numbers = #tpu.dot_dimension_numbers<[1], [1], [0], [0], [0, 0, 1, 0], [], []>} : vector<16x128xbf16>, vector<16x128xbf16>, vector<16x16xf32> -> vector<16x16xf32>
      %198 = arith.addf %168, %197 : vector<16x16xf32>
      %cst_141 = arith.constant dense<0.000000e+00> : vector<1x16xf32>
      %199 = tpu.matmul %3, %196, %cst_141 {dimension_numbers = #tpu.dot_dimension_numbers<[1], [1], [0], [0], [0, 0, 1, 0], [], []>} : vector<1x128xbf16>, vector<16x128xbf16>, vector<1x16xf32> -> vector<1x16xf32>
      %200 = arith.addf %170, %199 : vector<1x16xf32>
      %c0_142 = arith.constant 0 : index
      %c6 = arith.constant 6 : index
      %c0_143 = arith.constant 0 : index
      %c0_144 = arith.constant 0 : index
      %201 = vector.load %arg3[%c0_142, %c6, %c0_143, %c0_144] : memref<1x8x10x128xbf16, #tpu.memory_space<vmem>>, vector<1x1x10x128xbf16>
      %202 = vector.shape_cast %201 : vector<1x1x10x128xbf16> to vector<10x128xbf16>
      %cst_145 = arith.constant dense<0.000000e+00> : vector<16x128xf32>
      %203 = tpu.matmul %0, %202, %cst_145 {dimension_numbers = #tpu.dot_dimension_numbers<[1], [0], [0], [1], [0, 0, 1, 1], [], []>} : vector<16x10xbf16>, vector<10x128xbf16>, vector<16x128xf32> -> vector<16x128xf32>
      %c0_146 = arith.constant 0 : index
      %c0_147 = arith.constant 0 : index
      %c0_148 = arith.constant 0 : index
      %204 = vector.load %arg14[%c0_146, %c0_147, %c0_148] : memref<2x16x1xf32, #tpu.memory_space<vmem>>, vector<1x16x1xf32>
      %205 = vector.shape_cast %204 : vector<1x16x1xf32> to vector<16x1xf32>
      %206 = vector.broadcast %205 : vector<16x1xf32> to vector<16x128xf32>
      %207 = arith.subf %203, %206 : vector<16x128xf32>
      %c1_149 = arith.constant 1 : index
      %c0_150 = arith.constant 0 : index
      %c0_151 = arith.constant 0 : index
      %208 = vector.load %arg14[%c1_149, %c0_150, %c0_151] : memref<2x16x1xf32, #tpu.memory_space<vmem>>, vector<1x16x1xf32>
      %209 = vector.shape_cast %208 : vector<1x16x1xf32> to vector<16x1xf32>
      %210 = vector.broadcast %209 : vector<16x1xf32> to vector<16x128xf32>
      %211 = arith.mulf %207, %210 : vector<16x128xf32>
      %cst_152 = arith.constant 0.000000e+00 : f32
      %212 = vector.broadcast %cst_152 : f32 to vector<16x128xf32>
      %213 = arith.maximumf %211, %212 : vector<16x128xf32>
      %214 = arith.truncf %213 : vector<16x128xf32> to vector<16x128xbf16>
      %cst_153 = arith.constant dense<0.000000e+00> : vector<16x128xf32>
      %215 = tpu.matmul %1, %214, %cst_153 {dimension_numbers = #tpu.dot_dimension_numbers<[1], [0], [0], [1], [0, 0, 1, 1], [], []>} : vector<16x16xbf16>, vector<16x128xbf16>, vector<16x128xf32> -> vector<16x128xf32>
      %c0_154 = arith.constant 0 : index
      %c0_155 = arith.constant 0 : index
      %c0_156 = arith.constant 0 : index
      %216 = vector.load %arg15[%c0_154, %c0_155, %c0_156] : memref<2x16x1xf32, #tpu.memory_space<vmem>>, vector<1x16x1xf32>
      %217 = vector.shape_cast %216 : vector<1x16x1xf32> to vector<16x1xf32>
      %218 = vector.broadcast %217 : vector<16x1xf32> to vector<16x128xf32>
      %219 = arith.subf %215, %218 : vector<16x128xf32>
      %c1_157 = arith.constant 1 : index
      %c0_158 = arith.constant 0 : index
      %c0_159 = arith.constant 0 : index
      %220 = vector.load %arg15[%c1_157, %c0_158, %c0_159] : memref<2x16x1xf32, #tpu.memory_space<vmem>>, vector<1x16x1xf32>
      %221 = vector.shape_cast %220 : vector<1x16x1xf32> to vector<16x1xf32>
      %222 = vector.broadcast %221 : vector<16x1xf32> to vector<16x128xf32>
      %223 = arith.mulf %219, %222 : vector<16x128xf32>
      %cst_160 = arith.constant 0.000000e+00 : f32
      %224 = vector.broadcast %cst_160 : f32 to vector<16x128xf32>
      %225 = arith.maximumf %223, %224 : vector<16x128xf32>
      %226 = arith.truncf %225 : vector<16x128xf32> to vector<16x128xbf16>
      %cst_161 = arith.constant dense<0.000000e+00> : vector<16x16xf32>
      %227 = tpu.matmul %226, %226, %cst_161 {dimension_numbers = #tpu.dot_dimension_numbers<[1], [1], [0], [0], [0, 0, 1, 0], [], []>} : vector<16x128xbf16>, vector<16x128xbf16>, vector<16x16xf32> -> vector<16x16xf32>
      %228 = arith.addf %198, %227 : vector<16x16xf32>
      %cst_162 = arith.constant dense<0.000000e+00> : vector<1x16xf32>
      %229 = tpu.matmul %3, %226, %cst_162 {dimension_numbers = #tpu.dot_dimension_numbers<[1], [1], [0], [0], [0, 0, 1, 0], [], []>} : vector<1x128xbf16>, vector<16x128xbf16>, vector<1x16xf32> -> vector<1x16xf32>
      %230 = arith.addf %200, %229 : vector<1x16xf32>
      %c0_163 = arith.constant 0 : index
      %c7 = arith.constant 7 : index
      %c0_164 = arith.constant 0 : index
      %c0_165 = arith.constant 0 : index
      %231 = vector.load %arg3[%c0_163, %c7, %c0_164, %c0_165] : memref<1x8x10x128xbf16, #tpu.memory_space<vmem>>, vector<1x1x10x128xbf16>
      %232 = vector.shape_cast %231 : vector<1x1x10x128xbf16> to vector<10x128xbf16>
      %cst_166 = arith.constant dense<0.000000e+00> : vector<16x128xf32>
      %233 = tpu.matmul %0, %232, %cst_166 {dimension_numbers = #tpu.dot_dimension_numbers<[1], [0], [0], [1], [0, 0, 1, 1], [], []>} : vector<16x10xbf16>, vector<10x128xbf16>, vector<16x128xf32> -> vector<16x128xf32>
      %c0_167 = arith.constant 0 : index
      %c0_168 = arith.constant 0 : index
      %c0_169 = arith.constant 0 : index
      %234 = vector.load %arg14[%c0_167, %c0_168, %c0_169] : memref<2x16x1xf32, #tpu.memory_space<vmem>>, vector<1x16x1xf32>
      %235 = vector.shape_cast %234 : vector<1x16x1xf32> to vector<16x1xf32>
      %236 = vector.broadcast %235 : vector<16x1xf32> to vector<16x128xf32>
      %237 = arith.subf %233, %236 : vector<16x128xf32>
      %c1_170 = arith.constant 1 : index
      %c0_171 = arith.constant 0 : index
      %c0_172 = arith.constant 0 : index
      %238 = vector.load %arg14[%c1_170, %c0_171, %c0_172] : memref<2x16x1xf32, #tpu.memory_space<vmem>>, vector<1x16x1xf32>
      %239 = vector.shape_cast %238 : vector<1x16x1xf32> to vector<16x1xf32>
      %240 = vector.broadcast %239 : vector<16x1xf32> to vector<16x128xf32>
      %241 = arith.mulf %237, %240 : vector<16x128xf32>
      %cst_173 = arith.constant 0.000000e+00 : f32
      %242 = vector.broadcast %cst_173 : f32 to vector<16x128xf32>
      %243 = arith.maximumf %241, %242 : vector<16x128xf32>
      %244 = arith.truncf %243 : vector<16x128xf32> to vector<16x128xbf16>
      %cst_174 = arith.constant dense<0.000000e+00> : vector<16x128xf32>
      %245 = tpu.matmul %1, %244, %cst_174 {dimension_numbers = #tpu.dot_dimension_numbers<[1], [0], [0], [1], [0, 0, 1, 1], [], []>} : vector<16x16xbf16>, vector<16x128xbf16>, vector<16x128xf32> -> vector<16x128xf32>
      %c0_175 = arith.constant 0 : index
      %c0_176 = arith.constant 0 : index
      %c0_177 = arith.constant 0 : index
      %246 = vector.load %arg15[%c0_175, %c0_176, %c0_177] : memref<2x16x1xf32, #tpu.memory_space<vmem>>, vector<1x16x1xf32>
      %247 = vector.shape_cast %246 : vector<1x16x1xf32> to vector<16x1xf32>
      %248 = vector.broadcast %247 : vector<16x1xf32> to vector<16x128xf32>
      %249 = arith.subf %245, %248 : vector<16x128xf32>
      %c1_178 = arith.constant 1 : index
      %c0_179 = arith.constant 0 : index
      %c0_180 = arith.constant 0 : index
      %250 = vector.load %arg15[%c1_178, %c0_179, %c0_180] : memref<2x16x1xf32, #tpu.memory_space<vmem>>, vector<1x16x1xf32>
      %251 = vector.shape_cast %250 : vector<1x16x1xf32> to vector<16x1xf32>
      %252 = vector.broadcast %251 : vector<16x1xf32> to vector<16x128xf32>
      %253 = arith.mulf %249, %252 : vector<16x128xf32>
      %cst_181 = arith.constant 0.000000e+00 : f32
      %254 = vector.broadcast %cst_181 : f32 to vector<16x128xf32>
      %255 = arith.maximumf %253, %254 : vector<16x128xf32>
      %256 = arith.truncf %255 : vector<16x128xf32> to vector<16x128xbf16>
      %cst_182 = arith.constant dense<0.000000e+00> : vector<16x16xf32>
      %257 = tpu.matmul %256, %256, %cst_182 {dimension_numbers = #tpu.dot_dimension_numbers<[1], [1], [0], [0], [0, 0, 1, 0], [], []>} : vector<16x128xbf16>, vector<16x128xbf16>, vector<16x16xf32> -> vector<16x16xf32>
      %258 = arith.addf %228, %257 : vector<16x16xf32>
      %cst_183 = arith.constant dense<0.000000e+00> : vector<1x16xf32>
      %259 = tpu.matmul %3, %256, %cst_183 {dimension_numbers = #tpu.dot_dimension_numbers<[1], [1], [0], [0], [0, 0, 1, 0], [], []>} : vector<1x128xbf16>, vector<16x128xbf16>, vector<1x16xf32> -> vector<1x16xf32>
      %260 = arith.addf %230, %259 : vector<1x16xf32>
      %c0_184 = arith.constant 0 : index
      %c0_185 = arith.constant 0 : index
      %261 = vector.load %arg10[%c0_184, %c0_185] : memref<16x16xf32, #tpu.memory_space<vmem>>, vector<16x16xf32>
      tpu.vector_store %arg10[%c0_184, %c0_185], %258 {strides = array<i32>} : memref<16x16xf32, #tpu.memory_space<vmem>>, vector<16x16xf32>,
      %c0_186 = arith.constant 0 : index
      %c0_187 = arith.constant 0 : index
      %262 = vector.load %arg13[%c0_186, %c0_187] : memref<1x16xf32, #tpu.memory_space<vmem>>, vector<1x16xf32>
      tpu.vector_store %arg13[%c0_186, %c0_187], %260 {strides = array<i32>} : memref<1x16xf32, #tpu.memory_space<vmem>>, vector<1x16xf32>,
      %c1_i32_188 = arith.constant 1 : i32
      %263 = arith.cmpi eq, %arg2, %c1_i32_188 : i32
      %264 = arith.extui %263 : i1 to i32
      %c0_i32_189 = arith.constant 0 : i32
      %265 = arith.cmpi ne, %264, %c0_i32_189 : i32
      scf.if %265 {
        %266 = arith.extf %2 : vector<32x16xbf16> to vector<32x16xf32>
        %c0_190 = arith.constant 0 : index
        %c0_191 = arith.constant 0 : index
        %267 = vector.load %arg13[%c0_190, %c0_191] : memref<1x16xf32, #tpu.memory_space<vmem>>, vector<1x16xf32>
        %268 = vector.broadcast %267 : vector<1x16xf32> to vector<32x16xf32>
        %269 = arith.mulf %266, %268 : vector<32x16xf32>
        %cst_192 = arith.constant dense<0.000000e+00> : vector<32xf32>
        %270 = vector.multi_reduction <add>, %269, %cst_192 [1] : vector<32x16xf32> to vector<32xf32>
        %271 = vector.shape_cast %270 : vector<32xf32> to vector<32x1xf32>
        %cst_193 = arith.constant 4.8828125E-4 : f32
        %272 = vector.broadcast %cst_193 : f32 to vector<32x1xf32>
        %273 = arith.mulf %271, %272 : vector<32x1xf32>
        %c0_194 = arith.constant 0 : index
        %c0_195 = arith.constant 0 : index
        %274 = vector.load %arg10[%c0_194, %c0_195] : memref<16x16xf32, #tpu.memory_space<vmem>>, vector<16x16xf32>
        %cst_196 = arith.constant dense<0.000000e+00> : vector<32x16xf32>
        %275 = tpu.matmul %266, %274, %cst_196 {dimension_numbers = #tpu.dot_dimension_numbers<[1], [0], [0], [1], [0, 0, 1, 1], [], []>} : vector<32x16xf32>, vector<16x16xf32>, vector<32x16xf32> -> vector<32x16xf32>
        %276 = arith.mulf %275, %266 : vector<32x16xf32>
        %cst_197 = arith.constant dense<0.000000e+00> : vector<32xf32>
        %277 = vector.multi_reduction <add>, %276, %cst_197 [1] : vector<32x16xf32> to vector<32xf32>
        %278 = vector.shape_cast %277 : vector<32xf32> to vector<32x1xf32>
        %cst_198 = arith.constant 4.8828125E-4 : f32
        %279 = vector.broadcast %cst_198 : f32 to vector<32x1xf32>
        %280 = arith.mulf %278, %279 : vector<32x1xf32>
        %281 = arith.mulf %273, %273 : vector<32x1xf32>
        %282 = arith.subf %280, %281 : vector<32x1xf32>
        %cst_199 = arith.constant 0.000000e+00 : f32
        %283 = vector.broadcast %cst_199 : f32 to vector<32x1xf32>
        %284 = arith.maximumf %282, %283 : vector<32x1xf32>
        %c0_200 = arith.constant 0 : index
        %c0_201 = arith.constant 0 : index
        %c0_202 = arith.constant 0 : index
        %285 = vector.load %arg16[%c0_200, %c0_201, %c0_202] : memref<2x32x1xf32, #tpu.memory_space<vmem>>, vector<1x32x1xf32>
        %286 = vector.shape_cast %285 : vector<1x32x1xf32> to vector<32x1xf32>
        %287 = vector.shape_cast %273 : vector<32x1xf32> to vector<1x32x1xf32>
        tpu.vector_store %arg16[%c0_200, %c0_201, %c0_202], %287 {strides = array<i32>} : memref<2x32x1xf32, #tpu.memory_space<vmem>>, vector<1x32x1xf32>,
        %cst_203 = arith.constant 9.99999974E-6 : f32
        %288 = vector.broadcast %cst_203 : f32 to vector<32x1xf32>
        %289 = arith.addf %284, %288 : vector<32x1xf32>
        %290 = math.rsqrt %289 : vector<32x1xf32>
        %c1_204 = arith.constant 1 : index
        %c0_205 = arith.constant 0 : index
        %c0_206 = arith.constant 0 : index
        %291 = vector.load %arg16[%c1_204, %c0_205, %c0_206] : memref<2x32x1xf32, #tpu.memory_space<vmem>>, vector<1x32x1xf32>
        %292 = vector.shape_cast %291 : vector<1x32x1xf32> to vector<32x1xf32>
        %293 = vector.shape_cast %290 : vector<32x1xf32> to vector<1x32x1xf32>
        tpu.vector_store %arg16[%c1_204, %c0_205, %c0_206], %293 {strides = array<i32>} : memref<2x32x1xf32, #tpu.memory_space<vmem>>, vector<1x32x1xf32>,
      } else {
      }
    } else {
    }
    %c3_i32 = arith.constant 3 : i32
    %13 = arith.cmpi eq, %arg1, %c3_i32 : i32
    %14 = arith.extui %13 : i1 to i32
    %c0_i32_8 = arith.constant 0 : i32
    %15 = arith.cmpi ne, %14, %c0_i32_8 : i32
    scf.if %15 {
      %c0_9 = arith.constant 0 : index
      %c0_10 = arith.constant 0 : index
      %c0_11 = arith.constant 0 : index
      %c0_12 = arith.constant 0 : index
      %16 = vector.load %arg3[%c0_9, %c0_10, %c0_11, %c0_12] : memref<1x8x10x128xbf16, #tpu.memory_space<vmem>>, vector<1x1x10x128xbf16>
      %17 = vector.shape_cast %16 : vector<1x1x10x128xbf16> to vector<10x128xbf16>
      %cst_13 = arith.constant dense<0.000000e+00> : vector<16x128xf32>
      %18 = tpu.matmul %0, %17, %cst_13 {dimension_numbers = #tpu.dot_dimension_numbers<[1], [0], [0], [1], [0, 0, 1, 1], [], []>} : vector<16x10xbf16>, vector<10x128xbf16>, vector<16x128xf32> -> vector<16x128xf32>
      %c0_14 = arith.constant 0 : index
      %c0_15 = arith.constant 0 : index
      %c0_16 = arith.constant 0 : index
      %19 = vector.load %arg14[%c0_14, %c0_15, %c0_16] : memref<2x16x1xf32, #tpu.memory_space<vmem>>, vector<1x16x1xf32>
      %20 = vector.shape_cast %19 : vector<1x16x1xf32> to vector<16x1xf32>
      %21 = vector.broadcast %20 : vector<16x1xf32> to vector<16x128xf32>
      %22 = arith.subf %18, %21 : vector<16x128xf32>
      %c1 = arith.constant 1 : index
      %c0_17 = arith.constant 0 : index
      %c0_18 = arith.constant 0 : index
      %23 = vector.load %arg14[%c1, %c0_17, %c0_18] : memref<2x16x1xf32, #tpu.memory_space<vmem>>, vector<1x16x1xf32>
      %24 = vector.shape_cast %23 : vector<1x16x1xf32> to vector<16x1xf32>
      %25 = vector.broadcast %24 : vector<16x1xf32> to vector<16x128xf32>
      %26 = arith.mulf %22, %25 : vector<16x128xf32>
      %cst_19 = arith.constant 0.000000e+00 : f32
      %27 = vector.broadcast %cst_19 : f32 to vector<16x128xf32>
      %28 = arith.maximumf %26, %27 : vector<16x128xf32>
      %29 = arith.truncf %28 : vector<16x128xf32> to vector<16x128xbf16>
      %cst_20 = arith.constant dense<0.000000e+00> : vector<16x128xf32>
      %30 = tpu.matmul %1, %29, %cst_20 {dimension_numbers = #tpu.dot_dimension_numbers<[1], [0], [0], [1], [0, 0, 1, 1], [], []>} : vector<16x16xbf16>, vector<16x128xbf16>, vector<16x128xf32> -> vector<16x128xf32>
      %c0_21 = arith.constant 0 : index
      %c0_22 = arith.constant 0 : index
      %c0_23 = arith.constant 0 : index
      %31 = vector.load %arg15[%c0_21, %c0_22, %c0_23] : memref<2x16x1xf32, #tpu.memory_space<vmem>>, vector<1x16x1xf32>
      %32 = vector.shape_cast %31 : vector<1x16x1xf32> to vector<16x1xf32>
      %33 = vector.broadcast %32 : vector<16x1xf32> to vector<16x128xf32>
      %34 = arith.subf %30, %33 : vector<16x128xf32>
      %c1_24 = arith.constant 1 : index
      %c0_25 = arith.constant 0 : index
      %c0_26 = arith.constant 0 : index
      %35 = vector.load %arg15[%c1_24, %c0_25, %c0_26] : memref<2x16x1xf32, #tpu.memory_space<vmem>>, vector<1x16x1xf32>
      %36 = vector.shape_cast %35 : vector<1x16x1xf32> to vector<16x1xf32>
      %37 = vector.broadcast %36 : vector<16x1xf32> to vector<16x128xf32>
      %38 = arith.mulf %34, %37 : vector<16x128xf32>
      %cst_27 = arith.constant 0.000000e+00 : f32
      %39 = vector.broadcast %cst_27 : f32 to vector<16x128xf32>
      %40 = arith.maximumf %38, %39 : vector<16x128xf32>
      %41 = arith.truncf %40 : vector<16x128xf32> to vector<16x128xbf16>
      %cst_28 = arith.constant dense<0.000000e+00> : vector<32x128xf32>
      %42 = tpu.matmul %2, %41, %cst_28 {dimension_numbers = #tpu.dot_dimension_numbers<[1], [0], [0], [1], [0, 0, 1, 1], [], []>} : vector<32x16xbf16>, vector<16x128xbf16>, vector<32x128xf32> -> vector<32x128xf32>
      %c0_29 = arith.constant 0 : index
      %c0_30 = arith.constant 0 : index
      %c0_31 = arith.constant 0 : index
      %43 = vector.load %arg16[%c0_29, %c0_30, %c0_31] : memref<2x32x1xf32, #tpu.memory_space<vmem>>, vector<1x32x1xf32>
      %44 = vector.shape_cast %43 : vector<1x32x1xf32> to vector<32x1xf32>
      %45 = vector.broadcast %44 : vector<32x1xf32> to vector<32x128xf32>
      %46 = arith.subf %42, %45 : vector<32x128xf32>
      %c1_32 = arith.constant 1 : index
      %c0_33 = arith.constant 0 : index
      %c0_34 = arith.constant 0 : index
      %47 = vector.load %arg16[%c1_32, %c0_33, %c0_34] : memref<2x32x1xf32, #tpu.memory_space<vmem>>, vector<1x32x1xf32>
      %48 = vector.shape_cast %47 : vector<1x32x1xf32> to vector<32x1xf32>
      %49 = vector.broadcast %48 : vector<32x1xf32> to vector<32x128xf32>
      %50 = arith.mulf %46, %49 : vector<32x128xf32>
      %cst_35 = arith.constant 0.000000e+00 : f32
      %51 = vector.broadcast %cst_35 : f32 to vector<32x128xf32>
      %52 = arith.maximumf %50, %51 : vector<32x128xf32>
      %c0_36 = arith.constant 0 : index
      %c1_37 = arith.constant 1 : index
      %c0_38 = arith.constant 0 : index
      %c0_39 = arith.constant 0 : index
      %53 = vector.load %arg3[%c0_36, %c1_37, %c0_38, %c0_39] : memref<1x8x10x128xbf16, #tpu.memory_space<vmem>>, vector<1x1x10x128xbf16>
      %54 = vector.shape_cast %53 : vector<1x1x10x128xbf16> to vector<10x128xbf16>
      %cst_40 = arith.constant dense<0.000000e+00> : vector<16x128xf32>
      %55 = tpu.matmul %0, %54, %cst_40 {dimension_numbers = #tpu.dot_dimension_numbers<[1], [0], [0], [1], [0, 0, 1, 1], [], []>} : vector<16x10xbf16>, vector<10x128xbf16>, vector<16x128xf32> -> vector<16x128xf32>
      %c0_41 = arith.constant 0 : index
      %c0_42 = arith.constant 0 : index
      %c0_43 = arith.constant 0 : index
      %56 = vector.load %arg14[%c0_41, %c0_42, %c0_43] : memref<2x16x1xf32, #tpu.memory_space<vmem>>, vector<1x16x1xf32>
      %57 = vector.shape_cast %56 : vector<1x16x1xf32> to vector<16x1xf32>
      %58 = vector.broadcast %57 : vector<16x1xf32> to vector<16x128xf32>
      %59 = arith.subf %55, %58 : vector<16x128xf32>
      %c1_44 = arith.constant 1 : index
      %c0_45 = arith.constant 0 : index
      %c0_46 = arith.constant 0 : index
      %60 = vector.load %arg14[%c1_44, %c0_45, %c0_46] : memref<2x16x1xf32, #tpu.memory_space<vmem>>, vector<1x16x1xf32>
      %61 = vector.shape_cast %60 : vector<1x16x1xf32> to vector<16x1xf32>
      %62 = vector.broadcast %61 : vector<16x1xf32> to vector<16x128xf32>
      %63 = arith.mulf %59, %62 : vector<16x128xf32>
      %cst_47 = arith.constant 0.000000e+00 : f32
      %64 = vector.broadcast %cst_47 : f32 to vector<16x128xf32>
      %65 = arith.maximumf %63, %64 : vector<16x128xf32>
      %66 = arith.truncf %65 : vector<16x128xf32> to vector<16x128xbf16>
      %cst_48 = arith.constant dense<0.000000e+00> : vector<16x128xf32>
      %67 = tpu.matmul %1, %66, %cst_48 {dimension_numbers = #tpu.dot_dimension_numbers<[1], [0], [0], [1], [0, 0, 1, 1], [], []>} : vector<16x16xbf16>, vector<16x128xbf16>, vector<16x128xf32> -> vector<16x128xf32>
      %c0_49 = arith.constant 0 : index
      %c0_50 = arith.constant 0 : index
      %c0_51 = arith.constant 0 : index
      %68 = vector.load %arg15[%c0_49, %c0_50, %c0_51] : memref<2x16x1xf32, #tpu.memory_space<vmem>>, vector<1x16x1xf32>
      %69 = vector.shape_cast %68 : vector<1x16x1xf32> to vector<16x1xf32>
      %70 = vector.broadcast %69 : vector<16x1xf32> to vector<16x128xf32>
      %71 = arith.subf %67, %70 : vector<16x128xf32>
      %c1_52 = arith.constant 1 : index
      %c0_53 = arith.constant 0 : index
      %c0_54 = arith.constant 0 : index
      %72 = vector.load %arg15[%c1_52, %c0_53, %c0_54] : memref<2x16x1xf32, #tpu.memory_space<vmem>>, vector<1x16x1xf32>
      %73 = vector.shape_cast %72 : vector<1x16x1xf32> to vector<16x1xf32>
      %74 = vector.broadcast %73 : vector<16x1xf32> to vector<16x128xf32>
      %75 = arith.mulf %71, %74 : vector<16x128xf32>
      %cst_55 = arith.constant 0.000000e+00 : f32
      %76 = vector.broadcast %cst_55 : f32 to vector<16x128xf32>
      %77 = arith.maximumf %75, %76 : vector<16x128xf32>
      %78 = arith.truncf %77 : vector<16x128xf32> to vector<16x128xbf16>
      %cst_56 = arith.constant dense<0.000000e+00> : vector<32x128xf32>
      %79 = tpu.matmul %2, %78, %cst_56 {dimension_numbers = #tpu.dot_dimension_numbers<[1], [0], [0], [1], [0, 0, 1, 1], [], []>} : vector<32x16xbf16>, vector<16x128xbf16>, vector<32x128xf32> -> vector<32x128xf32>
      %c0_57 = arith.constant 0 : index
      %c0_58 = arith.constant 0 : index
      %c0_59 = arith.constant 0 : index
      %80 = vector.load %arg16[%c0_57, %c0_58, %c0_59] : memref<2x32x1xf32, #tpu.memory_space<vmem>>, vector<1x32x1xf32>
      %81 = vector.shape_cast %80 : vector<1x32x1xf32> to vector<32x1xf32>
      %82 = vector.broadcast %81 : vector<32x1xf32> to vector<32x128xf32>
      %83 = arith.subf %79, %82 : vector<32x128xf32>
      %c1_60 = arith.constant 1 : index
      %c0_61 = arith.constant 0 : index
      %c0_62 = arith.constant 0 : index
      %84 = vector.load %arg16[%c1_60, %c0_61, %c0_62] : memref<2x32x1xf32, #tpu.memory_space<vmem>>, vector<1x32x1xf32>
      %85 = vector.shape_cast %84 : vector<1x32x1xf32> to vector<32x1xf32>
      %86 = vector.broadcast %85 : vector<32x1xf32> to vector<32x128xf32>
      %87 = arith.mulf %83, %86 : vector<32x128xf32>
      %cst_63 = arith.constant 0.000000e+00 : f32
      %88 = vector.broadcast %cst_63 : f32 to vector<32x128xf32>
      %89 = arith.maximumf %87, %88 : vector<32x128xf32>
      %90 = arith.maximumf %52, %89 : vector<32x128xf32>
      %c0_64 = arith.constant 0 : index
      %c2 = arith.constant 2 : index
      %c0_65 = arith.constant 0 : index
      %c0_66 = arith.constant 0 : index
      %91 = vector.load %arg3[%c0_64, %c2, %c0_65, %c0_66] : memref<1x8x10x128xbf16, #tpu.memory_space<vmem>>, vector<1x1x10x128xbf16>
      %92 = vector.shape_cast %91 : vector<1x1x10x128xbf16> to vector<10x128xbf16>
      %cst_67 = arith.constant dense<0.000000e+00> : vector<16x128xf32>
      %93 = tpu.matmul %0, %92, %cst_67 {dimension_numbers = #tpu.dot_dimension_numbers<[1], [0], [0], [1], [0, 0, 1, 1], [], []>} : vector<16x10xbf16>, vector<10x128xbf16>, vector<16x128xf32> -> vector<16x128xf32>
      %c0_68 = arith.constant 0 : index
      %c0_69 = arith.constant 0 : index
      %c0_70 = arith.constant 0 : index
      %94 = vector.load %arg14[%c0_68, %c0_69, %c0_70] : memref<2x16x1xf32, #tpu.memory_space<vmem>>, vector<1x16x1xf32>
      %95 = vector.shape_cast %94 : vector<1x16x1xf32> to vector<16x1xf32>
      %96 = vector.broadcast %95 : vector<16x1xf32> to vector<16x128xf32>
      %97 = arith.subf %93, %96 : vector<16x128xf32>
      %c1_71 = arith.constant 1 : index
      %c0_72 = arith.constant 0 : index
      %c0_73 = arith.constant 0 : index
      %98 = vector.load %arg14[%c1_71, %c0_72, %c0_73] : memref<2x16x1xf32, #tpu.memory_space<vmem>>, vector<1x16x1xf32>
      %99 = vector.shape_cast %98 : vector<1x16x1xf32> to vector<16x1xf32>
      %100 = vector.broadcast %99 : vector<16x1xf32> to vector<16x128xf32>
      %101 = arith.mulf %97, %100 : vector<16x128xf32>
      %cst_74 = arith.constant 0.000000e+00 : f32
      %102 = vector.broadcast %cst_74 : f32 to vector<16x128xf32>
      %103 = arith.maximumf %101, %102 : vector<16x128xf32>
      %104 = arith.truncf %103 : vector<16x128xf32> to vector<16x128xbf16>
      %cst_75 = arith.constant dense<0.000000e+00> : vector<16x128xf32>
      %105 = tpu.matmul %1, %104, %cst_75 {dimension_numbers = #tpu.dot_dimension_numbers<[1], [0], [0], [1], [0, 0, 1, 1], [], []>} : vector<16x16xbf16>, vector<16x128xbf16>, vector<16x128xf32> -> vector<16x128xf32>
      %c0_76 = arith.constant 0 : index
      %c0_77 = arith.constant 0 : index
      %c0_78 = arith.constant 0 : index
      %106 = vector.load %arg15[%c0_76, %c0_77, %c0_78] : memref<2x16x1xf32, #tpu.memory_space<vmem>>, vector<1x16x1xf32>
      %107 = vector.shape_cast %106 : vector<1x16x1xf32> to vector<16x1xf32>
      %108 = vector.broadcast %107 : vector<16x1xf32> to vector<16x128xf32>
      %109 = arith.subf %105, %108 : vector<16x128xf32>
      %c1_79 = arith.constant 1 : index
      %c0_80 = arith.constant 0 : index
      %c0_81 = arith.constant 0 : index
      %110 = vector.load %arg15[%c1_79, %c0_80, %c0_81] : memref<2x16x1xf32, #tpu.memory_space<vmem>>, vector<1x16x1xf32>
      %111 = vector.shape_cast %110 : vector<1x16x1xf32> to vector<16x1xf32>
      %112 = vector.broadcast %111 : vector<16x1xf32> to vector<16x128xf32>
      %113 = arith.mulf %109, %112 : vector<16x128xf32>
      %cst_82 = arith.constant 0.000000e+00 : f32
      %114 = vector.broadcast %cst_82 : f32 to vector<16x128xf32>
      %115 = arith.maximumf %113, %114 : vector<16x128xf32>
      %116 = arith.truncf %115 : vector<16x128xf32> to vector<16x128xbf16>
      %cst_83 = arith.constant dense<0.000000e+00> : vector<32x128xf32>
      %117 = tpu.matmul %2, %116, %cst_83 {dimension_numbers = #tpu.dot_dimension_numbers<[1], [0], [0], [1], [0, 0, 1, 1], [], []>} : vector<32x16xbf16>, vector<16x128xbf16>, vector<32x128xf32> -> vector<32x128xf32>
      %c0_84 = arith.constant 0 : index
      %c0_85 = arith.constant 0 : index
      %c0_86 = arith.constant 0 : index
      %118 = vector.load %arg16[%c0_84, %c0_85, %c0_86] : memref<2x32x1xf32, #tpu.memory_space<vmem>>, vector<1x32x1xf32>
      %119 = vector.shape_cast %118 : vector<1x32x1xf32> to vector<32x1xf32>
      %120 = vector.broadcast %119 : vector<32x1xf32> to vector<32x128xf32>
      %121 = arith.subf %117, %120 : vector<32x128xf32>
      %c1_87 = arith.constant 1 : index
      %c0_88 = arith.constant 0 : index
      %c0_89 = arith.constant 0 : index
      %122 = vector.load %arg16[%c1_87, %c0_88, %c0_89] : memref<2x32x1xf32, #tpu.memory_space<vmem>>, vector<1x32x1xf32>
      %123 = vector.shape_cast %122 : vector<1x32x1xf32> to vector<32x1xf32>
      %124 = vector.broadcast %123 : vector<32x1xf32> to vector<32x128xf32>
      %125 = arith.mulf %121, %124 : vector<32x128xf32>
      %cst_90 = arith.constant 0.000000e+00 : f32
      %126 = vector.broadcast %cst_90 : f32 to vector<32x128xf32>
      %127 = arith.maximumf %125, %126 : vector<32x128xf32>
      %128 = arith.maximumf %90, %127 : vector<32x128xf32>
      %c0_91 = arith.constant 0 : index
      %c3 = arith.constant 3 : index
      %c0_92 = arith.constant 0 : index
      %c0_93 = arith.constant 0 : index
      %129 = vector.load %arg3[%c0_91, %c3, %c0_92, %c0_93] : memref<1x8x10x128xbf16, #tpu.memory_space<vmem>>, vector<1x1x10x128xbf16>
      %130 = vector.shape_cast %129 : vector<1x1x10x128xbf16> to vector<10x128xbf16>
      %cst_94 = arith.constant dense<0.000000e+00> : vector<16x128xf32>
      %131 = tpu.matmul %0, %130, %cst_94 {dimension_numbers = #tpu.dot_dimension_numbers<[1], [0], [0], [1], [0, 0, 1, 1], [], []>} : vector<16x10xbf16>, vector<10x128xbf16>, vector<16x128xf32> -> vector<16x128xf32>
      %c0_95 = arith.constant 0 : index
      %c0_96 = arith.constant 0 : index
      %c0_97 = arith.constant 0 : index
      %132 = vector.load %arg14[%c0_95, %c0_96, %c0_97] : memref<2x16x1xf32, #tpu.memory_space<vmem>>, vector<1x16x1xf32>
      %133 = vector.shape_cast %132 : vector<1x16x1xf32> to vector<16x1xf32>
      %134 = vector.broadcast %133 : vector<16x1xf32> to vector<16x128xf32>
      %135 = arith.subf %131, %134 : vector<16x128xf32>
      %c1_98 = arith.constant 1 : index
      %c0_99 = arith.constant 0 : index
      %c0_100 = arith.constant 0 : index
      %136 = vector.load %arg14[%c1_98, %c0_99, %c0_100] : memref<2x16x1xf32, #tpu.memory_space<vmem>>, vector<1x16x1xf32>
      %137 = vector.shape_cast %136 : vector<1x16x1xf32> to vector<16x1xf32>
      %138 = vector.broadcast %137 : vector<16x1xf32> to vector<16x128xf32>
      %139 = arith.mulf %135, %138 : vector<16x128xf32>
      %cst_101 = arith.constant 0.000000e+00 : f32
      %140 = vector.broadcast %cst_101 : f32 to vector<16x128xf32>
      %141 = arith.maximumf %139, %140 : vector<16x128xf32>
      %142 = arith.truncf %141 : vector<16x128xf32> to vector<16x128xbf16>
      %cst_102 = arith.constant dense<0.000000e+00> : vector<16x128xf32>
      %143 = tpu.matmul %1, %142, %cst_102 {dimension_numbers = #tpu.dot_dimension_numbers<[1], [0], [0], [1], [0, 0, 1, 1], [], []>} : vector<16x16xbf16>, vector<16x128xbf16>, vector<16x128xf32> -> vector<16x128xf32>
      %c0_103 = arith.constant 0 : index
      %c0_104 = arith.constant 0 : index
      %c0_105 = arith.constant 0 : index
      %144 = vector.load %arg15[%c0_103, %c0_104, %c0_105] : memref<2x16x1xf32, #tpu.memory_space<vmem>>, vector<1x16x1xf32>
      %145 = vector.shape_cast %144 : vector<1x16x1xf32> to vector<16x1xf32>
      %146 = vector.broadcast %145 : vector<16x1xf32> to vector<16x128xf32>
      %147 = arith.subf %143, %146 : vector<16x128xf32>
      %c1_106 = arith.constant 1 : index
      %c0_107 = arith.constant 0 : index
      %c0_108 = arith.constant 0 : index
      %148 = vector.load %arg15[%c1_106, %c0_107, %c0_108] : memref<2x16x1xf32, #tpu.memory_space<vmem>>, vector<1x16x1xf32>
      %149 = vector.shape_cast %148 : vector<1x16x1xf32> to vector<16x1xf32>
      %150 = vector.broadcast %149 : vector<16x1xf32> to vector<16x128xf32>
      %151 = arith.mulf %147, %150 : vector<16x128xf32>
      %cst_109 = arith.constant 0.000000e+00 : f32
      %152 = vector.broadcast %cst_109 : f32 to vector<16x128xf32>
      %153 = arith.maximumf %151, %152 : vector<16x128xf32>
      %154 = arith.truncf %153 : vector<16x128xf32> to vector<16x128xbf16>
      %cst_110 = arith.constant dense<0.000000e+00> : vector<32x128xf32>
      %155 = tpu.matmul %2, %154, %cst_110 {dimension_numbers = #tpu.dot_dimension_numbers<[1], [0], [0], [1], [0, 0, 1, 1], [], []>} : vector<32x16xbf16>, vector<16x128xbf16>, vector<32x128xf32> -> vector<32x128xf32>
      %c0_111 = arith.constant 0 : index
      %c0_112 = arith.constant 0 : index
      %c0_113 = arith.constant 0 : index
      %156 = vector.load %arg16[%c0_111, %c0_112, %c0_113] : memref<2x32x1xf32, #tpu.memory_space<vmem>>, vector<1x32x1xf32>
      %157 = vector.shape_cast %156 : vector<1x32x1xf32> to vector<32x1xf32>
      %158 = vector.broadcast %157 : vector<32x1xf32> to vector<32x128xf32>
      %159 = arith.subf %155, %158 : vector<32x128xf32>
      %c1_114 = arith.constant 1 : index
      %c0_115 = arith.constant 0 : index
      %c0_116 = arith.constant 0 : index
      %160 = vector.load %arg16[%c1_114, %c0_115, %c0_116] : memref<2x32x1xf32, #tpu.memory_space<vmem>>, vector<1x32x1xf32>
      %161 = vector.shape_cast %160 : vector<1x32x1xf32> to vector<32x1xf32>
      %162 = vector.broadcast %161 : vector<32x1xf32> to vector<32x128xf32>
      %163 = arith.mulf %159, %162 : vector<32x128xf32>
      %cst_117 = arith.constant 0.000000e+00 : f32
      %164 = vector.broadcast %cst_117 : f32 to vector<32x128xf32>
      %165 = arith.maximumf %163, %164 : vector<32x128xf32>
      %166 = arith.maximumf %128, %165 : vector<32x128xf32>
      %c0_118 = arith.constant 0 : index
      %c4 = arith.constant 4 : index
      %c0_119 = arith.constant 0 : index
      %c0_120 = arith.constant 0 : index
      %167 = vector.load %arg3[%c0_118, %c4, %c0_119, %c0_120] : memref<1x8x10x128xbf16, #tpu.memory_space<vmem>>, vector<1x1x10x128xbf16>
      %168 = vector.shape_cast %167 : vector<1x1x10x128xbf16> to vector<10x128xbf16>
      %cst_121 = arith.constant dense<0.000000e+00> : vector<16x128xf32>
      %169 = tpu.matmul %0, %168, %cst_121 {dimension_numbers = #tpu.dot_dimension_numbers<[1], [0], [0], [1], [0, 0, 1, 1], [], []>} : vector<16x10xbf16>, vector<10x128xbf16>, vector<16x128xf32> -> vector<16x128xf32>
      %c0_122 = arith.constant 0 : index
      %c0_123 = arith.constant 0 : index
      %c0_124 = arith.constant 0 : index
      %170 = vector.load %arg14[%c0_122, %c0_123, %c0_124] : memref<2x16x1xf32, #tpu.memory_space<vmem>>, vector<1x16x1xf32>
      %171 = vector.shape_cast %170 : vector<1x16x1xf32> to vector<16x1xf32>
      %172 = vector.broadcast %171 : vector<16x1xf32> to vector<16x128xf32>
      %173 = arith.subf %169, %172 : vector<16x128xf32>
      %c1_125 = arith.constant 1 : index
      %c0_126 = arith.constant 0 : index
      %c0_127 = arith.constant 0 : index
      %174 = vector.load %arg14[%c1_125, %c0_126, %c0_127] : memref<2x16x1xf32, #tpu.memory_space<vmem>>, vector<1x16x1xf32>
      %175 = vector.shape_cast %174 : vector<1x16x1xf32> to vector<16x1xf32>
      %176 = vector.broadcast %175 : vector<16x1xf32> to vector<16x128xf32>
      %177 = arith.mulf %173, %176 : vector<16x128xf32>
      %cst_128 = arith.constant 0.000000e+00 : f32
      %178 = vector.broadcast %cst_128 : f32 to vector<16x128xf32>
      %179 = arith.maximumf %177, %178 : vector<16x128xf32>
      %180 = arith.truncf %179 : vector<16x128xf32> to vector<16x128xbf16>
      %cst_129 = arith.constant dense<0.000000e+00> : vector<16x128xf32>
      %181 = tpu.matmul %1, %180, %cst_129 {dimension_numbers = #tpu.dot_dimension_numbers<[1], [0], [0], [1], [0, 0, 1, 1], [], []>} : vector<16x16xbf16>, vector<16x128xbf16>, vector<16x128xf32> -> vector<16x128xf32>
      %c0_130 = arith.constant 0 : index
      %c0_131 = arith.constant 0 : index
      %c0_132 = arith.constant 0 : index
      %182 = vector.load %arg15[%c0_130, %c0_131, %c0_132] : memref<2x16x1xf32, #tpu.memory_space<vmem>>, vector<1x16x1xf32>
      %183 = vector.shape_cast %182 : vector<1x16x1xf32> to vector<16x1xf32>
      %184 = vector.broadcast %183 : vector<16x1xf32> to vector<16x128xf32>
      %185 = arith.subf %181, %184 : vector<16x128xf32>
      %c1_133 = arith.constant 1 : index
      %c0_134 = arith.constant 0 : index
      %c0_135 = arith.constant 0 : index
      %186 = vector.load %arg15[%c1_133, %c0_134, %c0_135] : memref<2x16x1xf32, #tpu.memory_space<vmem>>, vector<1x16x1xf32>
      %187 = vector.shape_cast %186 : vector<1x16x1xf32> to vector<16x1xf32>
      %188 = vector.broadcast %187 : vector<16x1xf32> to vector<16x128xf32>
      %189 = arith.mulf %185, %188 : vector<16x128xf32>
      %cst_136 = arith.constant 0.000000e+00 : f32
      %190 = vector.broadcast %cst_136 : f32 to vector<16x128xf32>
      %191 = arith.maximumf %189, %190 : vector<16x128xf32>
      %192 = arith.truncf %191 : vector<16x128xf32> to vector<16x128xbf16>
      %cst_137 = arith.constant dense<0.000000e+00> : vector<32x128xf32>
      %193 = tpu.matmul %2, %192, %cst_137 {dimension_numbers = #tpu.dot_dimension_numbers<[1], [0], [0], [1], [0, 0, 1, 1], [], []>} : vector<32x16xbf16>, vector<16x128xbf16>, vector<32x128xf32> -> vector<32x128xf32>
      %c0_138 = arith.constant 0 : index
      %c0_139 = arith.constant 0 : index
      %c0_140 = arith.constant 0 : index
      %194 = vector.load %arg16[%c0_138, %c0_139, %c0_140] : memref<2x32x1xf32, #tpu.memory_space<vmem>>, vector<1x32x1xf32>
      %195 = vector.shape_cast %194 : vector<1x32x1xf32> to vector<32x1xf32>
      %196 = vector.broadcast %195 : vector<32x1xf32> to vector<32x128xf32>
      %197 = arith.subf %193, %196 : vector<32x128xf32>
      %c1_141 = arith.constant 1 : index
      %c0_142 = arith.constant 0 : index
      %c0_143 = arith.constant 0 : index
      %198 = vector.load %arg16[%c1_141, %c0_142, %c0_143] : memref<2x32x1xf32, #tpu.memory_space<vmem>>, vector<1x32x1xf32>
      %199 = vector.shape_cast %198 : vector<1x32x1xf32> to vector<32x1xf32>
      %200 = vector.broadcast %199 : vector<32x1xf32> to vector<32x128xf32>
      %201 = arith.mulf %197, %200 : vector<32x128xf32>
      %cst_144 = arith.constant 0.000000e+00 : f32
      %202 = vector.broadcast %cst_144 : f32 to vector<32x128xf32>
      %203 = arith.maximumf %201, %202 : vector<32x128xf32>
      %204 = arith.maximumf %166, %203 : vector<32x128xf32>
      %c0_145 = arith.constant 0 : index
      %c5 = arith.constant 5 : index
      %c0_146 = arith.constant 0 : index
      %c0_147 = arith.constant 0 : index
      %205 = vector.load %arg3[%c0_145, %c5, %c0_146, %c0_147] : memref<1x8x10x128xbf16, #tpu.memory_space<vmem>>, vector<1x1x10x128xbf16>
      %206 = vector.shape_cast %205 : vector<1x1x10x128xbf16> to vector<10x128xbf16>
      %cst_148 = arith.constant dense<0.000000e+00> : vector<16x128xf32>
      %207 = tpu.matmul %0, %206, %cst_148 {dimension_numbers = #tpu.dot_dimension_numbers<[1], [0], [0], [1], [0, 0, 1, 1], [], []>} : vector<16x10xbf16>, vector<10x128xbf16>, vector<16x128xf32> -> vector<16x128xf32>
      %c0_149 = arith.constant 0 : index
      %c0_150 = arith.constant 0 : index
      %c0_151 = arith.constant 0 : index
      %208 = vector.load %arg14[%c0_149, %c0_150, %c0_151] : memref<2x16x1xf32, #tpu.memory_space<vmem>>, vector<1x16x1xf32>
      %209 = vector.shape_cast %208 : vector<1x16x1xf32> to vector<16x1xf32>
      %210 = vector.broadcast %209 : vector<16x1xf32> to vector<16x128xf32>
      %211 = arith.subf %207, %210 : vector<16x128xf32>
      %c1_152 = arith.constant 1 : index
      %c0_153 = arith.constant 0 : index
      %c0_154 = arith.constant 0 : index
      %212 = vector.load %arg14[%c1_152, %c0_153, %c0_154] : memref<2x16x1xf32, #tpu.memory_space<vmem>>, vector<1x16x1xf32>
      %213 = vector.shape_cast %212 : vector<1x16x1xf32> to vector<16x1xf32>
      %214 = vector.broadcast %213 : vector<16x1xf32> to vector<16x128xf32>
      %215 = arith.mulf %211, %214 : vector<16x128xf32>
      %cst_155 = arith.constant 0.000000e+00 : f32
      %216 = vector.broadcast %cst_155 : f32 to vector<16x128xf32>
      %217 = arith.maximumf %215, %216 : vector<16x128xf32>
      %218 = arith.truncf %217 : vector<16x128xf32> to vector<16x128xbf16>
      %cst_156 = arith.constant dense<0.000000e+00> : vector<16x128xf32>
      %219 = tpu.matmul %1, %218, %cst_156 {dimension_numbers = #tpu.dot_dimension_numbers<[1], [0], [0], [1], [0, 0, 1, 1], [], []>} : vector<16x16xbf16>, vector<16x128xbf16>, vector<16x128xf32> -> vector<16x128xf32>
      %c0_157 = arith.constant 0 : index
      %c0_158 = arith.constant 0 : index
      %c0_159 = arith.constant 0 : index
      %220 = vector.load %arg15[%c0_157, %c0_158, %c0_159] : memref<2x16x1xf32, #tpu.memory_space<vmem>>, vector<1x16x1xf32>
      %221 = vector.shape_cast %220 : vector<1x16x1xf32> to vector<16x1xf32>
      %222 = vector.broadcast %221 : vector<16x1xf32> to vector<16x128xf32>
      %223 = arith.subf %219, %222 : vector<16x128xf32>
      %c1_160 = arith.constant 1 : index
      %c0_161 = arith.constant 0 : index
      %c0_162 = arith.constant 0 : index
      %224 = vector.load %arg15[%c1_160, %c0_161, %c0_162] : memref<2x16x1xf32, #tpu.memory_space<vmem>>, vector<1x16x1xf32>
      %225 = vector.shape_cast %224 : vector<1x16x1xf32> to vector<16x1xf32>
      %226 = vector.broadcast %225 : vector<16x1xf32> to vector<16x128xf32>
      %227 = arith.mulf %223, %226 : vector<16x128xf32>
      %cst_163 = arith.constant 0.000000e+00 : f32
      %228 = vector.broadcast %cst_163 : f32 to vector<16x128xf32>
      %229 = arith.maximumf %227, %228 : vector<16x128xf32>
      %230 = arith.truncf %229 : vector<16x128xf32> to vector<16x128xbf16>
      %cst_164 = arith.constant dense<0.000000e+00> : vector<32x128xf32>
      %231 = tpu.matmul %2, %230, %cst_164 {dimension_numbers = #tpu.dot_dimension_numbers<[1], [0], [0], [1], [0, 0, 1, 1], [], []>} : vector<32x16xbf16>, vector<16x128xbf16>, vector<32x128xf32> -> vector<32x128xf32>
      %c0_165 = arith.constant 0 : index
      %c0_166 = arith.constant 0 : index
      %c0_167 = arith.constant 0 : index
      %232 = vector.load %arg16[%c0_165, %c0_166, %c0_167] : memref<2x32x1xf32, #tpu.memory_space<vmem>>, vector<1x32x1xf32>
      %233 = vector.shape_cast %232 : vector<1x32x1xf32> to vector<32x1xf32>
      %234 = vector.broadcast %233 : vector<32x1xf32> to vector<32x128xf32>
      %235 = arith.subf %231, %234 : vector<32x128xf32>
      %c1_168 = arith.constant 1 : index
      %c0_169 = arith.constant 0 : index
      %c0_170 = arith.constant 0 : index
      %236 = vector.load %arg16[%c1_168, %c0_169, %c0_170] : memref<2x32x1xf32, #tpu.memory_space<vmem>>, vector<1x32x1xf32>
      %237 = vector.shape_cast %236 : vector<1x32x1xf32> to vector<32x1xf32>
      %238 = vector.broadcast %237 : vector<32x1xf32> to vector<32x128xf32>
      %239 = arith.mulf %235, %238 : vector<32x128xf32>
      %cst_171 = arith.constant 0.000000e+00 : f32
      %240 = vector.broadcast %cst_171 : f32 to vector<32x128xf32>
      %241 = arith.maximumf %239, %240 : vector<32x128xf32>
      %242 = arith.maximumf %204, %241 : vector<32x128xf32>
      %c0_172 = arith.constant 0 : index
      %c6 = arith.constant 6 : index
      %c0_173 = arith.constant 0 : index
      %c0_174 = arith.constant 0 : index
      %243 = vector.load %arg3[%c0_172, %c6, %c0_173, %c0_174] : memref<1x8x10x128xbf16, #tpu.memory_space<vmem>>, vector<1x1x10x128xbf16>
      %244 = vector.shape_cast %243 : vector<1x1x10x128xbf16> to vector<10x128xbf16>
      %cst_175 = arith.constant dense<0.000000e+00> : vector<16x128xf32>
      %245 = tpu.matmul %0, %244, %cst_175 {dimension_numbers = #tpu.dot_dimension_numbers<[1], [0], [0], [1], [0, 0, 1, 1], [], []>} : vector<16x10xbf16>, vector<10x128xbf16>, vector<16x128xf32> -> vector<16x128xf32>
      %c0_176 = arith.constant 0 : index
      %c0_177 = arith.constant 0 : index
      %c0_178 = arith.constant 0 : index
      %246 = vector.load %arg14[%c0_176, %c0_177, %c0_178] : memref<2x16x1xf32, #tpu.memory_space<vmem>>, vector<1x16x1xf32>
      %247 = vector.shape_cast %246 : vector<1x16x1xf32> to vector<16x1xf32>
      %248 = vector.broadcast %247 : vector<16x1xf32> to vector<16x128xf32>
      %249 = arith.subf %245, %248 : vector<16x128xf32>
      %c1_179 = arith.constant 1 : index
      %c0_180 = arith.constant 0 : index
      %c0_181 = arith.constant 0 : index
      %250 = vector.load %arg14[%c1_179, %c0_180, %c0_181] : memref<2x16x1xf32, #tpu.memory_space<vmem>>, vector<1x16x1xf32>
      %251 = vector.shape_cast %250 : vector<1x16x1xf32> to vector<16x1xf32>
      %252 = vector.broadcast %251 : vector<16x1xf32> to vector<16x128xf32>
      %253 = arith.mulf %249, %252 : vector<16x128xf32>
      %cst_182 = arith.constant 0.000000e+00 : f32
      %254 = vector.broadcast %cst_182 : f32 to vector<16x128xf32>
      %255 = arith.maximumf %253, %254 : vector<16x128xf32>
      %256 = arith.truncf %255 : vector<16x128xf32> to vector<16x128xbf16>
      %cst_183 = arith.constant dense<0.000000e+00> : vector<16x128xf32>
      %257 = tpu.matmul %1, %256, %cst_183 {dimension_numbers = #tpu.dot_dimension_numbers<[1], [0], [0], [1], [0, 0, 1, 1], [], []>} : vector<16x16xbf16>, vector<16x128xbf16>, vector<16x128xf32> -> vector<16x128xf32>
      %c0_184 = arith.constant 0 : index
      %c0_185 = arith.constant 0 : index
      %c0_186 = arith.constant 0 : index
      %258 = vector.load %arg15[%c0_184, %c0_185, %c0_186] : memref<2x16x1xf32, #tpu.memory_space<vmem>>, vector<1x16x1xf32>
      %259 = vector.shape_cast %258 : vector<1x16x1xf32> to vector<16x1xf32>
      %260 = vector.broadcast %259 : vector<16x1xf32> to vector<16x128xf32>
      %261 = arith.subf %257, %260 : vector<16x128xf32>
      %c1_187 = arith.constant 1 : index
      %c0_188 = arith.constant 0 : index
      %c0_189 = arith.constant 0 : index
      %262 = vector.load %arg15[%c1_187, %c0_188, %c0_189] : memref<2x16x1xf32, #tpu.memory_space<vmem>>, vector<1x16x1xf32>
      %263 = vector.shape_cast %262 : vector<1x16x1xf32> to vector<16x1xf32>
      %264 = vector.broadcast %263 : vector<16x1xf32> to vector<16x128xf32>
      %265 = arith.mulf %261, %264 : vector<16x128xf32>
      %cst_190 = arith.constant 0.000000e+00 : f32
      %266 = vector.broadcast %cst_190 : f32 to vector<16x128xf32>
      %267 = arith.maximumf %265, %266 : vector<16x128xf32>
      %268 = arith.truncf %267 : vector<16x128xf32> to vector<16x128xbf16>
      %cst_191 = arith.constant dense<0.000000e+00> : vector<32x128xf32>
      %269 = tpu.matmul %2, %268, %cst_191 {dimension_numbers = #tpu.dot_dimension_numbers<[1], [0], [0], [1], [0, 0, 1, 1], [], []>} : vector<32x16xbf16>, vector<16x128xbf16>, vector<32x128xf32> -> vector<32x128xf32>
      %c0_192 = arith.constant 0 : index
      %c0_193 = arith.constant 0 : index
      %c0_194 = arith.constant 0 : index
      %270 = vector.load %arg16[%c0_192, %c0_193, %c0_194] : memref<2x32x1xf32, #tpu.memory_space<vmem>>, vector<1x32x1xf32>
      %271 = vector.shape_cast %270 : vector<1x32x1xf32> to vector<32x1xf32>
      %272 = vector.broadcast %271 : vector<32x1xf32> to vector<32x128xf32>
      %273 = arith.subf %269, %272 : vector<32x128xf32>
      %c1_195 = arith.constant 1 : index
      %c0_196 = arith.constant 0 : index
      %c0_197 = arith.constant 0 : index
      %274 = vector.load %arg16[%c1_195, %c0_196, %c0_197] : memref<2x32x1xf32, #tpu.memory_space<vmem>>, vector<1x32x1xf32>
      %275 = vector.shape_cast %274 : vector<1x32x1xf32> to vector<32x1xf32>
      %276 = vector.broadcast %275 : vector<32x1xf32> to vector<32x128xf32>
      %277 = arith.mulf %273, %276 : vector<32x128xf32>
      %cst_198 = arith.constant 0.000000e+00 : f32
      %278 = vector.broadcast %cst_198 : f32 to vector<32x128xf32>
      %279 = arith.maximumf %277, %278 : vector<32x128xf32>
      %280 = arith.maximumf %242, %279 : vector<32x128xf32>
      %c0_199 = arith.constant 0 : index
      %c7 = arith.constant 7 : index
      %c0_200 = arith.constant 0 : index
      %c0_201 = arith.constant 0 : index
      %281 = vector.load %arg3[%c0_199, %c7, %c0_200, %c0_201] : memref<1x8x10x128xbf16, #tpu.memory_space<vmem>>, vector<1x1x10x128xbf16>
      %282 = vector.shape_cast %281 : vector<1x1x10x128xbf16> to vector<10x128xbf16>
      %cst_202 = arith.constant dense<0.000000e+00> : vector<16x128xf32>
      %283 = tpu.matmul %0, %282, %cst_202 {dimension_numbers = #tpu.dot_dimension_numbers<[1], [0], [0], [1], [0, 0, 1, 1], [], []>} : vector<16x10xbf16>, vector<10x128xbf16>, vector<16x128xf32> -> vector<16x128xf32>
      %c0_203 = arith.constant 0 : index
      %c0_204 = arith.constant 0 : index
      %c0_205 = arith.constant 0 : index
      %284 = vector.load %arg14[%c0_203, %c0_204, %c0_205] : memref<2x16x1xf32, #tpu.memory_space<vmem>>, vector<1x16x1xf32>
      %285 = vector.shape_cast %284 : vector<1x16x1xf32> to vector<16x1xf32>
      %286 = vector.broadcast %285 : vector<16x1xf32> to vector<16x128xf32>
      %287 = arith.subf %283, %286 : vector<16x128xf32>
      %c1_206 = arith.constant 1 : index
      %c0_207 = arith.constant 0 : index
      %c0_208 = arith.constant 0 : index
      %288 = vector.load %arg14[%c1_206, %c0_207, %c0_208] : memref<2x16x1xf32, #tpu.memory_space<vmem>>, vector<1x16x1xf32>
      %289 = vector.shape_cast %288 : vector<1x16x1xf32> to vector<16x1xf32>
      %290 = vector.broadcast %289 : vector<16x1xf32> to vector<16x128xf32>
      %291 = arith.mulf %287, %290 : vector<16x128xf32>
      %cst_209 = arith.constant 0.000000e+00 : f32
      %292 = vector.broadcast %cst_209 : f32 to vector<16x128xf32>
      %293 = arith.maximumf %291, %292 : vector<16x128xf32>
      %294 = arith.truncf %293 : vector<16x128xf32> to vector<16x128xbf16>
      %cst_210 = arith.constant dense<0.000000e+00> : vector<16x128xf32>
      %295 = tpu.matmul %1, %294, %cst_210 {dimension_numbers = #tpu.dot_dimension_numbers<[1], [0], [0], [1], [0, 0, 1, 1], [], []>} : vector<16x16xbf16>, vector<16x128xbf16>, vector<16x128xf32> -> vector<16x128xf32>
      %c0_211 = arith.constant 0 : index
      %c0_212 = arith.constant 0 : index
      %c0_213 = arith.constant 0 : index
      %296 = vector.load %arg15[%c0_211, %c0_212, %c0_213] : memref<2x16x1xf32, #tpu.memory_space<vmem>>, vector<1x16x1xf32>
      %297 = vector.shape_cast %296 : vector<1x16x1xf32> to vector<16x1xf32>
      %298 = vector.broadcast %297 : vector<16x1xf32> to vector<16x128xf32>
      %299 = arith.subf %295, %298 : vector<16x128xf32>
      %c1_214 = arith.constant 1 : index
      %c0_215 = arith.constant 0 : index
      %c0_216 = arith.constant 0 : index
      %300 = vector.load %arg15[%c1_214, %c0_215, %c0_216] : memref<2x16x1xf32, #tpu.memory_space<vmem>>, vector<1x16x1xf32>
      %301 = vector.shape_cast %300 : vector<1x16x1xf32> to vector<16x1xf32>
      %302 = vector.broadcast %301 : vector<16x1xf32> to vector<16x128xf32>
      %303 = arith.mulf %299, %302 : vector<16x128xf32>
      %cst_217 = arith.constant 0.000000e+00 : f32
      %304 = vector.broadcast %cst_217 : f32 to vector<16x128xf32>
      %305 = arith.maximumf %303, %304 : vector<16x128xf32>
      %306 = arith.truncf %305 : vector<16x128xf32> to vector<16x128xbf16>
      %cst_218 = arith.constant dense<0.000000e+00> : vector<32x128xf32>
      %307 = tpu.matmul %2, %306, %cst_218 {dimension_numbers = #tpu.dot_dimension_numbers<[1], [0], [0], [1], [0, 0, 1, 1], [], []>} : vector<32x16xbf16>, vector<16x128xbf16>, vector<32x128xf32> -> vector<32x128xf32>
      %c0_219 = arith.constant 0 : index
      %c0_220 = arith.constant 0 : index
      %c0_221 = arith.constant 0 : index
      %308 = vector.load %arg16[%c0_219, %c0_220, %c0_221] : memref<2x32x1xf32, #tpu.memory_space<vmem>>, vector<1x32x1xf32>
      %309 = vector.shape_cast %308 : vector<1x32x1xf32> to vector<32x1xf32>
      %310 = vector.broadcast %309 : vector<32x1xf32> to vector<32x128xf32>
      %311 = arith.subf %307, %310 : vector<32x128xf32>
      %c1_222 = arith.constant 1 : index
      %c0_223 = arith.constant 0 : index
      %c0_224 = arith.constant 0 : index
      %312 = vector.load %arg16[%c1_222, %c0_223, %c0_224] : memref<2x32x1xf32, #tpu.memory_space<vmem>>, vector<1x32x1xf32>
      %313 = vector.shape_cast %312 : vector<1x32x1xf32> to vector<32x1xf32>
      %314 = vector.broadcast %313 : vector<32x1xf32> to vector<32x128xf32>
      %315 = arith.mulf %311, %314 : vector<32x128xf32>
      %cst_225 = arith.constant 0.000000e+00 : f32
      %316 = vector.broadcast %cst_225 : f32 to vector<32x128xf32>
      %317 = arith.maximumf %315, %316 : vector<32x128xf32>
      %318 = arith.maximumf %280, %317 : vector<32x128xf32>
      %c0_226 = arith.constant 0 : index
      %c0_227 = arith.constant 0 : index
      %c0_228 = arith.constant 0 : index
      %319 = vector.load %arg7[%c0_226, %c0_227, %c0_228] : memref<1x32x128xf32, #tpu.memory_space<vmem>>, vector<1x32x128xf32>
      %320 = vector.shape_cast %319 : vector<1x32x128xf32> to vector<32x128xf32>
      %321 = vector.shape_cast %318 : vector<32x128xf32> to vector<1x32x128xf32>
      tpu.vector_store %arg7[%c0_226, %c0_227, %c0_228], %321 {strides = array<i32>} : memref<1x32x128xf32, #tpu.memory_space<vmem>>, vector<1x32x128xf32>,
    } else {
    }
    return
  }
  func.func @transform_0(%arg0: i32, %arg1: i32, %arg2: i32) -> (i32, i32, i32, i32) {
    %c0_i32 = arith.constant 0 : i32
    %c0_i32_0 = arith.constant 0 : i32
    %c0_i32_1 = arith.constant 0 : i32
    return %arg0, %c0_i32, %c0_i32_0, %arg2 : i32, i32, i32, i32
  }
  func.func @transform_1(%arg0: i32, %arg1: i32, %arg2: i32) -> (i32, i32) {
    %c0_i32 = arith.constant 0 : i32
    %c0_i32_0 = arith.constant 0 : i32
    %c0_i32_1 = arith.constant 0 : i32
    return %c0_i32, %c0_i32_0 : i32, i32
  }
  func.func @transform_2(%arg0: i32, %arg1: i32, %arg2: i32) -> (i32, i32) {
    %c0_i32 = arith.constant 0 : i32
    %c0_i32_0 = arith.constant 0 : i32
    %c0_i32_1 = arith.constant 0 : i32
    return %c0_i32, %c0_i32_0 : i32, i32
  }
  func.func @transform_3(%arg0: i32, %arg1: i32, %arg2: i32) -> (i32, i32) {
    %c0_i32 = arith.constant 0 : i32
    %c0_i32_0 = arith.constant 0 : i32
    %c0_i32_1 = arith.constant 0 : i32
    return %c0_i32, %c0_i32_0 : i32, i32
  }
  func.func @transform_4(%arg0: i32, %arg1: i32, %arg2: i32) -> (i32, i32, i32) {
    %c0_i32 = arith.constant 0 : i32
    %c0_i32_0 = arith.constant 0 : i32
    return %arg0, %c0_i32, %arg2 : i32, i32, i32
  }
}

</mosaic_0001>

<bundles_post_ra>
// kernel: tpu_custom_call.1
= control target key start
LH: loop header
LB: loop body
LE: loop exit
PB: predicated region body
PF: predicated region fallthrough
CT: control target
= control target key end

     0   :  { %s8555_s0 = inlined_call_operand.vmem [shape: bf16[2,8,10,256], index: 0, kind: input, shape index: {}]   ;;  %s8556_s1 = inlined_call_operand.vmem [shape: bf16[16,10], index: 1, kind: input, shape index: {}]   ;;  %s8557_s2 = inlined_call_operand.vmem [shape: bf16[16,16], index: 2, kind: input, shape index: {}]   ;;  %s8558_s3 = inlined_call_operand.vmem [shape: bf16[32,16], index: 3, kind: input, shape index: {}]   ;;  %s8559_s4 = inlined_call_operand.hbm [shape: f32[2,32,256], index: 4, kind: output, shape index: {}]  }
   0x1   :  { %8561 = sst [smem:[#allocation16_spill]] %s8555_s0 }
   0x2   :  { %8562 = sst [smem:[#allocation17_spill]] %s8556_s1 }
   0x3   :  { %9 = vsyncpa [#allocation13], 0 }
   0x4   :  { %11 = vsyncpa [#allocation13 + $0x1], 0  ;;  %s7498_s15 = smov 0   ;;  %s7500_s16 = smov 0  }
   0x5   :  { %s7502_s17 = smov 0   ;;  %s7504_s18 = smov 0  }
   0x6   :  { %s7506_s19 = smov 0   ;;  %s7508_s20 = smov 0  }
   0x7   :  { %s7510_s21 = smov 0   ;;  %s7512_s22 = smov 0  }
   0x8   :  { %s7514_s23 = smov 0   ;;  %s7516_s24 = smov 0  }
   0x9 LB: > { %s5982_s25 = sadd.s32 4294967295, %s7449_s24   ;;  %s29_s26 = sadd.s32 1, %s7437_s21  ;;  %s7449_s24 = sphi %s7516_s24, %s17_s24   ;;  %s7445_s23 = sphi %s7514_s23, %s8578_s23   ;;  %s7441_s22 = sphi %s7512_s22, %s8577_s22   ;;  %s7437_s21 = sphi %s7510_s21, %s8576_s21   ;;  %s7433_s20 = sphi %s7508_s20, %s8575_s20   ;;  %s7429_s19 = sphi %s7506_s19, %s8574_s19   ;;  %s7425_s18 = sphi %s7504_s18, %s8573_s18   ;;  %s7421_s17 = sphi %s7502_s17, %s8572_s17   ;;  %s7417_s16 = sphi %s7500_s16, %s8571_s16   ;;  %s7413_s15 = sphi %s7498_s15, %s8570_s15  }
   0xa   : > { %p30_p0 = scmp.ge.s32.totalorder %s29_s26, 2  ;;  %s32_s27 = sadd.s32 1, %s7441_s22 }
   0xb   : > { %s5983_s28 = sadd.s32 4294967294, %s7449_s24   ;;  %p52_p1 = scmp.ne.s32.totalorder %s7421_s17, %s7417_s16 }
   0xc   : > { %s8580_s26 = smov (%p30_p0, %s29_s26), 0  ;;  %s8582_s27 = smov (!%p30_p0, %s32_s27), %s7441_s22 }
   0xd   : > { %s36_s29 = sadd.s32 1, %s7445_s23  ;;  %p53_p2 = scmp.eq.s32.totalorder %s7449_s24, 0 }
   0xe   : > { %p34_p3 = scmp.ge.s32.totalorder %s8582_s27, 4  ;;  %p147_p4 = scmp.eq.s32.totalorder %s5982_s25, 15 }
   0xf   : > { %p7559_p5 = por %p53_p2, %p52_p1  ;;  %p152_p6 = scmp.ne.s32.totalorder %s7417_s16, %s7413_s15 }
  0x10   : > { %s8584_s27 = smov (%p34_p3, %s8582_s27), 0  ;;  %s8586_s29 = smov (!%p34_p3, %s36_s29), %s7445_s23 }
  0x11   : > { %p7568_p7 = por %p147_p4, %p52_p1  ;;  %p153_p8 = scmp.eq.s32.totalorder %s5983_s28, 15 }
  0x12   : > { %p38_p9 = scmp.ge.s32.totalorder %s8586_s29, 2  ;;  %s41_s6 = ssub.s32 %s7437_s21, %s8580_s26 }
  0x13   : > { %p7574_p10 = por %p153_p8, %p152_p6  ;;  %s45_s10 = sadd.s32 1, %s7421_s17 }
  0x14   : > { %s8588_s29 = smov (%p38_p9, %s8586_s29), 0  ;;  %p5985_p12 = scmp.ge.s32.totalorder %s7449_s24, 16 }
  0x15   : > { %8566 = sst [smem:[#allocation15_spill]] %s8588_s29  ;;  %s40_s8 = ssub.s32 %s7445_s23, %s8588_s29 }
  0x16   : > { %s42_s9 = sor.u32 %s41_s6, %s40_s8  ;;  %178 = sbr.rel (%p5985_p12) target bundleno = 49 (0x31), region = 28 }
  0x17   : > { %p43_p11 = scmp.eq.s32.totalorder %s42_s9, 0 }
  0x19   : > { %s7584_s11 = scalar_select %p43_p11, %s7421_s17, %s45_s10  }
  0x1d   : > { %181 = sbr.rel (!%p7559_p5) target bundleno = 49 (0x31), region = 32  ;;  %s183_s12 = sand.u32 (%p7559_p5), 1, %s7421_s17  }
  0x1e   : > { %s5987_s13 = sshll.u32 (%p7559_p5), %s7445_s23, 5  ;;  %s5986_s14 = sshll.u32 (%p7559_p5), %s183_s12, 6 }
  0x1f   : > { %s187_s25 = sadd.s32 (%p7559_p5), %s7437_s21, %s5987_s13  ;;  %s8567_s0 = sld [smem:[#allocation16_spill]] (%p7559_p5) }
  0x20   : > { %s5988_s28 = sshll.u32 (%p7559_p5), %s187_s25, 2  ;;  %s185_s30 = scalar_lea.vmem (%p7559_p5), [#allocation11], %s5986_s14 }
  0x25   : > { %s7595_s8 = scalar_lea.vmem %s8567_s0, %s5988_s28 }
  0x26   : > { %v205_v0 = vld [vmem:[%s7595_s8] sm:$0xf]  ;;  %v207_v1 = vld [vmem:[%s7595_s8 + $0x8] sm:$0xf]  ;;  %v209_v2 = vld [vmem:[%s7595_s8 + $0x10] sm:$0xf] }
  0x27   : > { %206 = vst [vmem:[%s185_s30] sm:$0xf] %v205_v0  ;;  %208 = vst [vmem:[%s185_s30 + $0x4] sm:$0xf] %v207_v1  ;;  %v211_v3 = vld [vmem:[%s7595_s8 + $0x18] sm:$0xf] }
  0x28   : > { %210 = vst [vmem:[%s185_s30 + $0x8] sm:$0xf] %v209_v2  ;;  %v213_v4 = vld [vmem:[%s7595_s8 + $0x20] sm:$0xf]  ;;  %v215_v5 = vld [vmem:[%s7595_s8 + $0x28] sm:$0xf] }
  0x29   : > { %212 = vst [vmem:[%s185_s30 + $0xc] sm:$0xf] %v211_v3  ;;  %214 = vst [vmem:[%s185_s30 + $0x10] sm:$0xf] %v213_v4  ;;  %v217_v6 = vld [vmem:[%s7595_s8 + $0x30] sm:$0xf] }
  0x2a   : > { %216 = vst [vmem:[%s185_s30 + $0x14] sm:$0xf] %v215_v5  ;;  %v219_v7 = vld [vmem:[%s7595_s8 + $0x38] sm:$0xf]  ;;  %v221_v8 = vld [vmem:[%s7595_s8 + $0x40] sm:$0xf] }
  0x2b   : > { %218 = vst [vmem:[%s185_s30 + $0x18] sm:$0xf] %v217_v6  ;;  %220 = vst [vmem:[%s185_s30 + $0x1c] sm:$0xf] %v219_v7  ;;  %v223_v9 = vld [vmem:[%s7595_s8 + $0x48] sm:$0xf] }
  0x2c   : > { %222 = vst [vmem:[%s185_s30 + $0x20] sm:$0xf] %v221_v8  ;;  %v225_v10 = vld [vmem:[%s7595_s8 + $0x50] sm:$0xf]  ;;  %v227_v11 = vld [vmem:[%s7595_s8 + $0x58] sm:$0xf] }
  0x2d   : > { %224 = vst [vmem:[%s185_s30 + $0x24] sm:$0xf] %v223_v9  ;;  %226 = vst [vmem:[%s185_s30 + $0x28] sm:$0xf] %v225_v10  ;;  %v229_v12 = vld [vmem:[%s7595_s8 + $0x60] sm:$0xf] }
  0x2e   : > { %228 = vst [vmem:[%s185_s30 + $0x2c] sm:$0xf] %v227_v11  ;;  %v231_v13 = vld [vmem:[%s7595_s8 + $0x68] sm:$0xf]  ;;  %v233_v14 = vld [vmem:[%s7595_s8 + $0x70] sm:$0xf] }
  0x2f   : > { %230 = vst [vmem:[%s185_s30 + $0x30] sm:$0xf] %v229_v12  ;;  %232 = vst [vmem:[%s185_s30 + $0x34] sm:$0xf] %v231_v13  ;;  %v235_v15 = vld [vmem:[%s7595_s8 + $0x78] sm:$0xf] }
  0x30   : > { %234 = vst [vmem:[%s185_s30 + $0x38] sm:$0xf] %v233_v14  ;;  %236 = vst [vmem:[%s185_s30 + $0x3c] sm:$0xf] %v235_v15 }
  0x31 PF: > { %p5989_p13 = scmp.ge.s32.totalorder %s7449_s24, 1  ;;  %p290_p0 = scmp.lt.s32.totalorder %s7449_s24, 17 }
  0x33   : > { %p291_p1 = pnand %p5989_p13, %p290_p0 }
  0x34   : > { %s7616_s29 = sand.u32 (!%p291_p1), 1, %s7417_s16   ;;  %s8568_s1 = sld [smem:[#allocation17_spill]] (!%p291_p1)  ;;  %v7633_v18 = vld [vmem:[%s8557_s2] sm:$0xf] (!%p291_p1)  ;;  %v7638_v19 = vld [vmem:[%s8557_s2 + $0x4] sm:$0xf] (!%p291_p1) }
  0x35   : > { %294 = sbr.rel (%p291_p1) target bundleno = 9975 (0x26f7), region = 73  ;;  %s5990_s14 = sshll.u32 (!%p291_p1), %s7616_s29, 6  ;;  %v7643_v20 = vld [vmem:[%s8558_s3] sm:$0xf] (!%p291_p1)  ;;  %v7648_v21 = vld [vmem:[%s8558_s3 + $0x4] sm:$0xf] (!%p291_p1) }
  0x36   : > { %s5991_s25 = sshll.u32 (!%p291_p1), %s7616_s29, 5  ;;  %v7653_v22 = vld [vmem:[%s8558_s3 + $0x8] sm:$0xf] (!%p291_p1)  ;;  %v7658_v23 = vld [vmem:[%s8558_s3 + $0xc] sm:$0xf] (!%p291_p1)  ;;  %s7660_s8 = scalar_lea.vmem (!%p291_p1), [#allocation11], %s5990_s14 }
  0x37   : > { %s7662_s30 = scalar_lea.vmem (!%p291_p1), [#allocation12], %s5991_s25  ;;  %p5992_p2 = scmp.ne.s32.totalorder (!%p291_p1), %s7429_s19, 0 }
  0x3a   : > { %v7621_v16 = vld [vmem:[%s8568_s1] sm:$0xf] (!%p291_p1)  ;;  %v7626_v17 = vld [vmem:[%s8568_s1 + $0x4] sm:$0xf] (!%p291_p1) }
  0x3c   : > { %335 = sbr.rel (%p5992_p2) target bundleno = 780 (0x30c), region = 81  ;;  %p5993_p3 = scmp.ne.s32.totalorder (!%p5992_p2), %s7425_s18, 0 }
  0x43   : > { %339 = sbr.rel (%p5993_p3) target bundleno = 74 (0x4a), region = 85  ;;  %vm340_vm0 = vcmask (!%p5993_p3), 80896   ;;  %vm342_vm1 = vcmask (!%p5993_p3), 74752   ;;  %vm344_vm2 = vcmask (!%p5993_p3), 73728   ;;  %v7451_v24 = vmov (!%p5993_p3), 0.0  }
  0x44   : > { %341 = vst.msk [vmem:[#allocation2] sm:$0xff] (!%p5993_p3), %vm340_vm0, %v7451_v24 }
  0x45   : > { %343 = vst.msk [vmem:[#allocation2 + $0x8] sm:$0x3] (!%p5993_p3), %vm342_vm1, %v7451_v24 }
  0x46   : > { %345 = vst.msk [vmem:[#allocation5] sm:$0x1] (!%p5993_p3), %vm344_vm2, %v7451_v24 }
  0x4a PF: > { %v7452_v25 = vmov 0.0   ;;  %v7285_v26 = vld [vmem:[%s7660_s8] sm:$0x1f]   ;;  %vm7453_vm3 = vmmov 0   ;;  %v7286_v27 = vld [vmem:[%s7660_s8 + $0x8] sm:$0x1f]  }
  0x4b   : > { %6384 = vmatprep.subr.bf16.mxu0 %v7452_v25  ;;  %6390 = vmatprep.subr.bf16.mxu1 %v7452_v25  ;;  %v7454_v28 = vmov 1065369472   ;;  %v7287_v29 = vld [vmem:[%s7660_s8 + $0x10] sm:$0x1f]   ;;  %v7288_v30 = vld [vmem:[%s7660_s8 + $0x18] sm:$0x1f]  }
  0x4c   : > { %6386 = vmatprep.mubr.msk.bf16.mxu0 %vm7453_vm3, %v7452_v25  ;;  %6392 = vmatprep.mubr.msk.bf16.mxu1 %vm7453_vm3, %v7452_v25  ;;  %v7289_v31 = vld [vmem:[%s7660_s8 + $0x20] sm:$0x1f]   ;;  %v7290_v32 = vld [vmem:[%s7660_s8 + $0x28] sm:$0x1f]   ;;  %v7291_v33 = vld [vmem:[%s7660_s8 + $0x30] sm:$0x1f]  }
  0x4d   : > { %6385 = vmatpush3.bf16.xpose.msra.mxu0 %v7285_v26  ;;  %6391 = vmatpush3.bf16.xpose.msra.mxu1 %v7285_v26  ;;  %v7292_v34 = vld [vmem:[%s7660_s8 + $0x38] sm:$0x1f]   ;;  %v346_v35 = vld [vmem:[#allocation2] sm:$0xff]  ;;  %v348_v36 = vld [vmem:[#allocation5] sm:$0x1]  ;;  %vm1092_vm4 = vcmask 80896  }
  0x4e   : > { %6396 = vmatprep.subr.bf16.mxu0 %v7452_v25  ;;  %6402 = vmatprep.subr.bf16.mxu1 %v7452_v25  ;;  %vm1096_vm5 = vcmask 73728   ;;  %v347_v39 = vld [vmem:[#allocation2 + $0x8] sm:$0x3]  ;;  %vm1094_vm6 = vcmask 74752   ;;  %p6016_p4 = scmp.ne.s32.totalorder %s7425_s18, 1 }
  0x4f   : > { %vm1129_vm7 = vcmask (!%p6016_p4), 1041408   ;;  %v1102_v51 = vunpack.c.l.bf16 (!%p6016_p4), %v7621_v16  ;;  %vm7455_vm8 = vmmov (!%p6016_p4), 1   ;;  %v1103_v53 = vunpack.c.l.bf16 (!%p6016_p4), %v7626_v17 }
  0x50   : > { %vm6985_vm9 = vmpackc.low (!%p6016_p4), %vm1129_vm7, %vm7455_vm8  ;;  %vm1224_vm10 = vcmask (!%p6016_p4), 7168  }
  0x54   : > { %6387 = vmatmul.mubr.bf16.vlgmr.msra.gmra.mrb[0].mxu0 %v7285_v26  ;;  %6393 = vmatmul.mubr.bf16.vlgmr.msra.gmra.mrb[0].mxu1 %v7454_v28 }
  0x55   : > { %6397 = vmatpush3.bf16.xpose.msra.mxu0 %v7286_v27  ;;  %6403 = vmatpush3.bf16.xpose.msra.mxu1 %v7286_v27 }
  0x56   : > { %6398 = vmatprep.mubr.msk.bf16.mxu0 %vm7453_vm3, %v7452_v25  ;;  %6404 = vmatprep.mubr.msk.bf16.mxu1 %vm7453_vm3, %v7452_v25 }
  0x57   : > { %6408 = vmatprep.subr.bf16.mxu0 %v7452_v25  ;;  %6414 = vmatprep.subr.bf16.mxu1 %v7452_v25 }
  0x60   : > { %6399 = vmatmul.mubr.bf16.vlgmr.msra.gmra.mrb[0].mxu0 %v7286_v27  ;;  %6405 = vmatmul.mubr.bf16.vlgmr.msra.gmra.mrb[0].mxu1 %v7454_v28 }
  0x61   : > { %6409 = vmatpush3.bf16.xpose.msra.mxu0 %v7287_v29  ;;  %6415 = vmatpush3.bf16.xpose.msra.mxu1 %v7287_v29 }
  0x62   : > { %6410 = vmatprep.mubr.msk.bf16.mxu0 %vm7453_vm3, %v7452_v25  ;;  %6416 = vmatprep.mubr.msk.bf16.mxu1 %vm7453_vm3, %v7452_v25 }
  0x63   : > { %6420 = vmatprep.subr.bf16.mxu0 %v7452_v25  ;;  %6426 = vmatprep.subr.bf16.mxu1 %v7452_v25 }
  0x6c   : > { %6411 = vmatmul.mubr.bf16.vlgmr.msra.gmra.mrb[0].mxu0 %v7287_v29  ;;  %6417 = vmatmul.mubr.bf16.vlgmr.msra.gmra.mrb[0].mxu1 %v7454_v28 }
  0x6d   : > { %6421 = vmatpush3.bf16.xpose.msra.mxu0 %v7288_v30  ;;  %6427 = vmatpush3.bf16.xpose.msra.mxu1 %v7288_v30 }
  0x6e   : > { %6422 = vmatprep.mubr.msk.bf16.mxu0 %vm7453_vm3, %v7452_v25  ;;  %6428 = vmatprep.mubr.msk.bf16.mxu1 %vm7453_vm3, %v7452_v25 }
  0x6f   : > { %6432 = vmatprep.subr.bf16.mxu0 %v7452_v25  ;;  %6438 = vmatprep.subr.bf16.mxu1 %v7452_v25 }
  0x78   : > { %6423 = vmatmul.mubr.bf16.vlgmr.msra.gmra.mrb[0].mxu0 %v7288_v30  ;;  %6429 = vmatmul.mubr.bf16.vlgmr.msra.gmra.mrb[0].mxu1 %v7454_v28 }
  0x79   : > { %6433 = vmatpush3.bf16.xpose.msra.mxu0 %v7289_v31  ;;  %6439 = vmatpush3.bf16.xpose.msra.mxu1 %v7289_v31 }
  0x7a   : > { %6434 = vmatprep.mubr.msk.bf16.mxu0 %vm7453_vm3, %v7452_v25  ;;  %6440 = vmatprep.mubr.msk.bf16.mxu1 %vm7453_vm3, %v7452_v25 }
  0x7b   : > { %6444 = vmatprep.subr.bf16.mxu0 %v7452_v25  ;;  %6450 = vmatprep.subr.bf16.mxu1 %v7452_v25 }
  0x84   : > { %6435 = vmatmul.mubr.bf16.vlgmr.msra.gmra.mrb[0].mxu0 %v7289_v31  ;;  %6441 = vmatmul.mubr.bf16.vlgmr.msra.gmra.mrb[0].mxu1 %v7454_v28 }
  0x85   : > { %6445 = vmatpush3.bf16.xpose.msra.mxu0 %v7290_v32  ;;  %6451 = vmatpush3.bf16.xpose.msra.mxu1 %v7290_v32 }
  0x86   : > { %6446 = vmatprep.mubr.msk.bf16.mxu0 %vm7453_vm3, %v7452_v25  ;;  %6452 = vmatprep.mubr.msk.bf16.mxu1 %vm7453_vm3, %v7452_v25 }
  0x87   : > { %6456 = vmatprep.subr.bf16.mxu0 %v7452_v25  ;;  %6462 = vmatprep.subr.bf16.mxu1 %v7452_v25 }
  0x90   : > { %6447 = vmatmul.mubr.bf16.vlgmr.msra.gmra.mrb[0].mxu0 %v7290_v32  ;;  %6453 = vmatmul.mubr.bf16.vlgmr.msra.gmra.mrb[0].mxu1 %v7454_v28 }
  0x91   : > { %6457 = vmatpush3.bf16.xpose.msra.mxu0 %v7291_v33  ;;  %6463 = vmatpush3.bf16.xpose.msra.mxu1 %v7291_v33 }
  0x92   : > { %6458 = vmatprep.mubr.msk.bf16.mxu0 %vm7453_vm3, %v7452_v25  ;;  %6464 = vmatprep.mubr.msk.bf16.mxu1 %vm7453_vm3, %v7452_v25 }
  0x93   : > { %6468 = vmatprep.subr.bf16.mxu0 %v7452_v25  ;;  %6474 = vmatprep.subr.bf16.mxu1 %v7452_v25 }
  0x9c   : > { %6459 = vmatmul.mubr.bf16.vlgmr.msra.gmra.mrb[0].mxu0 %v7291_v33  ;;  %6465 = vmatmul.mubr.bf16.vlgmr.msra.gmra.mrb[0].mxu1 %v7454_v28 }
  0x9d   : > { %6469 = vmatpush3.bf16.xpose.msra.mxu0 %v7292_v34  ;;  %6475 = vmatpush3.bf16.xpose.msra.mxu1 %v7292_v34 }
  0x9e   : > { %6470 = vmatprep.mubr.msk.bf16.mxu0 %vm7453_vm3, %v7452_v25  ;;  %6476 = vmatprep.mubr.msk.bf16.mxu1 %vm7453_vm3, %v7452_v25 }
  0xa8   : > { %6471 = vmatmul.mubr.bf16.vlgmr.msra.gmra.mrb[0].mxu0 %v7292_v34  ;;  %6477 = vmatmul.mubr.bf16.vlgmr.msra.gmra.mrb[0].mxu1 %v7454_v28 }
  0xa9   : > { %6484 = vmatprep.mubr.msk.f32.mxu0 (!%p6016_p4), %vm1092_vm4, %v1102_v51 }
 0x17a   : > { %1101 = sbr.rel (%p6016_p4) target bundleno = 780 (0x30c), region = 89 }
 0x17b   : > { %v1042_v37 = vpop.f32.mrb[0].mxu0  ;;  %v1085_v38 = vpop.f32.mrb[0].mxu1 }
 0x17c   : > { %v6998_v40 = vadd.f32 %v1042_v37, %v346_v35  ;;  %v7000_v41 = vadd.f32 %v1085_v38, %v348_v36  ;;  %v6472_v42 = vpop.f32.mrb[1].mxu0  ;;  %v6478_v43 = vpop.f32.mrb[1].mxu1 }
 0x17d   : > { %v1045_v44 = vpop.f32.mrb[2].mxu0  ;;  %v1088_v45 = vpop.f32.mrb[2].mxu1 }
 0x17e   : > { %1093 = vst.msk [vmem:[#allocation2] sm:$0xff] %vm1092_vm4, %v6998_v40  ;;  %v6999_v46 = vadd.f32 %v1045_v44, %v347_v39  ;;  %v6473_v47 = vpop.f32.mrb[3].mxu0  ;;  %v6479_v48 = vpop.f32.mrb[3].mxu1 }
 0x17f   : > { %1097 = vst.msk [vmem:[#allocation5] sm:$0x1] %vm1096_vm5, %v7000_v41 }
 0x180   : > { %1095 = vst.msk [vmem:[#allocation2 + $0x8] sm:$0x3] %vm1094_vm6, %v6999_v46 }
 0x185   : > { %v1121_v49 = vld [vmem:[#allocation2] sm:$0xff] }
 0x186   : > { %v6017_v54 = vld [vmem:[#allocation5] ss:$0 sm:$0xff] }
 0x187   : > { %v1122_v50 = vld [vmem:[#allocation2 + $0x8] sm:$0x3]  ;;  %v1111_v55 = vmul.f32 %v6017_v54, %v1102_v51  ;;  %v1112_v57 = vmul.f32 %v6017_v54, %v1103_v53 }
 0x188   : > { %v6984_v52 = vpack.c.bf16 %v1122_v50, %v1121_v49 }
 0x189   : > { %v1113_v56 = vsel %vm1092_vm4, %v1111_v55, 0.0  ;;  %v1116_v58 = vsel %vm1092_vm4, %v1112_v57, 0.0 }
 0x18a   : > { %6986 = vmatprep.subr.msk.bf16.mxu0 %vm6985_vm9, %v6984_v52  ;;  %1114 = vadd.xlane.f32.xlu0 %v1113_v56 }
 0x18b   : > { %6989 = vmatpush3.bf16.msk.msra.mxu0 %vm6985_vm9, %v6984_v52 }
 0x18e   : > { %6485 = vmatmul.mubr.msk.f32.vlgmr.msra.gmra.mrb[0].mxu0 %vm1092_vm4, %v1103_v53  ;;  %1117 = vadd.xlane.f32.xlu0 %v1116_v58 }
 0x217   : > { %v1115_v1 = vpop.xlane.xlu0 %1114 }
 0x218   : > { %v1119_v2 = vmul.f32 0.00048828125, %v1115_v1 }
 0x21a   : > { %1225 = vst.msk [vmem:[#allocation8] sm:$0xff] %vm1224_vm10, %v1119_v2  ;;  %v1218_v5 = vmul.f32 %v1119_v2, %v1119_v2 }
 0x21b   : > { %v1118_v3 = vpop.xlane.xlu0 %1117 }
 0x21c   : > { %v1120_v4 = vmul.f32 0.00048828125, %v1118_v3 }
 0x21e   : > { %1226 = vst.msk [vmem:[#allocation8 + $0x8] sm:$0xff] %vm1224_vm10, %v1120_v4  ;;  %v1219_v9 = vmul.f32 %v1120_v4, %v1120_v4 }
 0x261   : > { %v6486_v59 = vpop.f32.mrb[0].mxu0 }
 0x262   : > { %v1199_v60 = vpop.f32.mrb[1].mxu0  ;;  %v1209_v62 = vmul.f32 %v6486_v59, %v1103_v53 }
 0x263   : > { %v1208_v61 = vmul.f32 %v1199_v60, %v1102_v51 }
 0x264   : > { %v1213_v0 = vsel %vm1092_vm4, %v1209_v62, 0.0 }
 0x265   : > { %v1210_v63 = vsel %vm1092_vm4, %v1208_v61, 0.0 }
 0x266   : > { %1211 = vadd.xlane.f32.xlu1 %v1210_v63 }
 0x26a   : > { %1214 = vadd.xlane.f32.xlu1 %v1213_v0 }
 0x2f3   : > { %v1212_v6 = vpop.xlane.xlu1 %1211 }
 0x2f4   : > { %v1216_v7 = vmul.f32 0.00048828125, %v1212_v6 }
 0x2f6   : > { %v1220_v8 = vsub.f32 %v1216_v7, %v1218_v5 }
 0x2f7   : > { %v1215_v10 = vpop.xlane.xlu1 %1214 }
 0x2f8   : > { %v1222_v11 = vmax.f32 %v1220_v8, 0.0  ;;  %v1217_v12 = vmul.f32 0.00048828125, %v1215_v10 }
 0x2fa   : > { %v1227_v13 = vadd.f32 1e-05, %v1222_v11  ;;  %v1221_v14 = vsub.f32 %v1217_v12, %v1219_v9 }
 0x2fc   : > { %7293 = vrsqrt.f32 %v1227_v13  ;;  %v1223_v15 = vmax.f32 %v1221_v14, 0.0 }
 0x2fe   : > { %v1228_v24 = vadd.f32 1e-05, %v1223_v15 }
 0x300   : > { %7295 = vrsqrt.f32 %v1228_v24 }
 0x306   : > { %v7294_v25 = vpop.eup %7293 }
 0x307   : > { %1232 = vst.msk [vmem:[#allocation8 + $0x10] sm:$0xff] %vm1224_vm10, %v7294_v25 }
 0x30a   : > { %v7296_v26 = vpop.eup %7295 }
 0x30b   : > { %1233 = vst.msk [vmem:[#allocation8 + $0x18] sm:$0xff] %vm1224_vm10, %v7296_v26 }
 0x30c PF: > { %p6021_p5 = scmp.ne.s32.totalorder %s7429_s19, 1 }
 0x30d   : > { %p6022_p6 = scmp.ne.s32.totalorder (!%p6021_p5), %s7425_s18, 0 }
 0x30e   : > { %1237 = sbr.rel (%p6021_p5) target bundleno = 3303 (0xce7), region = 93 }
 0x315   : > { %1241 = sbr.rel (%p6022_p6) target bundleno = 796 (0x31c), region = 97  ;;  %vm1242_vm11 = vcmask (!%p6022_p6), 130048   ;;  %vm1245_vm12 = vcmask (!%p6022_p6), 122880   ;;  %v7456_v27 = vmov (!%p6022_p6), 0.0  }
 0x316   : > { %1243 = vst.msk [vmem:[#allocation3] sm:$0xff] (!%p6022_p6), %vm1242_vm11, %v7456_v27  ;;  %1244 = vst.msk [vmem:[#allocation3 + $0x8] sm:$0xff] (!%p6022_p6), %vm1242_vm11, %v7456_v27 }
 0x317   : > { %1246 = vst.msk [vmem:[#allocation6] sm:$0x1] (!%p6022_p6), %vm1245_vm12, %v7456_v27 }
 0x31c PF: > { %vm1266_vm13 = vcmask 1044480   ;;  %v7457_v28 = vmov 0.0   ;;  %v7299_v29 = vld [vmem:[%s7660_s8] sm:$0x1f]   ;;  %vm7458_vm14 = vmmov 0   ;;  %vm1262_vm15 = vcmask 80896  }
 0x31d   : > { %6487 = vmatprep.subr.bf16.mxu0 %v7457_v28  ;;  %v1311_v30 = vld [vmem:[#allocation8] sm:$0xff]  ;;  %6493 = vmatprep.subr.bf16.mxu1 %v7457_v28  ;;  %v7459_v31 = vmov 0   ;;  %v1326_v32 = vld [vmem:[#allocation8 + $0x10] sm:$0xff]  ;;  %v1312_v33 = vld [vmem:[#allocation8 + $0x8] sm:$0xff]  ;;  %v1268_v34 = vsel %vm1266_vm13, %v7299_v29, 0  ;;  %v7746_v35 = vcombine.low %v7621_v16, %v7626_v17  ;;  %vm2428_vm0 = vcmask 130048  }
 0x31e   : > { %6489 = vmatprep.mubr.msk.bf16.mxu0 %vm7458_vm14, %v7457_v28  ;;  %7297 = vset.pattern.permute.xlu0 %v7459_v31  ;;  %v1327_v36 = vld [vmem:[#allocation8 + $0x18] sm:$0xff]  ;;  %v7300_v52 = vld [vmem:[%s7660_s8 + $0x8] sm:$0x1f]   ;;  %v7460_v54 = vmov 1065369472   ;;  %vm2431_vm1 = vcmask 122880  }
 0x31f   : > { %1315 = vperm.xlu0 %7297, %v1311_v30   ;;  %7298 = vset.pattern.permute.xlu1 %v7459_v31  ;;  %v1436_v53 = vsel %vm1266_vm13, %v7300_v52, 0  ;;  %v7301_v2 = vld [vmem:[%s7660_s8 + $0x10] sm:$0x1f]   ;;  %v7302_v15 = vld [vmem:[%s7660_s8 + $0x18] sm:$0x1f]   ;;  %p6054_p8 = scmp.ne.s32.totalorder %s7425_s18, 1 }
 0x320   : > { %6488 = vmatpush3.bf16.msra.mxu0 %v1268_v34  ;;  %1330 = vperm.xlu1 %7298, %v1326_v32   ;;  %v1579_v3 = vsel %vm1266_vm13, %v7301_v2, 0  ;;  %v1722_v24 = vsel %vm1266_vm13, %v7302_v15, 0  ;;  %vm2555_vm2 = vcmask (!%p6054_p8), 7168  }
 0x321   : > { %6499 = vmatprep.subr.bf16.mxu0 %v7457_v28  ;;  %6495 = vmatprep.mubr.msk.bf16.mxu1 %vm7458_vm14, %v7457_v28 }
 0x323   : > { %6490 = vmatmul.mubr.msk.bf16.vlgmr.msra.gmra.mrb[0].mxu0 %vm1262_vm15, %v7746_v35  ;;  %1320 = vperm.xlu0 %7297, %v1312_v33  }
 0x324   : > { %1335 = vperm.xlu1 %7298, %v1327_v36   ;;  %6501 = vmatprep.mubr.msk.bf16.mxu0 %vm7458_vm14, %v7457_v28 }
 0x39e   : > { %v7755_v37 = vpop.permute.xlu0 %1315 }
 0x39f   : > { %v7757_v38 = vpop.permute.xlu1 %1330 }
 0x3a2   : > { %v7760_v42 = vpop.permute.xlu0 %1320 }
 0x3a3   : > { %v7764_v47 = vpop.permute.xlu1 %1335 }
 0x3f6   : > { %v1304_v39 = vpop.f32.mrb[0].mxu0 }
 0x3f7   : > { %v1323_v40 = vsub.f32 %v1304_v39, %v7755_v37  ;;  %v6491_v41 = vpop.f32.mrb[1].mxu0 }
 0x3f8   : > { %v1307_v43 = vpop.f32.mrb[2].mxu0 }
 0x3f9   : > { %v1338_v44 = vmul.f32 %v7757_v38, %v1323_v40  ;;  %v1324_v45 = vsub.f32 %v1307_v43, %v7760_v42  ;;  %v6492_v46 = vpop.f32.mrb[3].mxu0  ;;  %v7303_v40 = vld [vmem:[%s7660_s8 + $0x20] sm:$0x1f]  }
 0x3fa   : > { %v1865_v41 = vsel %vm1266_vm13, %v7303_v40, 0 }
 0x3fb   : > { %v1339_v48 = vmul.f32 %v7764_v47, %v1324_v45  ;;  %v1340_v49 = vmax.f32 %v1338_v44, 0.0 }
 0x3fd   : > { %v1341_v50 = vmax.f32 %v1339_v48, 0.0 }
 0x3ff   : > { %v1342_v51 = vpack.c.bf16 %v1341_v50, %v1340_v49 }
 0x401   : > { %6494 = vmatpush3.bf16.xpose.msra.mxu1 %v1342_v51  ;;  %6500 = vmatpush3.bf16.xpose.msra.mxu0 %v1342_v51 }
 0x402   : > { %6505 = vmatprep.subr.bf16.mxu1 %v7457_v28  ;;  %6517 = vmatprep.subr.bf16.mxu0 %v7457_v28 }
 0x408   : > { %6496 = vmatmul.mubr.bf16.vlgmr.msra.gmra.mrb[0].mxu1 %v1342_v51  ;;  %6502 = vmatmul.mubr.bf16.vlgmr.msra.gmra.mrb[4].mxu0 %v7460_v54 }
 0x409   : > { %6506 = vmatpush3.bf16.msra.mxu1 %v1436_v53  ;;  %6507 = vmatprep.mubr.msk.bf16.mxu1 %vm7458_vm14, %v7457_v28 }
 0x40a   : > { %6511 = vmatprep.subr.bf16.mxu1 %v7457_v28  ;;  %6519 = vmatprep.mubr.msk.bf16.mxu0 %vm7458_vm14, %v7457_v28 }
 0x410   : > { %6508 = vmatmul.mubr.msk.bf16.vlgmr.msra.gmra.mrb[4].mxu1 %vm1262_vm15, %v7746_v35 }
 0x411   : > { %6513 = vmatprep.mubr.msk.bf16.mxu1 %vm7458_vm14, %v7457_v28 }
 0x4e3   : > { %v1472_v55 = vpop.f32.mrb[4].mxu1 }
 0x4e4   : > { %v1479_v56 = vsub.f32 %v1472_v55, %v7755_v37  ;;  %v6509_v57 = vpop.f32.mrb[5].mxu1 }
 0x4e5   : > { %v1475_v58 = vpop.f32.mrb[6].mxu1 }
 0x4e6   : > { %v1481_v59 = vmul.f32 %v1479_v56, %v7757_v38  ;;  %v1480_v60 = vsub.f32 %v1475_v58, %v7760_v42  ;;  %v6510_v61 = vpop.f32.mrb[7].mxu1  ;;  %v7304_v56 = vld [vmem:[%s7660_s8 + $0x28] sm:$0x1f]  }
 0x4e7   : > { %v2008_v57 = vsel %vm1266_vm13, %v7304_v56, 0 }
 0x4e8   : > { %v1482_v62 = vmul.f32 %v1480_v60, %v7764_v47  ;;  %v1483_v63 = vmax.f32 %v1481_v59, 0.0 }
 0x4ea   : > { %v1484_v0 = vmax.f32 %v1482_v62, 0.0 }
 0x4ec   : > { %v1485_v1 = vpack.c.bf16 %v1484_v0, %v1483_v63 }
 0x4ee   : > { %6512 = vmatpush3.bf16.xpose.msra.mxu1 %v1485_v1  ;;  %6518 = vmatpush3.bf16.xpose.msra.mxu0 %v1485_v1 }
 0x4ef   : > { %6523 = vmatprep.subr.bf16.mxu0 %v7457_v28  ;;  %6529 = vmatprep.subr.bf16.mxu1 %v7457_v28 }
 0x4f5   : > { %6514 = vmatmul.mubr.bf16.vlgmr.msra.gmra.mrb[0].mxu1 %v1485_v1  ;;  %6520 = vmatmul.mubr.bf16.vlgmr.msra.gmra.mrb[4].mxu0 %v7460_v54 }
 0x4f6   : > { %6524 = vmatpush3.bf16.msra.mxu0 %v1579_v3  ;;  %6525 = vmatprep.mubr.msk.bf16.mxu0 %vm7458_vm14, %v7457_v28 }
 0x4f7   : > { %6535 = vmatprep.subr.bf16.mxu0 %v7457_v28  ;;  %6531 = vmatprep.mubr.msk.bf16.mxu1 %vm7458_vm14, %v7457_v28 }
 0x4fd   : > { %6526 = vmatmul.mubr.msk.bf16.vlgmr.msra.gmra.mrb[8].mxu0 %vm1262_vm15, %v7746_v35 }
 0x4fe   : > { %6537 = vmatprep.mubr.msk.bf16.mxu0 %vm7458_vm14, %v7457_v28 }
 0x5d0   : > { %v1615_v4 = vpop.f32.mrb[8].mxu0 }
 0x5d1   : > { %v1622_v5 = vsub.f32 %v1615_v4, %v7755_v37  ;;  %v6527_v6 = vpop.f32.mrb[9].mxu0 }
 0x5d2   : > { %v1618_v7 = vpop.f32.mrb[10].mxu0 }
 0x5d3   : > { %v1624_v8 = vmul.f32 %v1622_v5, %v7757_v38  ;;  %v1623_v9 = vsub.f32 %v1618_v7, %v7760_v42  ;;  %v6528_v10 = vpop.f32.mrb[11].mxu0  ;;  %v7305_v5 = vld [vmem:[%s7660_s8 + $0x30] sm:$0x1f]  }
 0x5d4   : > { %v2151_v6 = vsel %vm1266_vm13, %v7305_v5, 0 }
 0x5d5   : > { %v1625_v11 = vmul.f32 %v1623_v9, %v7764_v47  ;;  %v1626_v12 = vmax.f32 %v1624_v8, 0.0 }
 0x5d7   : > { %v1627_v13 = vmax.f32 %v1625_v11, 0.0 }
 0x5d9   : > { %v1628_v14 = vpack.c.bf16 %v1627_v13, %v1626_v12 }
 0x5db   : > { %6530 = vmatpush3.bf16.xpose.msra.mxu1 %v1628_v14  ;;  %6536 = vmatpush3.bf16.xpose.msra.mxu0 %v1628_v14 }
 0x5dc   : > { %6541 = vmatprep.subr.bf16.mxu1 %v7457_v28  ;;  %6553 = vmatprep.subr.bf16.mxu0 %v7457_v28 }
 0x5e2   : > { %6532 = vmatmul.mubr.bf16.vlgmr.msra.gmra.mrb[0].mxu1 %v1628_v14  ;;  %6538 = vmatmul.mubr.bf16.vlgmr.msra.gmra.mrb[4].mxu0 %v7460_v54 }
 0x5e3   : > { %6542 = vmatpush3.bf16.msra.mxu1 %v1722_v24  ;;  %6543 = vmatprep.mubr.msk.bf16.mxu1 %vm7458_vm14, %v7457_v28 }
 0x5e4   : > { %6547 = vmatprep.subr.bf16.mxu1 %v7457_v28  ;;  %6555 = vmatprep.mubr.msk.bf16.mxu0 %vm7458_vm14, %v7457_v28 }
 0x5ea   : > { %6544 = vmatmul.mubr.msk.bf16.vlgmr.msra.gmra.mrb[8].mxu1 %vm1262_vm15, %v7746_v35 }
 0x5eb   : > { %6549 = vmatprep.mubr.msk.bf16.mxu1 %vm7458_vm14, %v7457_v28 }
 0x6bd   : > { %v1758_v25 = vpop.f32.mrb[8].mxu1 }
 0x6be   : > { %v1765_v26 = vsub.f32 %v1758_v25, %v7755_v37  ;;  %v6545_v27 = vpop.f32.mrb[9].mxu1 }
 0x6bf   : > { %v1761_v29 = vpop.f32.mrb[10].mxu1 }
 0x6c0   : > { %v1767_v30 = vmul.f32 %v1765_v26, %v7757_v38  ;;  %v1766_v31 = vsub.f32 %v1761_v29, %v7760_v42  ;;  %v6546_v32 = vpop.f32.mrb[11].mxu1  ;;  %v7306_v26 = vld [vmem:[%s7660_s8 + $0x38] sm:$0x1f]  }
 0x6c1   : > { %v2294_v27 = vsel %vm1266_vm13, %v7306_v26, 0 }
 0x6c2   : > { %v1768_v33 = vmul.f32 %v1766_v31, %v7764_v47  ;;  %v1769_v34 = vmax.f32 %v1767_v30, 0.0 }
 0x6c4   : > { %v1770_v36 = vmax.f32 %v1768_v33, 0.0 }
 0x6c6   : > { %v1771_v39 = vpack.c.bf16 %v1770_v36, %v1769_v34 }
 0x6c8   : > { %6548 = vmatpush3.bf16.xpose.msra.mxu1 %v1771_v39  ;;  %6554 = vmatpush3.bf16.xpose.msra.mxu0 %v1771_v39 }
 0x6c9   : > { %6559 = vmatprep.subr.bf16.mxu0 %v7457_v28  ;;  %6565 = vmatprep.subr.bf16.mxu1 %v7457_v28 }
 0x6cf   : > { %6550 = vmatmul.mubr.bf16.vlgmr.msra.gmra.mrb[0].mxu1 %v1771_v39  ;;  %6556 = vmatmul.mubr.bf16.vlgmr.msra.gmra.mrb[4].mxu0 %v7460_v54 }
 0x6d0   : > { %6560 = vmatpush3.bf16.msra.mxu0 %v1865_v41  ;;  %6561 = vmatprep.mubr.msk.bf16.mxu0 %vm7458_vm14, %v7457_v28 }
 0x6d1   : > { %6571 = vmatprep.subr.bf16.mxu0 %v7457_v28  ;;  %6567 = vmatprep.mubr.msk.bf16.mxu1 %vm7458_vm14, %v7457_v28 }
 0x6d7   : > { %6562 = vmatmul.mubr.msk.bf16.vlgmr.msra.gmra.mrb[12].mxu0 %vm1262_vm15, %v7746_v35 }
 0x6d8   : > { %6573 = vmatprep.mubr.msk.bf16.mxu0 %vm7458_vm14, %v7457_v28 }
 0x7aa   : > { %v1901_v43 = vpop.f32.mrb[12].mxu0 }
 0x7ab   : > { %v1908_v44 = vsub.f32 %v1901_v43, %v7755_v37  ;;  %v6563_v45 = vpop.f32.mrb[13].mxu0 }
 0x7ac   : > { %v1904_v46 = vpop.f32.mrb[14].mxu0 }
 0x7ad   : > { %v1910_v48 = vmul.f32 %v1908_v44, %v7757_v38  ;;  %v1909_v49 = vsub.f32 %v1904_v46, %v7760_v42  ;;  %v6564_v50 = vpop.f32.mrb[15].mxu0 }
 0x7af   : > { %v1911_v51 = vmul.f32 %v1909_v49, %v7764_v47  ;;  %v1912_v52 = vmax.f32 %v1910_v48, 0.0 }
 0x7b1   : > { %v1913_v53 = vmax.f32 %v1911_v51, 0.0 }
 0x7b3   : > { %v1914_v55 = vpack.c.bf16 %v1913_v53, %v1912_v52 }
 0x7b5   : > { %6566 = vmatpush3.bf16.xpose.msra.mxu1 %v1914_v55  ;;  %6572 = vmatpush3.bf16.xpose.msra.mxu0 %v1914_v55 }
 0x7b6   : > { %6577 = vmatprep.subr.bf16.mxu1 %v7457_v28  ;;  %6589 = vmatprep.subr.bf16.mxu0 %v7457_v28 }
 0x7bc   : > { %6568 = vmatmul.mubr.bf16.vlgmr.msra.gmra.mrb[0].mxu1 %v1914_v55  ;;  %6574 = vmatmul.mubr.bf16.vlgmr.msra.gmra.mrb[4].mxu0 %v7460_v54  ;;  %v2437_v55 = vunpack.c.l.bf16 (!%p6054_p8), %v7633_v18 }
 0x7bd   : > { %6578 = vmatpush3.bf16.msra.mxu1 %v2008_v57  ;;  %6579 = vmatprep.mubr.msk.bf16.mxu1 %vm7458_vm14, %v7457_v28  ;;  %v2438_v57 = vunpack.c.l.bf16 (!%p6054_p8), %v7638_v19 }
 0x7be   : > { %6583 = vmatprep.subr.bf16.mxu1 %v7457_v28  ;;  %6591 = vmatprep.mubr.msk.bf16.mxu0 %vm7458_vm14, %v7457_v28 }
 0x7c4   : > { %6580 = vmatmul.mubr.msk.bf16.vlgmr.msra.gmra.mrb[12].mxu1 %vm1262_vm15, %v7746_v35 }
 0x7c5   : > { %6585 = vmatprep.mubr.msk.bf16.mxu1 %vm7458_vm14, %v7457_v28 }
 0x897   : > { %v2044_v58 = vpop.f32.mrb[12].mxu1 }
 0x898   : > { %v2051_v59 = vsub.f32 %v2044_v58, %v7755_v37  ;;  %v6581_v60 = vpop.f32.mrb[13].mxu1 }
 0x899   : > { %v2047_v61 = vpop.f32.mrb[14].mxu1 }
 0x89a   : > { %v2053_v62 = vmul.f32 %v2051_v59, %v7757_v38  ;;  %v2052_v63 = vsub.f32 %v2047_v61, %v7760_v42  ;;  %v6582_v0 = vpop.f32.mrb[15].mxu1 }
 0x89c   : > { %v2054_v1 = vmul.f32 %v2052_v63, %v7764_v47  ;;  %v2055_v2 = vmax.f32 %v2053_v62, 0.0 }
 0x89e   : > { %v2056_v3 = vmax.f32 %v2054_v1, 0.0 }
 0x8a0   : > { %v2057_v4 = vpack.c.bf16 %v2056_v3, %v2055_v2 }
 0x8a2   : > { %6584 = vmatpush3.bf16.xpose.msra.mxu1 %v2057_v4  ;;  %6590 = vmatpush3.bf16.xpose.msra.mxu0 %v2057_v4 }
 0x8a3   : > { %6595 = vmatprep.subr.bf16.mxu0 %v7457_v28  ;;  %6601 = vmatprep.subr.bf16.mxu1 %v7457_v28 }
 0x8a9   : > { %6586 = vmatmul.mubr.bf16.vlgmr.msra.gmra.mrb[0].mxu1 %v2057_v4  ;;  %6592 = vmatmul.mubr.bf16.vlgmr.msra.gmra.mrb[4].mxu0 %v7460_v54 }
 0x8aa   : > { %6596 = vmatpush3.bf16.msra.mxu0 %v2151_v6  ;;  %6597 = vmatprep.mubr.msk.bf16.mxu0 %vm7458_vm14, %v7457_v28 }
 0x8ab   : > { %6607 = vmatprep.subr.bf16.mxu0 %v7457_v28  ;;  %6603 = vmatprep.mubr.msk.bf16.mxu1 %vm7458_vm14, %v7457_v28 }
 0x8b1   : > { %6598 = vmatmul.mubr.msk.bf16.vlgmr.msra.gmra.mrb[16].mxu0 %vm1262_vm15, %v7746_v35 }
 0x8b2   : > { %6609 = vmatprep.mubr.msk.bf16.mxu0 %vm7458_vm14, %v7457_v28 }
 0x984   : > { %v2187_v7 = vpop.f32.mrb[16].mxu0 }
 0x985   : > { %v2194_v8 = vsub.f32 %v2187_v7, %v7755_v37  ;;  %v6599_v9 = vpop.f32.mrb[17].mxu0 }
 0x986   : > { %v2190_v10 = vpop.f32.mrb[18].mxu0 }
 0x987   : > { %v2196_v11 = vmul.f32 %v2194_v8, %v7757_v38  ;;  %v2195_v12 = vsub.f32 %v2190_v10, %v7760_v42  ;;  %v6600_v13 = vpop.f32.mrb[19].mxu0 }
 0x989   : > { %v2197_v14 = vmul.f32 %v2195_v12, %v7764_v47  ;;  %v2198_v15 = vmax.f32 %v2196_v11, 0.0 }
 0x98b   : > { %v2199_v24 = vmax.f32 %v2197_v14, 0.0 }
 0x98d   : > { %v2200_v25 = vpack.c.bf16 %v2199_v24, %v2198_v15 }
 0x98f   : > { %6602 = vmatpush3.bf16.xpose.msra.mxu1 %v2200_v25  ;;  %6608 = vmatpush3.bf16.xpose.msra.mxu0 %v2200_v25 }
 0x990   : > { %6613 = vmatprep.subr.bf16.mxu1 %v7457_v28  ;;  %6625 = vmatprep.subr.bf16.mxu0 %v7457_v28 }
 0x996   : > { %6604 = vmatmul.mubr.bf16.vlgmr.msra.gmra.mrb[0].mxu1 %v2200_v25  ;;  %6610 = vmatmul.mubr.bf16.vlgmr.msra.gmra.mrb[4].mxu0 %v7460_v54 }
 0x997   : > { %6614 = vmatpush3.bf16.msra.mxu1 %v2294_v27  ;;  %6615 = vmatprep.mubr.msk.bf16.mxu1 %vm7458_vm14, %v7457_v28 }
 0x998   : > { %6619 = vmatprep.subr.bf16.mxu1 %v7457_v28  ;;  %6627 = vmatprep.mubr.msk.bf16.mxu0 %vm7458_vm14, %v7457_v28 }
 0x99e   : > { %6616 = vmatmul.mubr.msk.bf16.vlgmr.msra.gmra.mrb[16].mxu1 %vm1262_vm15, %v7746_v35  ;;  %v1249_v35 = vld [vmem:[#allocation6] sm:$0x1] }
 0x99f   : > { %6621 = vmatprep.mubr.msk.bf16.mxu1 %vm7458_vm14, %v7457_v28  ;;  %v1247_v28 = vld [vmem:[#allocation3] sm:$0xff] }
 0xa71   : > { %v2330_v29 = vpop.f32.mrb[16].mxu1 }
 0xa72   : > { %v2337_v30 = vsub.f32 %v2330_v29, %v7755_v37  ;;  %v6617_v31 = vpop.f32.mrb[17].mxu1 }
 0xa73   : > { %v2333_v32 = vpop.f32.mrb[18].mxu1 }
 0xa74   : > { %v2339_v33 = vmul.f32 %v2337_v30, %v7757_v38  ;;  %v2338_v34 = vsub.f32 %v2333_v32, %v7760_v42  ;;  %v6618_v36 = vpop.f32.mrb[19].mxu1  ;;  %v1248_v38 = vld [vmem:[#allocation3 + $0x8] sm:$0xff] }
 0xa76   : > { %v2340_v39 = vmul.f32 %v2338_v34, %v7764_v47  ;;  %v2341_v40 = vmax.f32 %v2339_v33, 0.0 }
 0xa78   : > { %v2342_v41 = vmax.f32 %v2340_v39, 0.0 }
 0xa7a   : > { %v2343_v43 = vpack.c.bf16 %v2342_v41, %v2341_v40 }
 0xa7c   : > { %6620 = vmatpush3.bf16.xpose.msra.mxu1 %v2343_v43  ;;  %6626 = vmatpush3.bf16.xpose.msra.mxu0 %v2343_v43 }
 0xa83   : > { %6622 = vmatmul.mubr.bf16.vlgmr.msra.gmra.mrb[0].mxu1 %v2343_v43  ;;  %6628 = vmatmul.mubr.bf16.vlgmr.msra.gmra.mrb[4].mxu0 %v7460_v54 }
 0xa84   : > { %6635 = vmatprep.mubr.msk.f32.mxu0 (!%p6054_p8), %vm2428_vm0, %v2437_v55 }
 0xb55   : > { %2436 = sbr.rel (%p6054_p8) target bundleno = 3303 (0xce7), region = 101 }
 0xb56   : > { %v2378_v37 = vpop.f32.mrb[0].mxu1  ;;  %v2421_v44 = vpop.f32.mrb[4].mxu0 }
 0xb57   : > { %v7057_v45 = vadd.f32 %v2378_v37, %v1247_v28  ;;  %v7059_v42 = vadd.f32 %v2421_v44, %v1249_v35  ;;  %v6623_v46 = vpop.f32.mrb[1].mxu1  ;;  %v6629_v48 = vpop.f32.mrb[5].mxu0 }
 0xb58   : > { %v2381_v47 = vpop.f32.mrb[2].mxu1  ;;  %v2424_v49 = vpop.f32.mrb[6].mxu0 }
 0xb59   : > { %2429 = vst.msk [vmem:[#allocation3] sm:$0xff] %vm2428_vm0, %v7057_v45  ;;  %v7058_v50 = vadd.f32 %v2381_v47, %v1248_v38  ;;  %v6624_v51 = vpop.f32.mrb[3].mxu1  ;;  %v6630_v52 = vpop.f32.mrb[7].mxu0 }
 0xb5a   : > { %2432 = vst.msk [vmem:[#allocation6] sm:$0x1] %vm2431_vm1, %v7059_v42 }
 0xb5b   : > { %2430 = vst.msk [vmem:[#allocation3 + $0x8] sm:$0xff] %vm2428_vm0, %v7058_v50 }
 0xb60   : > { %v2456_v54 = vld [vmem:[#allocation3] sm:$0xff] }
 0xb61   : > { %v6055_v58 = vld [vmem:[#allocation6] ss:$0 sm:$0xff] }
 0xb62   : > { %v2457_v53 = vld [vmem:[#allocation3 + $0x8] sm:$0xff]  ;;  %v2446_v59 = vmul.f32 %v6055_v58, %v2437_v55  ;;  %v2447_v61 = vmul.f32 %v6055_v58, %v2438_v57 }
 0xb63   : > { %v6990_v56 = vpack.c.bf16 %v2457_v53, %v2456_v54 }
 0xb64   : > { %v2448_v60 = vsel %vm2428_vm0, %v2446_v59, 0.0  ;;  %v2451_v62 = vsel %vm2428_vm0, %v2447_v61, 0.0 }
 0xb65   : > { %6991 = vmatprep.subr.bf16.mxu0 %v6990_v56  ;;  %2449 = vadd.xlane.f32.xlu0 %v2448_v60 }
 0xb66   : > { %6993 = vmatpush3.bf16.msra.mxu0 %v6990_v56 }
 0xb69   : > { %6636 = vmatmul.mubr.msk.f32.vlgmr.msra.gmra.mrb[0].mxu0 %vm2428_vm0, %v2438_v57  ;;  %2452 = vadd.xlane.f32.xlu0 %v2451_v62 }
 0xbf2   : > { %v2450_v5 = vpop.xlane.xlu0 %2449 }
 0xbf3   : > { %v2454_v6 = vmul.f32 0.00048828125, %v2450_v5 }
 0xbf5   : > { %2556 = vst.msk [vmem:[#allocation9] sm:$0xff] %vm2555_vm2, %v2454_v6  ;;  %v2549_v9 = vmul.f32 %v2454_v6, %v2454_v6 }
 0xbf6   : > { %v2453_v7 = vpop.xlane.xlu0 %2452 }
 0xbf7   : > { %v2455_v8 = vmul.f32 0.00048828125, %v2453_v7 }
 0xbf9   : > { %2557 = vst.msk [vmem:[#allocation9 + $0x8] sm:$0xff] %vm2555_vm2, %v2455_v8  ;;  %v2550_v13 = vmul.f32 %v2455_v8, %v2455_v8 }
 0xc3c   : > { %v6637_v63 = vpop.f32.mrb[0].mxu0 }
 0xc3d   : > { %v2530_v0 = vpop.f32.mrb[1].mxu0  ;;  %v2540_v2 = vmul.f32 %v6637_v63, %v2438_v57 }
 0xc3e   : > { %v2539_v1 = vmul.f32 %v2530_v0, %v2437_v55 }
 0xc3f   : > { %v2544_v4 = vsel %vm2428_vm0, %v2540_v2, 0.0 }
 0xc40   : > { %v2541_v3 = vsel %vm2428_vm0, %v2539_v1, 0.0 }
 0xc41   : > { %2542 = vadd.xlane.f32.xlu1 %v2541_v3 }
 0xc45   : > { %2545 = vadd.xlane.f32.xlu1 %v2544_v4 }
 0xcce   : > { %v2543_v10 = vpop.xlane.xlu1 %2542 }
 0xccf   : > { %v2547_v11 = vmul.f32 0.00048828125, %v2543_v10 }
 0xcd1   : > { %v2551_v12 = vsub.f32 %v2547_v11, %v2549_v9 }
 0xcd2   : > { %v2546_v14 = vpop.xlane.xlu1 %2545 }
 0xcd3   : > { %v2553_v15 = vmax.f32 %v2551_v12, 0.0  ;;  %v2548_v24 = vmul.f32 0.00048828125, %v2546_v14 }
 0xcd5   : > { %v2558_v25 = vadd.f32 1e-05, %v2553_v15  ;;  %v2552_v26 = vsub.f32 %v2548_v24, %v2550_v13 }
 0xcd7   : > { %7307 = vrsqrt.f32 %v2558_v25  ;;  %v2554_v27 = vmax.f32 %v2552_v26, 0.0 }
 0xcd9   : > { %v2559_v29 = vadd.f32 1e-05, %v2554_v27 }
 0xcdb   : > { %7309 = vrsqrt.f32 %v2559_v29 }
 0xce1   : > { %v7308_v30 = vpop.eup %7307 }
 0xce2   : > { %2563 = vst.msk [vmem:[#allocation9 + $0x10] sm:$0xff] %vm2555_vm2, %v7308_v30 }
 0xce5   : > { %v7310_v31 = vpop.eup %7309 }
 0xce6   : > { %2564 = vst.msk [vmem:[#allocation9 + $0x18] sm:$0xff] %vm2555_vm2, %v7310_v31 }
 0xce7 PF: > { %p6058_p9 = scmp.ne.s32.totalorder %s7429_s19, 2 }
 0xce8   : > { %p6059_p11 = scmp.ne.s32.totalorder (!%p6058_p9), %s7425_s18, 0 }
 0xce9   : > { %2568 = sbr.rel (%p6058_p9) target bundleno = 7626 (0x1dca), region = 105 }
 0xcf0   : > { %2572 = sbr.rel (%p6059_p11) target bundleno = 3319 (0xcf7), region = 109  ;;  %vm2573_vm3 = vcmask (!%p6059_p11), 130048   ;;  %vm2576_vm4 = vcmask (!%p6059_p11), 122880   ;;  %v7461_v32 = vmov (!%p6059_p11), 0.0  }
 0xcf1   : > { %2574 = vst.msk [vmem:[#allocation4] sm:$0xff] (!%p6059_p11), %vm2573_vm3, %v7461_v32  ;;  %2575 = vst.msk [vmem:[#allocation4 + $0x8] sm:$0xff] (!%p6059_p11), %vm2573_vm3, %v7461_v32 }
 0xcf2   : > { %2577 = vst.msk [vmem:[#allocation7] sm:$0x1] (!%p6059_p11), %vm2576_vm4, %v7461_v32 }
 0xcf7 PF: > { %vm2597_vm5 = vcmask 1044480   ;;  %v7462_v33 = vmov 0.0   ;;  %v7313_v34 = vld [vmem:[%s7660_s8] sm:$0x1f]   ;;  %vm7463_vm6 = vmmov 0   ;;  %v7464_v39 = vmov 0  }
 0xcf8   : > { %6638 = vmatprep.subr.bf16.mxu0 %v7462_v33  ;;  %v2642_v36 = vld [vmem:[#allocation8] sm:$0xff]  ;;  %6644 = vmatprep.subr.bf16.mxu1 %v7462_v33  ;;  %v2657_v40 = vld [vmem:[#allocation8 + $0x10] sm:$0xff]  ;;  %v2599_v41 = vsel %vm2597_vm5, %v7313_v34, 0  ;;  %v7919_v43 = vcombine.low %v7621_v16, %v7626_v17  ;;  %v2643_v28 = vld [vmem:[#allocation8 + $0x8] sm:$0xff]  ;;  %vm2593_vm7 = vcmask 80896   ;;  %v7942_v60 = vcombine.low %v7633_v18, %v7638_v19  ;;  %p6100_p12 = scmp.ne.s32.totalorder %s7425_s18, 1 }
 0xcf9   : > { %6640 = vmatprep.mubr.msk.bf16.mxu0 %vm7463_vm6, %v7462_v33  ;;  %7311 = vset.pattern.permute.xlu0 %v7464_v39  ;;  %v2658_v35 = vld [vmem:[#allocation8 + $0x18] sm:$0xff]  ;;  %v2724_v37 = vld [vmem:[#allocation9] sm:$0xff]  ;;  %v2725_v44 = vld [vmem:[#allocation9 + $0x8] sm:$0xff]  ;;  %vm2679_vm8 = vcmask 130048   ;;  %v7465_v14 = vmov 1065369472  }
 0xcfa   : > { %2646 = vperm.xlu0 %7311, %v2642_v36   ;;  %7312 = vset.pattern.permute.xlu1 %v7464_v39  ;;  %v2739_v38 = vld [vmem:[#allocation9 + $0x10] sm:$0xff]  ;;  %v2740_v45 = vld [vmem:[#allocation9 + $0x18] sm:$0xff]  ;;  %v7314_v12 = vld [vmem:[%s7660_s8 + $0x8] sm:$0x1f]   ;;  %vm4179_vm9 = vcmask 122880   ;;  %vm4347_vm10 = vcmask (!%p6100_p12), 7168  }
 0xcfb   : > { %6639 = vmatpush3.bf16.msra.mxu0 %v2599_v41  ;;  %2661 = vperm.xlu1 %7312, %v2657_v40   ;;  %v2849_v13 = vsel %vm2597_vm5, %v7314_v12, 0 }
 0xcfc   : > { %6646 = vmatprep.mubr.msk.bf16.mxu1 %vm7463_vm6, %v7462_v33  ;;  %6650 = vmatprep.subr.bf16.mxu0 %v7462_v33 }
 0xcfe   : > { %6641 = vmatmul.mubr.msk.bf16.vlgmr.msra.gmra.mrb[0].mxu0 %vm2593_vm7, %v7919_v43  ;;  %2651 = vperm.xlu0 %7311, %v2643_v28  }
 0xcff   : > { %2666 = vperm.xlu1 %7312, %v2658_v35   ;;  %6652 = vmatprep.mubr.msk.bf16.mxu0 %vm7463_vm6, %v7462_v33 }
 0xd02   : > { %2728 = vperm.xlu0 %7311, %v2724_v37  }
 0xd03   : > { %2733 = vperm.xlu1 %7312, %v2725_v44  }
 0xd06   : > { %2743 = vperm.xlu0 %7311, %v2739_v38  }
 0xd07   : > { %2748 = vperm.xlu1 %7312, %v2740_v45  }
 0xd79   : > { %v7928_v42 = vpop.permute.xlu0 %2646 }
 0xd7a   : > { %v7930_v46 = vpop.permute.xlu1 %2661 }
 0xd7d   : > { %v7933_v50 = vpop.permute.xlu0 %2651 }
 0xd7e   : > { %v7937_v55 = vpop.permute.xlu1 %2666 }
 0xd81   : > { %v7949_v61 = vpop.permute.xlu0 %2728 }
 0xd82   : > { %v7951_v62 = vpop.permute.xlu1 %2733 }
 0xd85   : > { %v7954_v2 = vpop.permute.xlu0 %2743 }
 0xd86   : > { %v7958_v7 = vpop.permute.xlu1 %2748 }
 0xdd1   : > { %v2635_v48 = vpop.f32.mrb[0].mxu0 }
 0xdd2   : > { %v2654_v47 = vsub.f32 %v2635_v48, %v7928_v42  ;;  %v6642_v49 = vpop.f32.mrb[1].mxu0 }
 0xdd3   : > { %v2638_v51 = vpop.f32.mrb[2].mxu0  ;;  %v7315_v49 = vld [vmem:[%s7660_s8 + $0x10] sm:$0x1f]  }
 0xdd4   : > { %v2669_v52 = vmul.f32 %v7930_v46, %v2654_v47  ;;  %v2655_v54 = vsub.f32 %v2638_v51, %v7933_v50  ;;  %v6643_v53 = vpop.f32.mrb[3].mxu0  ;;  %v3040_v51 = vsel %vm2597_vm5, %v7315_v49, 0 }
 0xdd6   : > { %v2670_v56 = vmul.f32 %v7937_v55, %v2655_v54  ;;  %v2671_v57 = vmax.f32 %v2669_v52, 0.0 }
 0xdd8   : > { %v2672_v58 = vmax.f32 %v2670_v56, 0.0 }
 0xdda   : > { %v2673_v59 = vpack.c.bf16 %v2672_v58, %v2671_v57 }
 0xddc   : > { %6645 = vmatpush3.bf16.msra.mxu1 %v2673_v59 }
 0xddd   : > { %6656 = vmatprep.subr.bf16.mxu1 %v7462_v33 }
 0xddf   : > { %6647 = vmatmul.mubr.msk.bf16.vlgmr.msra.gmra.mrb[0].mxu1 %vm2679_vm8, %v7942_v60 }
 0xde0   : > { %6658 = vmatprep.mubr.msk.bf16.mxu1 %vm7463_vm6, %v7462_v33 }
 0xeb2   : > { %v2717_v63 = vpop.f32.mrb[0].mxu1 }
 0xeb3   : > { %v2736_v0 = vsub.f32 %v2717_v63, %v7949_v61  ;;  %v6648_v1 = vpop.f32.mrb[1].mxu1 }
 0xeb4   : > { %v2720_v3 = vpop.f32.mrb[2].mxu1 }
 0xeb5   : > { %v2751_v4 = vmul.f32 %v7954_v2, %v2736_v0  ;;  %v2737_v5 = vsub.f32 %v2720_v3, %v7951_v62  ;;  %v6649_v6 = vpop.f32.mrb[3].mxu1 }
 0xeb7   : > { %v2752_v8 = vmul.f32 %v7958_v7, %v2737_v5  ;;  %v2753_v9 = vmax.f32 %v2751_v4, 0.0 }
 0xeb9   : > { %v2754_v10 = vmax.f32 %v2752_v8, 0.0 }
 0xebb   : > { %v2755_v11 = vpack.c.bf16 %v2754_v10, %v2753_v9 }
 0xebd   : > { %6651 = vmatpush3.bf16.xpose.msra.mxu0 %v2755_v11  ;;  %6657 = vmatpush3.bf16.xpose.msra.mxu1 %v2755_v11 }
 0xebe   : > { %6662 = vmatprep.subr.bf16.mxu0 %v7462_v33  ;;  %6668 = vmatprep.subr.bf16.mxu1 %v7462_v33 }
 0xec4   : > { %6653 = vmatmul.mubr.bf16.vlgmr.msra.gmra.mrb[4].mxu0 %v2755_v11  ;;  %6659 = vmatmul.mubr.bf16.vlgmr.msra.gmra.mrb[4].mxu1 %v7465_v14 }
 0xec5   : > { %6663 = vmatpush3.bf16.msra.mxu0 %v2849_v13  ;;  %6664 = vmatprep.mubr.msk.bf16.mxu0 %vm7463_vm6, %v7462_v33 }
 0xec6   : > { %6674 = vmatprep.subr.bf16.mxu0 %v7462_v33  ;;  %6670 = vmatprep.mubr.msk.bf16.mxu1 %vm7463_vm6, %v7462_v33 }
 0xecc   : > { %6665 = vmatmul.mubr.msk.bf16.vlgmr.msra.gmra.mrb[8].mxu0 %vm2593_vm7, %v7919_v43 }
 0xecd   : > { %6676 = vmatprep.mubr.msk.bf16.mxu0 %vm7463_vm6, %v7462_v33 }
 0xf9f   : > { %v2885_v15 = vpop.f32.mrb[8].mxu0 }
 0xfa0   : > { %v2892_v24 = vsub.f32 %v2885_v15, %v7928_v42  ;;  %v6666_v25 = vpop.f32.mrb[9].mxu0 }
 0xfa1   : > { %v2888_v26 = vpop.f32.mrb[10].mxu0  ;;  %v7316_v25 = vld [vmem:[%s7660_s8 + $0x18] sm:$0x1f]  }
 0xfa2   : > { %v2894_v27 = vmul.f32 %v2892_v24, %v7930_v46  ;;  %v2893_v29 = vsub.f32 %v2888_v26, %v7933_v50  ;;  %v6667_v30 = vpop.f32.mrb[11].mxu0  ;;  %v3231_v26 = vsel %vm2597_vm5, %v7316_v25, 0 }
 0xfa4   : > { %v2895_v31 = vmul.f32 %v2893_v29, %v7937_v55  ;;  %v2896_v32 = vmax.f32 %v2894_v27, 0.0 }
 0xfa6   : > { %v2897_v34 = vmax.f32 %v2895_v31, 0.0 }
 0xfa8   : > { %v2898_v36 = vpack.c.bf16 %v2897_v34, %v2896_v32 }
 0xfaa   : > { %6669 = vmatpush3.bf16.msra.mxu1 %v2898_v36 }
 0xfab   : > { %6680 = vmatprep.subr.bf16.mxu1 %v7462_v33 }
 0xfad   : > { %6671 = vmatmul.mubr.msk.bf16.vlgmr.msra.gmra.mrb[8].mxu1 %vm2679_vm8, %v7942_v60 }
 0xfae   : > { %6682 = vmatprep.mubr.msk.bf16.mxu1 %vm7463_vm6, %v7462_v33 }
0x1080   : > { %v2933_v39 = vpop.f32.mrb[8].mxu1 }
0x1081   : > { %v2940_v40 = vsub.f32 %v2933_v39, %v7949_v61  ;;  %v6672_v41 = vpop.f32.mrb[9].mxu1 }
0x1082   : > { %v2936_v28 = vpop.f32.mrb[10].mxu1 }
0x1083   : > { %v2942_v35 = vmul.f32 %v2940_v40, %v7954_v2  ;;  %v2941_v37 = vsub.f32 %v2936_v28, %v7951_v62  ;;  %v6673_v44 = vpop.f32.mrb[11].mxu1 }
0x1085   : > { %v2943_v38 = vmul.f32 %v2941_v37, %v7958_v7  ;;  %v2944_v45 = vmax.f32 %v2942_v35, 0.0 }
0x1087   : > { %v2945_v48 = vmax.f32 %v2943_v38, 0.0 }
0x1089   : > { %v2946_v47 = vpack.c.bf16 %v2945_v48, %v2944_v45 }
0x108b   : > { %6675 = vmatpush3.bf16.xpose.msra.mxu0 %v2946_v47  ;;  %6681 = vmatpush3.bf16.xpose.msra.mxu1 %v2946_v47 }
0x108c   : > { %6686 = vmatprep.subr.bf16.mxu0 %v7462_v33  ;;  %6692 = vmatprep.subr.bf16.mxu1 %v7462_v33 }
0x1092   : > { %6677 = vmatmul.mubr.bf16.vlgmr.msra.gmra.mrb[4].mxu0 %v2946_v47  ;;  %6683 = vmatmul.mubr.bf16.vlgmr.msra.gmra.mrb[4].mxu1 %v7465_v14 }
0x1093   : > { %6687 = vmatpush3.bf16.msra.mxu0 %v3040_v51  ;;  %6688 = vmatprep.mubr.msk.bf16.mxu0 %vm7463_vm6, %v7462_v33 }
0x1094   : > { %6694 = vmatprep.mubr.msk.bf16.mxu1 %vm7463_vm6, %v7462_v33  ;;  %6698 = vmatprep.subr.bf16.mxu0 %v7462_v33 }
0x109a   : > { %6689 = vmatmul.mubr.msk.bf16.vlgmr.msra.gmra.mrb[12].mxu0 %vm2593_vm7, %v7919_v43 }
0x109b   : > { %6700 = vmatprep.mubr.msk.bf16.mxu0 %vm7463_vm6, %v7462_v33 }
0x116d   : > { %v3076_v52 = vpop.f32.mrb[12].mxu0 }
0x116e   : > { %v3083_v54 = vsub.f32 %v3076_v52, %v7928_v42  ;;  %v6690_v53 = vpop.f32.mrb[13].mxu0 }
0x116f   : > { %v3079_v56 = vpop.f32.mrb[14].mxu0  ;;  %v7317_v53 = vld [vmem:[%s7660_s8 + $0x20] sm:$0x1f]  }
0x1170   : > { %v3085_v57 = vmul.f32 %v3083_v54, %v7930_v46  ;;  %v3084_v58 = vsub.f32 %v3079_v56, %v7933_v50  ;;  %v6691_v59 = vpop.f32.mrb[15].mxu0  ;;  %v3422_v56 = vsel %vm2597_vm5, %v7317_v53, 0 }
0x1172   : > { %v3086_v63 = vmul.f32 %v3084_v58, %v7937_v55  ;;  %v3087_v0 = vmax.f32 %v3085_v57, 0.0 }
0x1174   : > { %v3088_v1 = vmax.f32 %v3086_v63, 0.0 }
0x1176   : > { %v3089_v3 = vpack.c.bf16 %v3088_v1, %v3087_v0 }
0x1178   : > { %6693 = vmatpush3.bf16.msra.mxu1 %v3089_v3 }
0x1179   : > { %6704 = vmatprep.subr.bf16.mxu1 %v7462_v33 }
0x117b   : > { %6695 = vmatmul.mubr.msk.bf16.vlgmr.msra.gmra.mrb[12].mxu1 %vm2679_vm8, %v7942_v60 }
0x117c   : > { %6706 = vmatprep.mubr.msk.bf16.mxu1 %vm7463_vm6, %v7462_v33 }
0x124e   : > { %v3124_v4 = vpop.f32.mrb[12].mxu1 }
0x124f   : > { %v3131_v5 = vsub.f32 %v3124_v4, %v7949_v61  ;;  %v6696_v6 = vpop.f32.mrb[13].mxu1 }
0x1250   : > { %v3127_v8 = vpop.f32.mrb[14].mxu1 }
0x1251   : > { %v3133_v9 = vmul.f32 %v3131_v5, %v7954_v2  ;;  %v3132_v10 = vsub.f32 %v3127_v8, %v7951_v62  ;;  %v6697_v11 = vpop.f32.mrb[15].mxu1 }
0x1253   : > { %v3134_v12 = vmul.f32 %v3132_v10, %v7958_v7  ;;  %v3135_v13 = vmax.f32 %v3133_v9, 0.0 }
0x1255   : > { %v3136_v15 = vmax.f32 %v3134_v12, 0.0 }
0x1257   : > { %v3137_v24 = vpack.c.bf16 %v3136_v15, %v3135_v13 }
0x1259   : > { %6699 = vmatpush3.bf16.xpose.msra.mxu0 %v3137_v24  ;;  %6705 = vmatpush3.bf16.xpose.msra.mxu1 %v3137_v24 }
0x125a   : > { %6710 = vmatprep.subr.bf16.mxu0 %v7462_v33  ;;  %6716 = vmatprep.subr.bf16.mxu1 %v7462_v33 }
0x1260   : > { %6701 = vmatmul.mubr.bf16.vlgmr.msra.gmra.mrb[4].mxu0 %v3137_v24  ;;  %6707 = vmatmul.mubr.bf16.vlgmr.msra.gmra.mrb[4].mxu1 %v7465_v14 }
0x1261   : > { %6711 = vmatpush3.bf16.msra.mxu0 %v3231_v26  ;;  %6712 = vmatprep.mubr.msk.bf16.mxu0 %vm7463_vm6, %v7462_v33 }
0x1262   : > { %6718 = vmatprep.mubr.msk.bf16.mxu1 %vm7463_vm6, %v7462_v33  ;;  %6722 = vmatprep.subr.bf16.mxu0 %v7462_v33 }
0x1268   : > { %6713 = vmatmul.mubr.msk.bf16.vlgmr.msra.gmra.mrb[16].mxu0 %vm2593_vm7, %v7919_v43 }
0x1269   : > { %6724 = vmatprep.mubr.msk.bf16.mxu0 %vm7463_vm6, %v7462_v33 }
0x133b   : > { %v3267_v27 = vpop.f32.mrb[16].mxu0 }
0x133c   : > { %v3274_v29 = vsub.f32 %v3267_v27, %v7928_v42  ;;  %v6714_v30 = vpop.f32.mrb[17].mxu0 }
0x133d   : > { %v3270_v31 = vpop.f32.mrb[18].mxu0  ;;  %v7318_v30 = vld [vmem:[%s7660_s8 + $0x28] sm:$0x1f]  }
0x133e   : > { %v3276_v32 = vmul.f32 %v3274_v29, %v7930_v46  ;;  %v3275_v34 = vsub.f32 %v3270_v31, %v7933_v50  ;;  %v6715_v36 = vpop.f32.mrb[19].mxu0  ;;  %v3613_v31 = vsel %vm2597_vm5, %v7318_v30, 0 }
0x1340   : > { %v3277_v39 = vmul.f32 %v3275_v34, %v7937_v55  ;;  %v3278_v40 = vmax.f32 %v3276_v32, 0.0 }
0x1342   : > { %v3279_v41 = vmax.f32 %v3277_v39, 0.0 }
0x1344   : > { %v3280_v28 = vpack.c.bf16 %v3279_v41, %v3278_v40 }
0x1346   : > { %6717 = vmatpush3.bf16.msra.mxu1 %v3280_v28 }
0x1347   : > { %6728 = vmatprep.subr.bf16.mxu1 %v7462_v33 }
0x1349   : > { %6719 = vmatmul.mubr.msk.bf16.vlgmr.msra.gmra.mrb[16].mxu1 %vm2679_vm8, %v7942_v60 }
0x134a   : > { %6730 = vmatprep.mubr.msk.bf16.mxu1 %vm7463_vm6, %v7462_v33 }
0x141c   : > { %v3315_v35 = vpop.f32.mrb[16].mxu1 }
0x141d   : > { %v3322_v37 = vsub.f32 %v3315_v35, %v7949_v61  ;;  %v6720_v44 = vpop.f32.mrb[17].mxu1 }
0x141e   : > { %v3318_v38 = vpop.f32.mrb[18].mxu1 }
0x141f   : > { %v3324_v45 = vmul.f32 %v3322_v37, %v7954_v2  ;;  %v3323_v48 = vsub.f32 %v3318_v38, %v7951_v62  ;;  %v6721_v47 = vpop.f32.mrb[19].mxu1 }
0x1421   : > { %v3325_v49 = vmul.f32 %v3323_v48, %v7958_v7  ;;  %v3326_v51 = vmax.f32 %v3324_v45, 0.0 }
0x1423   : > { %v3327_v52 = vmax.f32 %v3325_v49, 0.0 }
0x1425   : > { %v3328_v54 = vpack.c.bf16 %v3327_v52, %v3326_v51 }
0x1427   : > { %6723 = vmatpush3.bf16.xpose.msra.mxu0 %v3328_v54  ;;  %6729 = vmatpush3.bf16.xpose.msra.mxu1 %v3328_v54 }
0x1428   : > { %6734 = vmatprep.subr.bf16.mxu0 %v7462_v33  ;;  %6740 = vmatprep.subr.bf16.mxu1 %v7462_v33 }
0x142e   : > { %6725 = vmatmul.mubr.bf16.vlgmr.msra.gmra.mrb[4].mxu0 %v3328_v54  ;;  %6731 = vmatmul.mubr.bf16.vlgmr.msra.gmra.mrb[4].mxu1 %v7465_v14 }
0x142f   : > { %6735 = vmatpush3.bf16.msra.mxu0 %v3422_v56  ;;  %6736 = vmatprep.mubr.msk.bf16.mxu0 %vm7463_vm6, %v7462_v33 }
0x1430   : > { %6742 = vmatprep.mubr.msk.bf16.mxu1 %vm7463_vm6, %v7462_v33  ;;  %6746 = vmatprep.subr.bf16.mxu0 %v7462_v33 }
0x1436   : > { %6737 = vmatmul.mubr.msk.bf16.vlgmr.msra.gmra.mrb[20].mxu0 %vm2593_vm7, %v7919_v43 }
0x1437   : > { %6748 = vmatprep.mubr.msk.bf16.mxu0 %vm7463_vm6, %v7462_v33 }
0x1509   : > { %v3458_v57 = vpop.f32.mrb[20].mxu0 }
0x150a   : > { %v3465_v58 = vsub.f32 %v3458_v57, %v7928_v42  ;;  %v6738_v59 = vpop.f32.mrb[21].mxu0 }
0x150b   : > { %v3461_v63 = vpop.f32.mrb[22].mxu0  ;;  %v7319_v59 = vld [vmem:[%s7660_s8 + $0x30] sm:$0x1f]  }
0x150c   : > { %v3467_v0 = vmul.f32 %v3465_v58, %v7930_v46  ;;  %v3466_v1 = vsub.f32 %v3461_v63, %v7933_v50  ;;  %v6739_v3 = vpop.f32.mrb[23].mxu0  ;;  %v3804_v63 = vsel %vm2597_vm5, %v7319_v59, 0  ;;  %v2579_v59 = vld [vmem:[#allocation4 + $0x8] sm:$0xff] }
0x150e   : > { %v3468_v4 = vmul.f32 %v3466_v1, %v7937_v55  ;;  %v3469_v5 = vmax.f32 %v3467_v0, 0.0 }
0x1510   : > { %v3470_v6 = vmax.f32 %v3468_v4, 0.0 }
0x1512   : > { %v3471_v8 = vpack.c.bf16 %v3470_v6, %v3469_v5 }
0x1514   : > { %6741 = vmatpush3.bf16.msra.mxu1 %v3471_v8 }
0x1515   : > { %6752 = vmatprep.subr.bf16.mxu1 %v7462_v33 }
0x1517   : > { %6743 = vmatmul.mubr.msk.bf16.vlgmr.msra.gmra.mrb[20].mxu1 %vm2679_vm8, %v7942_v60 }
0x1518   : > { %6754 = vmatprep.mubr.msk.bf16.mxu1 %vm7463_vm6, %v7462_v33 }
0x15ea   : > { %v3506_v9 = vpop.f32.mrb[20].mxu1 }
0x15eb   : > { %v3513_v10 = vsub.f32 %v3506_v9, %v7949_v61  ;;  %v6744_v11 = vpop.f32.mrb[21].mxu1 }
0x15ec   : > { %v3509_v12 = vpop.f32.mrb[22].mxu1 }
0x15ed   : > { %v3515_v13 = vmul.f32 %v3513_v10, %v7954_v2  ;;  %v3514_v15 = vsub.f32 %v3509_v12, %v7951_v62  ;;  %v6745_v24 = vpop.f32.mrb[23].mxu1 }
0x15ef   : > { %v3516_v25 = vmul.f32 %v3514_v15, %v7958_v7  ;;  %v3517_v26 = vmax.f32 %v3515_v13, 0.0 }
0x15f1   : > { %v3518_v27 = vmax.f32 %v3516_v25, 0.0 }
0x15f3   : > { %v3519_v29 = vpack.c.bf16 %v3518_v27, %v3517_v26 }
0x15f5   : > { %6747 = vmatpush3.bf16.xpose.msra.mxu0 %v3519_v29  ;;  %6753 = vmatpush3.bf16.xpose.msra.mxu1 %v3519_v29 }
0x15f6   : > { %6758 = vmatprep.subr.bf16.mxu0 %v7462_v33  ;;  %6764 = vmatprep.subr.bf16.mxu1 %v7462_v33 }
0x15fc   : > { %6749 = vmatmul.mubr.bf16.vlgmr.msra.gmra.mrb[4].mxu0 %v3519_v29  ;;  %6755 = vmatmul.mubr.bf16.vlgmr.msra.gmra.mrb[4].mxu1 %v7465_v14 }
0x15fd   : > { %6759 = vmatpush3.bf16.msra.mxu0 %v3613_v31  ;;  %6760 = vmatprep.mubr.msk.bf16.mxu0 %vm7463_vm6, %v7462_v33 }
0x15fe   : > { %6766 = vmatprep.mubr.msk.bf16.mxu1 %vm7463_vm6, %v7462_v33  ;;  %6770 = vmatprep.subr.bf16.mxu0 %v7462_v33 }
0x1604   : > { %6761 = vmatmul.mubr.msk.bf16.vlgmr.msra.gmra.mrb[24].mxu0 %vm2593_vm7, %v7919_v43 }
0x1605   : > { %6772 = vmatprep.mubr.msk.bf16.mxu0 %vm7463_vm6, %v7462_v33 }
0x16d7   : > { %v3649_v32 = vpop.f32.mrb[24].mxu0 }
0x16d8   : > { %v3656_v34 = vsub.f32 %v3649_v32, %v7928_v42  ;;  %v6762_v36 = vpop.f32.mrb[25].mxu0 }
0x16d9   : > { %v3652_v39 = vpop.f32.mrb[26].mxu0  ;;  %v7320_v36 = vld [vmem:[%s7660_s8 + $0x38] sm:$0x1f]  }
0x16da   : > { %v3658_v40 = vmul.f32 %v3656_v34, %v7930_v46  ;;  %v3657_v41 = vsub.f32 %v3652_v39, %v7933_v50  ;;  %v6763_v28 = vpop.f32.mrb[27].mxu0  ;;  %v3995_v39 = vsel %vm2597_vm5, %v7320_v36, 0 }
0x16dc   : > { %v3659_v35 = vmul.f32 %v3657_v41, %v7937_v55  ;;  %v3660_v37 = vmax.f32 %v3658_v40, 0.0 }
0x16de   : > { %v3661_v44 = vmax.f32 %v3659_v35, 0.0 }
0x16e0   : > { %v3662_v38 = vpack.c.bf16 %v3661_v44, %v3660_v37 }
0x16e2   : > { %6765 = vmatpush3.bf16.msra.mxu1 %v3662_v38 }
0x16e3   : > { %6776 = vmatprep.subr.bf16.mxu1 %v7462_v33 }
0x16e5   : > { %6767 = vmatmul.mubr.msk.bf16.vlgmr.msra.gmra.mrb[24].mxu1 %vm2679_vm8, %v7942_v60 }
0x16e6   : > { %6778 = vmatprep.mubr.msk.bf16.mxu1 %vm7463_vm6, %v7462_v33 }
0x17b8   : > { %v3697_v45 = vpop.f32.mrb[24].mxu1 }
0x17b9   : > { %v3704_v48 = vsub.f32 %v3697_v45, %v7949_v61  ;;  %v6768_v47 = vpop.f32.mrb[25].mxu1 }
0x17ba   : > { %v3700_v49 = vpop.f32.mrb[26].mxu1 }
0x17bb   : > { %v3706_v51 = vmul.f32 %v3704_v48, %v7954_v2  ;;  %v3705_v52 = vsub.f32 %v3700_v49, %v7951_v62  ;;  %v6769_v54 = vpop.f32.mrb[27].mxu1 }
0x17bd   : > { %v3707_v53 = vmul.f32 %v3705_v52, %v7958_v7  ;;  %v3708_v56 = vmax.f32 %v3706_v51, 0.0 }
0x17bf   : > { %v3709_v57 = vmax.f32 %v3707_v53, 0.0 }
0x17c1   : > { %v3710_v58 = vpack.c.bf16 %v3709_v57, %v3708_v56 }
0x17c3   : > { %6771 = vmatpush3.bf16.xpose.msra.mxu0 %v3710_v58  ;;  %6777 = vmatpush3.bf16.xpose.msra.mxu1 %v3710_v58 }
0x17c4   : > { %6782 = vmatprep.subr.bf16.mxu0 %v7462_v33  ;;  %6788 = vmatprep.subr.bf16.mxu1 %v7462_v33 }
0x17ca   : > { %6773 = vmatmul.mubr.bf16.vlgmr.msra.gmra.mrb[4].mxu0 %v3710_v58  ;;  %6779 = vmatmul.mubr.bf16.vlgmr.msra.gmra.mrb[4].mxu1 %v7465_v14 }
0x17cb   : > { %6783 = vmatpush3.bf16.msra.mxu0 %v3804_v63  ;;  %6784 = vmatprep.mubr.msk.bf16.mxu0 %vm7463_vm6, %v7462_v33 }
0x17cc   : > { %6790 = vmatprep.mubr.msk.bf16.mxu1 %vm7463_vm6, %v7462_v33  ;;  %6794 = vmatprep.subr.bf16.mxu0 %v7462_v33 }
0x17d2   : > { %6785 = vmatmul.mubr.msk.bf16.vlgmr.msra.gmra.mrb[28].mxu0 %vm2593_vm7, %v7919_v43 }
0x17d3   : > { %6796 = vmatprep.mubr.msk.bf16.mxu0 %vm7463_vm6, %v7462_v33 }
0x18a5   : > { %v3840_v0 = vpop.f32.mrb[28].mxu0 }
0x18a6   : > { %v3847_v1 = vsub.f32 %v3840_v0, %v7928_v42  ;;  %v6786_v3 = vpop.f32.mrb[29].mxu0 }
0x18a7   : > { %v3843_v4 = vpop.f32.mrb[30].mxu0 }
0x18a8   : > { %v3849_v5 = vmul.f32 %v3847_v1, %v7930_v46  ;;  %v3848_v6 = vsub.f32 %v3843_v4, %v7933_v50  ;;  %v6787_v8 = vpop.f32.mrb[31].mxu0 }
0x18a9   : > { %v4185_v8 = vunpack.c.l.bf16 (!%p6100_p12), %v7643_v20 }
0x18aa   : > { %v3850_v9 = vmul.f32 %v3848_v6, %v7937_v55  ;;  %v3851_v10 = vmax.f32 %v3849_v5, 0.0 }
0x18ac   : > { %v3852_v11 = vmax.f32 %v3850_v9, 0.0  ;;  %v4187_v9 = vunpack.c.l.bf16 (!%p6100_p12), %v7653_v22 }
0x18ae   : > { %v3853_v12 = vpack.c.bf16 %v3852_v11, %v3851_v10  ;;  %v4188_v10 = vunpack.c.l.bf16 (!%p6100_p12), %v7658_v23 }
0x18b0   : > { %6789 = vmatpush3.bf16.msra.mxu1 %v3853_v12 }
0x18b1   : > { %6800 = vmatprep.subr.bf16.mxu1 %v7462_v33 }
0x18b3   : > { %6791 = vmatmul.mubr.msk.bf16.vlgmr.msra.gmra.mrb[28].mxu1 %vm2679_vm8, %v7942_v60 }
0x18b4   : > { %6802 = vmatprep.mubr.msk.bf16.mxu1 %vm7463_vm6, %v7462_v33 }
0x1986   : > { %v3888_v13 = vpop.f32.mrb[28].mxu1 }
0x1987   : > { %v3895_v15 = vsub.f32 %v3888_v13, %v7949_v61  ;;  %v6792_v24 = vpop.f32.mrb[29].mxu1 }
0x1988   : > { %v3891_v25 = vpop.f32.mrb[30].mxu1 }
0x1989   : > { %v3897_v26 = vmul.f32 %v3895_v15, %v7954_v2  ;;  %v3896_v27 = vsub.f32 %v3891_v25, %v7951_v62  ;;  %v6793_v29 = vpop.f32.mrb[31].mxu1  ;;  %v4186_v25 = vunpack.c.l.bf16 (!%p6100_p12), %v7648_v21 }
0x198b   : > { %v3898_v30 = vmul.f32 %v3896_v27, %v7958_v7  ;;  %v3899_v31 = vmax.f32 %v3897_v26, 0.0 }
0x198d   : > { %v3900_v32 = vmax.f32 %v3898_v30, 0.0 }
0x198f   : > { %v3901_v34 = vpack.c.bf16 %v3900_v32, %v3899_v31 }
0x1991   : > { %6795 = vmatpush3.bf16.xpose.msra.mxu0 %v3901_v34  ;;  %6801 = vmatpush3.bf16.xpose.msra.mxu1 %v3901_v34 }
0x1992   : > { %6806 = vmatprep.subr.bf16.mxu0 %v7462_v33  ;;  %6812 = vmatprep.subr.bf16.mxu1 %v7462_v33 }
0x1998   : > { %6797 = vmatmul.mubr.bf16.vlgmr.msra.gmra.mrb[4].mxu0 %v3901_v34  ;;  %6803 = vmatmul.mubr.bf16.vlgmr.msra.gmra.mrb[4].mxu1 %v7465_v14 }
0x1999   : > { %6807 = vmatpush3.bf16.msra.mxu0 %v3995_v39  ;;  %6808 = vmatprep.mubr.msk.bf16.mxu0 %vm7463_vm6, %v7462_v33 }
0x199a   : > { %6814 = vmatprep.mubr.msk.bf16.mxu1 %vm7463_vm6, %v7462_v33  ;;  %6818 = vmatprep.subr.bf16.mxu0 %v7462_v33 }
0x19a0   : > { %6809 = vmatmul.mubr.msk.bf16.vlgmr.msra.gmra.mrb[32].mxu0 %vm2593_vm7, %v7919_v43 }
0x19a1   : > { %6820 = vmatprep.mubr.msk.bf16.mxu0 %vm7463_vm6, %v7462_v33 }
0x1a73   : > { %v4031_v40 = vpop.f32.mrb[32].mxu0 }
0x1a74   : > { %v4038_v41 = vsub.f32 %v4031_v40, %v7928_v42  ;;  %v6810_v28 = vpop.f32.mrb[33].mxu0 }
0x1a75   : > { %v4034_v35 = vpop.f32.mrb[34].mxu0 }
0x1a76   : > { %v4040_v37 = vmul.f32 %v4038_v41, %v7930_v46  ;;  %v4039_v44 = vsub.f32 %v4034_v35, %v7933_v50  ;;  %v6811_v38 = vpop.f32.mrb[35].mxu0 }
0x1a78   : > { %v4041_v45 = vmul.f32 %v4039_v44, %v7937_v55  ;;  %v4042_v48 = vmax.f32 %v4040_v37, 0.0 }
0x1a7a   : > { %v4043_v47 = vmax.f32 %v4041_v45, 0.0 }
0x1a7c   : > { %v4044_v49 = vpack.c.bf16 %v4043_v47, %v4042_v48 }
0x1a7e   : > { %6813 = vmatpush3.bf16.msra.mxu1 %v4044_v49 }
0x1a7f   : > { %6824 = vmatprep.subr.bf16.mxu1 %v7462_v33 }
0x1a81   : > { %6815 = vmatmul.mubr.msk.bf16.vlgmr.msra.gmra.mrb[32].mxu1 %vm2679_vm8, %v7942_v60  ;;  %v2580_v60 = vld [vmem:[#allocation7] sm:$0x1] }
0x1a82   : > { %6826 = vmatprep.mubr.msk.bf16.mxu1 %vm7463_vm6, %v7462_v33  ;;  %v2578_v33 = vld [vmem:[#allocation4] sm:$0xff] }
0x1b54   : > { %v4079_v43 = vpop.f32.mrb[32].mxu1 }
0x1b55   : > { %v4086_v42 = vsub.f32 %v4079_v43, %v7949_v61  ;;  %v6816_v46 = vpop.f32.mrb[33].mxu1 }
0x1b56   : > { %v4082_v50 = vpop.f32.mrb[34].mxu1 }
0x1b57   : > { %v4088_v51 = vmul.f32 %v4086_v42, %v7954_v2  ;;  %v4087_v55 = vsub.f32 %v4082_v50, %v7951_v62  ;;  %v6817_v52 = vpop.f32.mrb[35].mxu1 }
0x1b59   : > { %v4089_v54 = vmul.f32 %v4087_v55, %v7958_v7  ;;  %v4090_v53 = vmax.f32 %v4088_v51, 0.0 }
0x1b5b   : > { %v4091_v56 = vmax.f32 %v4089_v54, 0.0 }
0x1b5d   : > { %v4092_v57 = vpack.c.bf16 %v4091_v56, %v4090_v53 }
0x1b5f   : > { %6819 = vmatpush3.bf16.xpose.msra.mxu0 %v4092_v57  ;;  %6825 = vmatpush3.bf16.xpose.msra.mxu1 %v4092_v57 }
0x1b66   : > { %6821 = vmatmul.mubr.bf16.vlgmr.msra.gmra.mrb[4].mxu0 %v4092_v57  ;;  %6827 = vmatmul.mubr.bf16.vlgmr.msra.gmra.mrb[4].mxu1 %v7465_v14 }
0x1b67   : > { %6834 = vmatprep.mubr.msk.f32.mxu0 (!%p6100_p12), %vm2679_vm8, %v4185_v8  ;;  %6837 = vmatprep.mubr.msk.f32.mxu1 (!%p6100_p12), %vm2679_vm8, %v4187_v9 }
0x1c38   : > { %4184 = sbr.rel (%p6100_p12) target bundleno = 7626 (0x1dca), region = 113 }
0x1c39   : > { %v4127_v61 = vpop.f32.mrb[4].mxu0  ;;  %v4170_v58 = vpop.f32.mrb[4].mxu1 }
0x1c3a   : > { %v7116_v2 = vadd.f32 %v4127_v61, %v2578_v33  ;;  %v7118_v63 = vadd.f32 %v4170_v58, %v2580_v60  ;;  %v6822_v62 = vpop.f32.mrb[5].mxu0  ;;  %v6828_v0 = vpop.f32.mrb[5].mxu1 }
0x1c3b   : > { %v4130_v1 = vpop.f32.mrb[6].mxu0  ;;  %v4173_v7 = vpop.f32.mrb[6].mxu1 }
0x1c3c   : > { %4177 = vst.msk [vmem:[#allocation4] sm:$0xff] %vm2679_vm8, %v7116_v2  ;;  %v7117_v3 = vadd.f32 %v4130_v1, %v2579_v59  ;;  %v6823_v4 = vpop.f32.mrb[7].mxu0  ;;  %v6829_v5 = vpop.f32.mrb[7].mxu1 }
0x1c3d   : > { %4180 = vst.msk [vmem:[#allocation7] sm:$0x1] %vm4179_vm9, %v7118_v63 }
0x1c3e   : > { %4178 = vst.msk [vmem:[#allocation4 + $0x8] sm:$0xff] %vm2679_vm8, %v7117_v3 }
0x1c43   : > { %v4216_v14 = vld [vmem:[#allocation4] sm:$0xff] }
0x1c44   : > { %v6101_v11 = vld [vmem:[#allocation7] ss:$0 sm:$0xff] }
0x1c45   : > { %v4217_v6 = vld [vmem:[#allocation4 + $0x8] sm:$0xff]  ;;  %v4198_v13 = vmul.f32 %v6101_v11, %v4187_v9  ;;  %v4196_v15 = vmul.f32 %v6101_v11, %v4185_v8  ;;  %v4199_v24 = vmul.f32 %v6101_v11, %v4188_v10  ;;  %v4197_v30 = vmul.f32 %v6101_v11, %v4186_v25 }
0x1c46   : > { %v6994_v12 = vpack.c.bf16 %v4217_v6, %v4216_v14 }
0x1c47   : > { %v4206_v26 = vsel %vm2679_vm8, %v4198_v13, 0.0  ;;  %v4200_v27 = vsel %vm2679_vm8, %v4196_v15, 0.0  ;;  %v4209_v29 = vsel %vm2679_vm8, %v4199_v24, 0.0  ;;  %v4203_v31 = vsel %vm2679_vm8, %v4197_v30, 0.0 }
0x1c48   : > { %6995 = vmatprep.subr.bf16.mxu0 %v6994_v12  ;;  %7175 = vmatprep.subr.bf16.mxu1 %v6994_v12 }
0x1c49   : > { %6997 = vmatpush3.bf16.msra.mxu0 %v6994_v12  ;;  %7176 = vmatpush3.bf16.msra.mxu1 %v6994_v12 }
0x1c4a   : > { %4207 = vadd.xlane.f32.xlu1 %v4206_v26  ;;  %4201 = vadd.xlane.f32.xlu0 %v4200_v27 }
0x1c4c   : > { %6835 = vmatmul.mubr.msk.f32.vlgmr.msra.gmra.mrb[0].mxu0 %vm2679_vm8, %v4186_v25  ;;  %6838 = vmatmul.mubr.msk.f32.vlgmr.msra.gmra.mrb[0].mxu1 %vm2679_vm8, %v4188_v10 }
0x1c4e   : > { %4210 = vadd.xlane.f32.xlu1 %v4209_v29  ;;  %4204 = vadd.xlane.f32.xlu0 %v4203_v31 }
0x1cd7   : > { %v4208_v32 = vpop.xlane.xlu1 %4207  ;;  %v4202_v34 = vpop.xlane.xlu0 %4201 }
0x1cd8   : > { %v4214_v36 = vmul.f32 0.00048828125, %v4208_v32  ;;  %v4212_v39 = vmul.f32 0.00048828125, %v4202_v34 }
0x1cda   : > { %4350 = vst.msk [vmem:[#allocation10 + $0x10] sm:$0xff] %vm4347_vm10, %v4214_v36  ;;  %4348 = vst.msk [vmem:[#allocation10] sm:$0xff] %vm4347_vm10, %v4212_v39  ;;  %v4335_v56 = vmul.f32 %v4212_v39, %v4212_v39  ;;  %v4337_v62 = vmul.f32 %v4214_v36, %v4214_v36 }
0x1cdb   : > { %v4211_v40 = vpop.xlane.xlu1 %4210  ;;  %v4205_v50 = vpop.xlane.xlu0 %4204 }
0x1cdc   : > { %v4215_v41 = vmul.f32 0.00048828125, %v4211_v40  ;;  %v4213_v51 = vmul.f32 0.00048828125, %v4205_v50 }
0x1cde   : > { %4351 = vst.msk [vmem:[#allocation10 + $0x18] sm:$0xff] %vm4347_vm10, %v4215_v41  ;;  %4349 = vst.msk [vmem:[#allocation10 + $0x8] sm:$0xff] %vm4347_vm10, %v4213_v51  ;;  %v4336_v55 = vmul.f32 %v4213_v51, %v4213_v51  ;;  %v4338_v58 = vmul.f32 %v4215_v41, %v4215_v41 }
0x1d1f   : > { %v6836_v28 = vpop.f32.mrb[0].mxu0  ;;  %v6839_v35 = vpop.f32.mrb[0].mxu1 }
0x1d20   : > { %v4316_v37 = vmul.f32 %v6836_v28, %v4186_v25  ;;  %v4296_v44 = vpop.f32.mrb[1].mxu0  ;;  %v4318_v38 = vmul.f32 %v6839_v35, %v4188_v10  ;;  %v4306_v45 = vpop.f32.mrb[1].mxu1 }
0x1d21   : > { %v4315_v48 = vmul.f32 %v4296_v44, %v4185_v8  ;;  %v4317_v47 = vmul.f32 %v4306_v45, %v4187_v9 }
0x1d22   : > { %v4322_v49 = vsel %vm2679_vm8, %v4316_v37, 0.0  ;;  %v4328_v42 = vsel %vm2679_vm8, %v4318_v38, 0.0 }
0x1d23   : > { %4323 = vadd.xlane.f32.xlu1 %v4322_v49  ;;  %v4319_v43 = vsel %vm2679_vm8, %v4315_v48, 0.0  ;;  %v4325_v46 = vsel %vm2679_vm8, %v4317_v47, 0.0 }
0x1d24   : > { %4320 = vadd.xlane.f32.xlu0 %v4319_v43 }
0x1d27   : > { %4329 = vadd.xlane.f32.xlu1 %v4328_v42 }
0x1d28   : > { %4326 = vadd.xlane.f32.xlu0 %v4325_v46 }
0x1db0   : > { %v4324_v52 = vpop.xlane.xlu1 %4323 }
0x1db1   : > { %v4332_v54 = vmul.f32 0.00048828125, %v4324_v52  ;;  %v4321_v53 = vpop.xlane.xlu0 %4320 }
0x1db2   : > { %v4331_v57 = vmul.f32 0.00048828125, %v4321_v53 }
0x1db3   : > { %v4340_v33 = vsub.f32 %v4332_v54, %v4336_v55 }
0x1db4   : > { %v4339_v60 = vsub.f32 %v4331_v57, %v4335_v56  ;;  %v4330_v61 = vpop.xlane.xlu1 %4329 }
0x1db5   : > { %v4344_v59 = vmax.f32 %v4340_v33, 0.0  ;;  %v4334_v2 = vmul.f32 0.00048828125, %v4330_v61  ;;  %v4327_v63 = vpop.xlane.xlu0 %4326 }
0x1db6   : > { %v4343_v0 = vmax.f32 %v4339_v60, 0.0  ;;  %v4333_v1 = vmul.f32 0.00048828125, %v4327_v63 }
0x1db7   : > { %v4353_v7 = vadd.f32 1e-05, %v4344_v59  ;;  %v4342_v3 = vsub.f32 %v4334_v2, %v4338_v58 }
0x1db8   : > { %v4352_v4 = vadd.f32 1e-05, %v4343_v0  ;;  %v4341_v5 = vsub.f32 %v4333_v1, %v4337_v62 }
0x1db9   : > { %7321 = vrsqrt.f32 %v4353_v7  ;;  %v4346_v14 = vmax.f32 %v4342_v3, 0.0 }
0x1dba   : > { %7323 = vrsqrt.f32 %v4352_v4  ;;  %v4345_v6 = vmax.f32 %v4341_v5, 0.0 }
0x1dbb   : > { %v4355_v8 = vadd.f32 1e-05, %v4346_v14 }
0x1dbc   : > { %v4354_v9 = vadd.f32 1e-05, %v4345_v6 }
0x1dbd   : > { %7325 = vrsqrt.f32 %v4355_v8 }
0x1dbe   : > { %7327 = vrsqrt.f32 %v4354_v9 }
0x1dc3   : > { %v7322_v10 = vpop.eup %7321 }
0x1dc4   : > { %v7324_v11 = vpop.eup %7323  ;;  %4362 = vst.msk [vmem:[#allocation10 + $0x28] sm:$0xff] %vm4347_vm10, %v7322_v10 }
0x1dc5   : > { %4361 = vst.msk [vmem:[#allocation10 + $0x20] sm:$0xff] %vm4347_vm10, %v7324_v11 }
0x1dc7   : > { %v7326_v12 = vpop.eup %7325 }
0x1dc8   : > { %v7328_v13 = vpop.eup %7327  ;;  %4364 = vst.msk [vmem:[#allocation10 + $0x38] sm:$0xff] %vm4347_vm10, %v7326_v12 }
0x1dc9   : > { %4363 = vst.msk [vmem:[#allocation10 + $0x30] sm:$0xff] %vm4347_vm10, %v7328_v13 }
0x1dca PF: > { %p6106_p13 = scmp.ne.s32.totalorder %s7429_s19, 3 }
0x1dcb   : > { %vm4385_vm11 = vcmask (!%p6106_p13), 1044480   ;;  %v7466_v15 = vmov (!%p6106_p13), 0.0   ;;  %v7331_v24 = vld [vmem:[%s7660_s8] sm:$0x1f] (!%p6106_p13)   ;;  %vm7467_vm12 = vmmov (!%p6106_p13), 0   ;;  %v7468_v26 = vmov (!%p6106_p13), 0  }
0x1dcc   : > { %4368 = sbr.rel (%p6106_p13) target bundleno = 9947 (0x26db), region = 117  ;;  %6840 = vmatprep.subr.bf16.mxu0 (!%p6106_p13), %v7466_v15  ;;  %v4430_v25 = vld [vmem:[#allocation8] sm:$0xff] (!%p6106_p13)  ;;  %6846 = vmatprep.subr.bf16.mxu1 (!%p6106_p13), %v7466_v15  ;;  %v4445_v27 = vld [vmem:[#allocation8 + $0x10] sm:$0xff] (!%p6106_p13)  ;;  %v4387_v29 = vsel (!%p6106_p13), %vm4385_vm11, %v7331_v24, 0  ;;  %v8187_v30 = vcombine.low (!%p6106_p13), %v7621_v16, %v7626_v17  ;;  %vm4381_vm13 = vcmask (!%p6106_p13), 80896   ;;  %v4431_v31 = vld [vmem:[#allocation8 + $0x8] sm:$0xff] (!%p6106_p13)  ;;  %v8208_v60 = vcombine.low (!%p6106_p13), %v7633_v18, %v7638_v19 }
0x1dcd   : > { %6842 = vmatprep.mubr.msk.bf16.mxu0 (!%p6106_p13), %vm7467_vm12, %v7466_v15  ;;  %7329 = vset.pattern.permute.xlu0 (!%p6106_p13), %v7468_v26  ;;  %v4446_v32 = vld [vmem:[#allocation8 + $0x18] sm:$0xff] (!%p6106_p13)  ;;  %v4512_v34 = vld [vmem:[#allocation9] sm:$0xff] (!%p6106_p13)  ;;  %v4513_v36 = vld [vmem:[#allocation9 + $0x8] sm:$0xff] (!%p6106_p13)  ;;  %vm4467_vm14 = vcmask (!%p6106_p13), 130048   ;;  %v8220_v18 = vcombine.low (!%p6106_p13), %v7643_v20, %v7648_v21  ;;  %v8243_v24 = vcombine.low (!%p6106_p13), %v7653_v22, %v7658_v23 }
0x1dce   : > { %4434 = vperm.xlu0 (!%p6106_p13), %7329, %v4430_v25   ;;  %7330 = vset.pattern.permute.xlu1 (!%p6106_p13), %v7468_v26  ;;  %v4527_v16 = vld [vmem:[#allocation9 + $0x10] sm:$0xff] (!%p6106_p13)  ;;  %v4528_v17 = vld [vmem:[#allocation9 + $0x18] sm:$0xff] (!%p6106_p13)  ;;  %v4609_v39 = vld [vmem:[#allocation10] sm:$0xff] (!%p6106_p13) }
0x1dcf   : > { %6841 = vmatpush3.bf16.msra.mxu0 (!%p6106_p13), %v4387_v29  ;;  %4449 = vperm.xlu1 (!%p6106_p13), %7330, %v4445_v27   ;;  %v4610_v40 = vld [vmem:[#allocation10 + $0x8] sm:$0xff] (!%p6106_p13)  ;;  %v4611_v41 = vld [vmem:[#allocation10 + $0x10] sm:$0xff] (!%p6106_p13)  ;;  %v4612_v28 = vld [vmem:[#allocation10 + $0x18] sm:$0xff] (!%p6106_p13) }
0x1dd0   : > { %6848 = vmatprep.mubr.msk.bf16.mxu1 (!%p6106_p13), %vm7467_vm12, %v7466_v15  ;;  %v4638_v35 = vld [vmem:[#allocation10 + $0x20] sm:$0xff] (!%p6106_p13)  ;;  %v4639_v37 = vld [vmem:[#allocation10 + $0x28] sm:$0xff] (!%p6106_p13)  ;;  %v4640_v44 = vld [vmem:[#allocation10 + $0x30] sm:$0xff] (!%p6106_p13) }
0x1dd1   : > { %v4641_v38 = vld [vmem:[#allocation10 + $0x38] sm:$0xff] (!%p6106_p13)  ;;  %v7332_v57 = vld [vmem:[%s7660_s8 + $0x8] sm:$0x1f] (!%p6106_p13)  }
0x1dd2   : > { %6843 = vmatmul.mubr.msk.bf16.vlgmr.msra.gmra.mrb[0].mxu0 (!%p6106_p13), %vm4381_vm13, %v8187_v30  ;;  %4439 = vperm.xlu0 (!%p6106_p13), %7329, %v4431_v31   ;;  %v4679_v61 = vsel (!%p6106_p13), %vm4385_vm11, %v7332_v57, 0  ;;  %v7333_v31 = vld [vmem:[%s7660_s8 + $0x10] sm:$0x1f] (!%p6106_p13)  }
0x1dd3   : > { %4454 = vperm.xlu1 %7330, %v4446_v32   ;;  %6854 = vmatprep.mubr.msk.bf16.mxu0 %vm4467_vm14, %v8220_v18  ;;  %v4851_v22 = vsel %vm4385_vm11, %v7333_v31, 0 }
0x1dd6   : > { %4516 = vperm.xlu0 %7329, %v4512_v34  }
0x1dd7   : > { %4521 = vperm.xlu1 %7330, %v4513_v36  }
0x1dda   : > { %4531 = vperm.xlu0 %7329, %v4527_v16  }
0x1ddb   : > { %4536 = vperm.xlu1 %7330, %v4528_v17  }
0x1dde   : > { %4615 = vperm.xlu0 %7329, %v4609_v39  }
0x1ddf   : > { %4620 = vperm.xlu1 %7330, %v4610_v40  }
0x1de2   : > { %4625 = vperm.xlu0 %7329, %v4611_v41  }
0x1de3   : > { %4630 = vperm.xlu1 %7330, %v4612_v28  }
0x1de6   : > { %4644 = vperm.xlu0 %7329, %v4638_v35  }
0x1de7   : > { %4649 = vperm.xlu1 %7330, %v4639_v37  }
0x1dea   : > { %4654 = vperm.xlu0 %7329, %v4640_v44  }
0x1deb   : > { %4659 = vperm.xlu1 %7330, %v4641_v38  }
0x1e4d   : > { %v8193_v45 = vpop.permute.xlu0 %4434 }
0x1e4e   : > { %v8195_v48 = vpop.permute.xlu1 %4449 }
0x1e51   : > { %v8198_v42 = vpop.permute.xlu0 %4439 }
0x1e52   : > { %v8202_v52 = vpop.permute.xlu1 %4454 }
0x1e55   : > { %v8226_v19 = vpop.permute.xlu0 %4516 }
0x1e56   : > { %v8228_v58 = vpop.permute.xlu1 %4521 }
0x1e59   : > { %v8231_v62 = vpop.permute.xlu0 %4531 }
0x1e5a   : > { %v8235_v7 = vpop.permute.xlu1 %4536 }
0x1ea5   : > { %v4423_v47 = vpop.f32.mrb[0].mxu0 }
0x1ea6   : > { %v4442_v49 = vsub.f32 %v4423_v47, %v8193_v45  ;;  %v6844_v43 = vpop.f32.mrb[1].mxu0 }
0x1ea7   : > { %v4426_v46 = vpop.f32.mrb[2].mxu0 }
0x1ea8   : > { %v4457_v50 = vmul.f32 %v8195_v48, %v4442_v49  ;;  %v4443_v51 = vsub.f32 %v4426_v46, %v8198_v42  ;;  %v6845_v55 = vpop.f32.mrb[3].mxu0 }
0x1eaa   : > { %v4458_v54 = vmul.f32 %v8202_v52, %v4443_v51  ;;  %v4459_v53 = vmax.f32 %v4457_v50, 0.0 }
0x1eac   : > { %v4460_v56 = vmax.f32 %v4458_v54, 0.0 }
0x1eae   : > { %v4461_v33 = vpack.c.bf16 %v4460_v56, %v4459_v53 }
0x1eb0   : > { %6847 = vmatpush3.bf16.msra.mxu1 %v4461_v33 }
0x1eb1   : > { %6858 = vmatprep.subr.bf16.mxu1 %v7466_v15 }
0x1eb3   : > { %6849 = vmatmul.mubr.msk.bf16.vlgmr.msra.gmra.mrb[0].mxu1 %vm4467_vm14, %v8208_v60 }
0x1eb4   : > { %6859 = vmatpush3.bf16.msra.mxu1 %v4679_v61  ;;  %6860 = vmatprep.mubr.msk.bf16.mxu1 %vm7467_vm12, %v7466_v15  ;;  %v7334_v61 = vld [vmem:[%s7660_s8 + $0x18] sm:$0x1f]  }
0x1ebb   : > { %6861 = vmatmul.mubr.msk.bf16.vlgmr.msra.gmra.mrb[4].mxu1 %vm4381_vm13, %v8187_v30 }
0x1ebc   : > { %6872 = vmatprep.mubr.msk.bf16.mxu1 %vm4467_vm14, %v8220_v18 }
0x1f86   : > { %v4505_v59 = vpop.f32.mrb[0].mxu1 }
0x1f87   : > { %v4524_v2 = vsub.f32 %v4505_v59, %v8226_v19  ;;  %v6850_v63 = vpop.f32.mrb[1].mxu1  ;;  %v5023_v59 = vsel %vm4385_vm11, %v7334_v61, 0 }
0x1f88   : > { %v4508_v0 = vpop.f32.mrb[2].mxu1  ;;  %v8288_v63 = vpop.permute.xlu1 %4620 }
0x1f89   : > { %v4539_v20 = vmul.f32 %v8231_v62, %v4524_v2  ;;  %v4525_v21 = vsub.f32 %v4508_v0, %v8228_v58  ;;  %v6851_v1 = vpop.f32.mrb[3].mxu1  ;;  %v8286_v2 = vpop.permute.xlu0 %4615 }
0x1f8b   : > { %v4540_v3 = vmul.f32 %v8235_v7, %v4525_v21  ;;  %v4541_v4 = vmax.f32 %v4539_v20, 0.0 }
0x1f8c   : > { %v8292_v20 = vpop.permute.xlu1 %4630 }
0x1f8d   : > { %v4542_v5 = vmax.f32 %v4540_v3, 0.0  ;;  %v8290_v0 = vpop.permute.xlu0 %4625 }
0x1f8e   : > { %v4715_v14 = vpop.f32.mrb[4].mxu1 }
0x1f8f   : > { %v4722_v6 = vsub.f32 %v4715_v14, %v8193_v45  ;;  %v6862_v8 = vpop.f32.mrb[5].mxu1  ;;  %v4543_v9 = vpack.c.bf16 %v4542_v5, %v4541_v4 }
0x1f90   : > { %v4718_v10 = vpop.f32.mrb[6].mxu1  ;;  %v8296_v1 = vpop.permute.xlu1 %4649 }
0x1f91   : > { %v4724_v11 = vmul.f32 %v4722_v6, %v8195_v48  ;;  %v4723_v12 = vsub.f32 %v4718_v10, %v8198_v42  ;;  %6852 = vmatprep.subr.bf16.mxu0 %v4543_v9  ;;  %v6863_v13 = vpop.f32.mrb[7].mxu1  ;;  %v8294_v21 = vpop.permute.xlu0 %4644 }
0x1f92   : > { %6853 = vmatpush3.bf16.msra.mxu0 %v4543_v9 }
0x1f93   : > { %v4725_v25 = vmul.f32 %v4723_v12, %v8202_v52  ;;  %6864 = vmatprep.subr.bf16.mxu0 %v7466_v15  ;;  %v4726_v26 = vmax.f32 %v4724_v11, 0.0 }
0x1f94   : > { %v8306_v12 = vpop.permute.xlu1 %4659 }
0x1f95   : > { %v4727_v27 = vmax.f32 %v4725_v25, 0.0  ;;  %6855 = vmatmul.mubr.msk.bf16.vlgmr.msra.gmra.mrb[4].mxu0 %vm4467_vm14, %v8243_v24  ;;  %v8301_v14 = vpop.permute.xlu0 %4654 }
0x1f96   : > { %6866 = vmatprep.mubr.msk.bf16.mxu0 %vm7467_vm12, %v7466_v15 }
0x1f97   : > { %v4728_v29 = vpack.c.bf16 %v4727_v27, %v4726_v26 }
0x1f99   : > { %6865 = vmatpush3.bf16.msra.mxu0 %v4728_v29 }
0x1f9a   : > { %6876 = vmatprep.subr.bf16.mxu0 %v7466_v15 }
0x1f9d   : > { %6867 = vmatmul.mubr.msk.bf16.vlgmr.msra.gmra.mrb[8].mxu0 %vm4467_vm14, %v8208_v60 }
0x1f9e   : > { %6877 = vmatpush3.bf16.msra.mxu0 %v4851_v22  ;;  %6878 = vmatprep.mubr.msk.bf16.mxu0 %vm7467_vm12, %v7466_v15 }
0x1fa5   : > { %6879 = vmatmul.mubr.msk.bf16.vlgmr.msra.gmra.mrb[12].mxu0 %vm4381_vm13, %v8187_v30 }
0x1fa6   : > { %6890 = vmatprep.mubr.msk.bf16.mxu0 %vm4467_vm14, %v8220_v18 }
0x2068   : > { %v6856_v23 = vpop.f32.mrb[4].mxu0 }
0x2069   : > { %v4594_v32 = vpop.f32.mrb[5].mxu0  ;;  %v4635_v3 = vsub.f32 %v6856_v23, %v8290_v0 }
0x206a   : > { %v6857_v34 = vpop.f32.mrb[6].mxu0  ;;  %v4633_v4 = vsub.f32 %v4594_v32, %v8286_v2 }
0x206b   : > { %v4597_v36 = vpop.f32.mrb[7].mxu0  ;;  %v4636_v5 = vsub.f32 %v6857_v34, %v8292_v20  ;;  %v4664_v9 = vmul.f32 %v8301_v14, %v4635_v3 }
0x206c   : > { %v4634_v6 = vsub.f32 %v4597_v36, %v8288_v63  ;;  %v4662_v13 = vmul.f32 %v8294_v21, %v4633_v4 }
0x206d   : > { %v4665_v27 = vmul.f32 %v8306_v12, %v4636_v5  ;;  %v4668_v36 = vmax.f32 %v4664_v9, 0.0 }
0x206e   : > { %v4663_v23 = vmul.f32 %v8296_v1, %v4634_v6 }
0x2070   : > { %v4763_v16 = vpop.f32.mrb[8].mxu0 }
0x2071   : > { %v4770_v17 = vsub.f32 %v4763_v16, %v8226_v19  ;;  %v6868_v39 = vpop.f32.mrb[9].mxu0 }
0x2072   : > { %v4766_v40 = vpop.f32.mrb[10].mxu0  ;;  %v4666_v39 = vmax.f32 %v4662_v13, 0.0 }
0x2073   : > { %v4772_v41 = vmul.f32 %v4770_v17, %v8231_v62  ;;  %v4771_v28 = vsub.f32 %v4766_v40, %v8228_v58  ;;  %v6869_v35 = vpop.f32.mrb[11].mxu0 }
0x2075   : > { %v4773_v37 = vmul.f32 %v4771_v28, %v8235_v7  ;;  %v4774_v44 = vmax.f32 %v4772_v41, 0.0  ;;  %v4669_v28 = vmax.f32 %v4665_v27, 0.0  ;;  %v7335_v27 = vld [vmem:[%s7660_s8 + $0x20] sm:$0x1f]  }
0x2077   : > { %v4775_v38 = vmax.f32 %v4773_v37, 0.0 }
0x2078   : > { %v4887_v47 = vpop.f32.mrb[12].mxu0 }
0x2079   : > { %v4894_v49 = vsub.f32 %v4887_v47, %v8193_v45  ;;  %v6880_v43 = vpop.f32.mrb[13].mxu0  ;;  %v4776_v46 = vpack.c.bf16 %v4775_v38, %v4774_v44  ;;  %v4667_v44 = vmax.f32 %v4663_v23, 0.0 }
0x207a   : > { %v4890_v50 = vpop.f32.mrb[14].mxu0 }
0x207b   : > { %v4896_v51 = vmul.f32 %v4894_v49, %v8195_v48  ;;  %v4895_v55 = vsub.f32 %v4890_v50, %v8198_v42  ;;  %6870 = vmatprep.subr.bf16.mxu1 %v4776_v46  ;;  %v6881_v54 = vpop.f32.mrb[15].mxu0 }
0x207c   : > { %6871 = vmatpush3.bf16.msra.mxu1 %v4776_v46 }
0x207d   : > { %v4897_v53 = vmul.f32 %v4895_v55, %v8202_v52  ;;  %6882 = vmatprep.subr.bf16.mxu1 %v7466_v15  ;;  %v4898_v56 = vmax.f32 %v4896_v51, 0.0 }
0x207f   : > { %v4899_v57 = vmax.f32 %v4897_v53, 0.0  ;;  %6873 = vmatmul.mubr.msk.bf16.vlgmr.msra.gmra.mrb[8].mxu1 %vm4467_vm14, %v8243_v24 }
0x2080   : > { %6884 = vmatprep.mubr.msk.bf16.mxu1 %vm7467_vm12, %v7466_v15 }
0x2081   : > { %v4900_v33 = vpack.c.bf16 %v4899_v57, %v4898_v56 }
0x2083   : > { %6883 = vmatpush3.bf16.msra.mxu1 %v4900_v33 }
0x2084   : > { %6894 = vmatprep.subr.bf16.mxu1 %v7466_v15 }
0x2087   : > { %6885 = vmatmul.mubr.msk.bf16.vlgmr.msra.gmra.mrb[12].mxu1 %vm4467_vm14, %v8208_v60 }
0x2088   : > { %6895 = vmatpush3.bf16.msra.mxu1 %v5023_v59  ;;  %6896 = vmatprep.mubr.msk.bf16.mxu1 %vm7467_vm12, %v7466_v15 }
0x208f   : > { %6897 = vmatmul.mubr.msk.bf16.vlgmr.msra.gmra.mrb[16].mxu1 %vm4381_vm13, %v8187_v30 }
0x2090   : > { %6908 = vmatprep.mubr.msk.bf16.mxu1 %vm4467_vm14, %v8220_v18 }
0x2152   : > { %v6874_v8 = vpop.f32.mrb[8].mxu1 }
0x2153   : > { %v4828_v10 = vsub.f32 %v6874_v8, %v8290_v0  ;;  %v4811_v11 = vpop.f32.mrb[9].mxu1 }
0x2154   : > { %v4826_v25 = vsub.f32 %v4811_v11, %v8286_v2  ;;  %v6875_v26 = vpop.f32.mrb[10].mxu1 }
0x2155   : > { %v4832_v29 = vmul.f32 %v4828_v10, %v8301_v14  ;;  %v4829_v31 = vsub.f32 %v6875_v26, %v8292_v20  ;;  %v4814_v22 = vpop.f32.mrb[11].mxu1 }
0x2156   : > { %v4830_v32 = vmul.f32 %v4826_v25, %v8294_v21  ;;  %v4827_v34 = vsub.f32 %v4814_v22, %v8288_v63 }
0x2157   : > { %v4836_v16 = vmax.f32 %v4832_v29, 0.0  ;;  %v4833_v17 = vmul.f32 %v4829_v31, %v8306_v12  ;;  %v5195_v29 = vsel %vm4385_vm11, %v7335_v27, 0 }
0x2158   : > { %v4834_v40 = vmax.f32 %v4830_v32, 0.0  ;;  %v4831_v41 = vmul.f32 %v4827_v34, %v8296_v1 }
0x2159   : > { %v4840_v35 = vmax.f32 %v4668_v36, %v4836_v16  ;;  %v4837_v37 = vmax.f32 %v4833_v17, 0.0 }
0x215a   : > { %v4838_v38 = vmax.f32 %v4666_v39, %v4834_v40  ;;  %v4835_v47 = vmax.f32 %v4831_v41, 0.0  ;;  %v4935_v49 = vpop.f32.mrb[12].mxu1 }
0x215b   : > { %v4841_v43 = vmax.f32 %v4669_v28, %v4837_v37  ;;  %v4942_v46 = vsub.f32 %v4935_v49, %v8226_v19  ;;  %v6886_v50 = vpop.f32.mrb[13].mxu1 }
0x215c   : > { %v4839_v51 = vmax.f32 %v4667_v44, %v4835_v47  ;;  %v4938_v55 = vpop.f32.mrb[14].mxu1 }
0x215d   : > { %v4944_v54 = vmul.f32 %v4942_v46, %v8231_v62  ;;  %v4943_v53 = vsub.f32 %v4938_v55, %v8228_v58  ;;  %v6887_v56 = vpop.f32.mrb[15].mxu1 }
0x215f   : > { %v4945_v57 = vmul.f32 %v4943_v53, %v8235_v7  ;;  %v4946_v33 = vmax.f32 %v4944_v54, 0.0 }
0x2161   : > { %v4947_v61 = vmax.f32 %v4945_v57, 0.0 }
0x2162   : > { %v5059_v59 = vpop.f32.mrb[16].mxu1 }
0x2163   : > { %v5066_v3 = vsub.f32 %v5059_v59, %v8193_v45  ;;  %v6898_v4 = vpop.f32.mrb[17].mxu1  ;;  %v4948_v5 = vpack.c.bf16 %v4947_v61, %v4946_v33 }
0x2164   : > { %v5062_v6 = vpop.f32.mrb[18].mxu1 }
0x2165   : > { %v5068_v8 = vmul.f32 %v5066_v3, %v8195_v48  ;;  %v5067_v9 = vsub.f32 %v5062_v6, %v8198_v42  ;;  %6888 = vmatprep.subr.bf16.mxu0 %v4948_v5  ;;  %v6899_v10 = vpop.f32.mrb[19].mxu1 }
0x2166   : > { %6889 = vmatpush3.bf16.msra.mxu0 %v4948_v5 }
0x2167   : > { %v5069_v11 = vmul.f32 %v5067_v9, %v8202_v52  ;;  %6900 = vmatprep.subr.bf16.mxu0 %v7466_v15  ;;  %v5070_v13 = vmax.f32 %v5068_v8, 0.0 }
0x2169   : > { %v5071_v25 = vmax.f32 %v5069_v11, 0.0  ;;  %6891 = vmatmul.mubr.msk.bf16.vlgmr.msra.gmra.mrb[16].mxu0 %vm4467_vm14, %v8243_v24 }
0x216a   : > { %6902 = vmatprep.mubr.msk.bf16.mxu0 %vm7467_vm12, %v7466_v15 }
0x216b   : > { %v5072_v26 = vpack.c.bf16 %v5071_v25, %v5070_v13 }
0x216d   : > { %6901 = vmatpush3.bf16.msra.mxu0 %v5072_v26 }
0x216e   : > { %6912 = vmatprep.subr.bf16.mxu0 %v7466_v15 }
0x2171   : > { %6903 = vmatmul.mubr.msk.bf16.vlgmr.msra.gmra.mrb[20].mxu0 %vm4467_vm14, %v8208_v60 }
0x2172   : > { %6913 = vmatpush3.bf16.msra.mxu0 %v5195_v29  ;;  %6914 = vmatprep.mubr.msk.bf16.mxu0 %vm7467_vm12, %v7466_v15  ;;  %v7336_v29 = vld [vmem:[%s7660_s8 + $0x28] sm:$0x1f]  }
0x2179   : > { %6915 = vmatmul.mubr.msk.bf16.vlgmr.msra.gmra.mrb[24].mxu0 %vm4381_vm13, %v8187_v30 }
0x217a   : > { %6926 = vmatprep.mubr.msk.bf16.mxu0 %vm4467_vm14, %v8220_v18 }
0x223c   : > { %v6892_v31 = vpop.f32.mrb[16].mxu0 }
0x223d   : > { %v5000_v22 = vsub.f32 %v6892_v31, %v8290_v0  ;;  %v4983_v23 = vpop.f32.mrb[17].mxu0  ;;  %v5367_v31 = vsel %vm4385_vm11, %v7336_v29, 0 }
0x223e   : > { %v4998_v32 = vsub.f32 %v4983_v23, %v8286_v2  ;;  %v6893_v34 = vpop.f32.mrb[18].mxu0 }
0x223f   : > { %v5004_v36 = vmul.f32 %v5000_v22, %v8301_v14  ;;  %v5001_v16 = vsub.f32 %v6893_v34, %v8292_v20  ;;  %v4986_v17 = vpop.f32.mrb[19].mxu0 }
0x2240   : > { %v5002_v39 = vmul.f32 %v4998_v32, %v8294_v21  ;;  %v4999_v40 = vsub.f32 %v4986_v17, %v8288_v63 }
0x2241   : > { %v5008_v41 = vmax.f32 %v5004_v36, 0.0  ;;  %v5005_v28 = vmul.f32 %v5001_v16, %v8306_v12 }
0x2242   : > { %v5006_v37 = vmax.f32 %v5002_v39, 0.0  ;;  %v5003_v44 = vmul.f32 %v4999_v40, %v8296_v1 }
0x2243   : > { %v5012_v47 = vmax.f32 %v4840_v35, %v5008_v41  ;;  %v5009_v49 = vmax.f32 %v5005_v28, 0.0 }
0x2244   : > { %v5010_v46 = vmax.f32 %v4838_v38, %v5006_v37  ;;  %v5007_v50 = vmax.f32 %v5003_v44, 0.0  ;;  %v5107_v55 = vpop.f32.mrb[20].mxu0 }
0x2245   : > { %v5013_v54 = vmax.f32 %v4841_v43, %v5009_v49  ;;  %v5114_v53 = vsub.f32 %v5107_v55, %v8226_v19  ;;  %v6904_v56 = vpop.f32.mrb[21].mxu0 }
0x2246   : > { %v5011_v57 = vmax.f32 %v4839_v51, %v5007_v50  ;;  %v5110_v33 = vpop.f32.mrb[22].mxu0 }
0x2247   : > { %v5116_v61 = vmul.f32 %v5114_v53, %v8231_v62  ;;  %v5115_v59 = vsub.f32 %v5110_v33, %v8228_v58  ;;  %v6905_v3 = vpop.f32.mrb[23].mxu0 }
0x2249   : > { %v5117_v4 = vmul.f32 %v5115_v59, %v8235_v7  ;;  %v5118_v5 = vmax.f32 %v5116_v61, 0.0 }
0x224b   : > { %v5119_v6 = vmax.f32 %v5117_v4, 0.0 }
0x224c   : > { %v5231_v35 = vpop.f32.mrb[24].mxu0 }
0x224d   : > { %v5238_v38 = vsub.f32 %v5231_v35, %v8193_v45  ;;  %v6916_v8 = vpop.f32.mrb[25].mxu0  ;;  %v5120_v43 = vpack.c.bf16 %v5119_v6, %v5118_v5 }
0x224e   : > { %v5234_v9 = vpop.f32.mrb[26].mxu0 }
0x224f   : > { %v5240_v10 = vmul.f32 %v5238_v38, %v8195_v48  ;;  %v5239_v51 = vsub.f32 %v5234_v9, %v8198_v42  ;;  %6906 = vmatprep.subr.bf16.mxu1 %v5120_v43  ;;  %v6917_v11 = vpop.f32.mrb[27].mxu0 }
0x2250   : > { %6907 = vmatpush3.bf16.msra.mxu1 %v5120_v43 }
0x2251   : > { %v5241_v13 = vmul.f32 %v5239_v51, %v8202_v52  ;;  %6918 = vmatprep.subr.bf16.mxu1 %v7466_v15  ;;  %v5242_v25 = vmax.f32 %v5240_v10, 0.0 }
0x2253   : > { %v5243_v26 = vmax.f32 %v5241_v13, 0.0  ;;  %6909 = vmatmul.mubr.msk.bf16.vlgmr.msra.gmra.mrb[20].mxu1 %vm4467_vm14, %v8243_v24 }
0x2254   : > { %6920 = vmatprep.mubr.msk.bf16.mxu1 %vm7467_vm12, %v7466_v15 }
0x2255   : > { %v5244_v27 = vpack.c.bf16 %v5243_v26, %v5242_v25 }
0x2257   : > { %6919 = vmatpush3.bf16.msra.mxu1 %v5244_v27 }
0x2258   : > { %6930 = vmatprep.subr.bf16.mxu1 %v7466_v15 }
0x225b   : > { %6921 = vmatmul.mubr.msk.bf16.vlgmr.msra.gmra.mrb[24].mxu1 %vm4467_vm14, %v8208_v60 }
0x225c   : > { %6931 = vmatpush3.bf16.msra.mxu1 %v5367_v31  ;;  %6932 = vmatprep.mubr.msk.bf16.mxu1 %vm7467_vm12, %v7466_v15  ;;  %v7337_v31 = vld [vmem:[%s7660_s8 + $0x30] sm:$0x1f]  }
0x2263   : > { %6933 = vmatmul.mubr.msk.bf16.vlgmr.msra.gmra.mrb[28].mxu1 %vm4381_vm13, %v8187_v30 }
0x2264   : > { %6944 = vmatprep.mubr.msk.bf16.mxu1 %vm4467_vm14, %v8220_v18 }
0x2326   : > { %v6910_v22 = vpop.f32.mrb[20].mxu1 }
0x2327   : > { %v5172_v23 = vsub.f32 %v6910_v22, %v8290_v0  ;;  %v5155_v32 = vpop.f32.mrb[21].mxu1  ;;  %v5539_v22 = vsel %vm4385_vm11, %v7337_v31, 0 }
0x2328   : > { %v5170_v34 = vsub.f32 %v5155_v32, %v8286_v2  ;;  %v6911_v36 = vpop.f32.mrb[22].mxu1 }
0x2329   : > { %v5176_v16 = vmul.f32 %v5172_v23, %v8301_v14  ;;  %v5173_v17 = vsub.f32 %v6911_v36, %v8292_v20  ;;  %v5158_v39 = vpop.f32.mrb[23].mxu1 }
0x232a   : > { %v5174_v40 = vmul.f32 %v5170_v34, %v8294_v21  ;;  %v5171_v41 = vsub.f32 %v5158_v39, %v8288_v63 }
0x232b   : > { %v5180_v28 = vmax.f32 %v5176_v16, 0.0  ;;  %v5177_v37 = vmul.f32 %v5173_v17, %v8306_v12 }
0x232c   : > { %v5178_v44 = vmax.f32 %v5174_v40, 0.0  ;;  %v5175_v49 = vmul.f32 %v5171_v41, %v8296_v1 }
0x232d   : > { %v5184_v50 = vmax.f32 %v5012_v47, %v5180_v28  ;;  %v5181_v55 = vmax.f32 %v5177_v37, 0.0 }
0x232e   : > { %v5182_v53 = vmax.f32 %v5010_v46, %v5178_v44  ;;  %v5179_v56 = vmax.f32 %v5175_v49, 0.0  ;;  %v5279_v33 = vpop.f32.mrb[24].mxu1 }
0x232f   : > { %v5185_v61 = vmax.f32 %v5013_v54, %v5181_v55  ;;  %v5286_v59 = vsub.f32 %v5279_v33, %v8226_v19  ;;  %v6922_v3 = vpop.f32.mrb[25].mxu1 }
0x2330   : > { %v5183_v4 = vmax.f32 %v5011_v57, %v5179_v56  ;;  %v5282_v5 = vpop.f32.mrb[26].mxu1 }
0x2331   : > { %v5288_v6 = vmul.f32 %v5286_v59, %v8231_v62  ;;  %v5287_v35 = vsub.f32 %v5282_v5, %v8228_v58  ;;  %v6923_v38 = vpop.f32.mrb[27].mxu1 }
0x2333   : > { %v5289_v8 = vmul.f32 %v5287_v35, %v8235_v7  ;;  %v5290_v43 = vmax.f32 %v5288_v6, 0.0 }
0x2335   : > { %v5291_v9 = vmax.f32 %v5289_v8, 0.0 }
0x2336   : > { %v5403_v47 = vpop.f32.mrb[28].mxu1 }
0x2337   : > { %v5410_v46 = vsub.f32 %v5403_v47, %v8193_v45  ;;  %v6934_v10 = vpop.f32.mrb[29].mxu1  ;;  %v5292_v54 = vpack.c.bf16 %v5291_v9, %v5290_v43 }
0x2338   : > { %v5406_v51 = vpop.f32.mrb[30].mxu1 }
0x2339   : > { %v5412_v11 = vmul.f32 %v5410_v46, %v8195_v48  ;;  %v5411_v57 = vsub.f32 %v5406_v51, %v8198_v42  ;;  %6924 = vmatprep.subr.bf16.mxu0 %v5292_v54  ;;  %v6935_v13 = vpop.f32.mrb[31].mxu1 }
0x233a   : > { %6925 = vmatpush3.bf16.msra.mxu0 %v5292_v54 }
0x233b   : > { %v5413_v25 = vmul.f32 %v5411_v57, %v8202_v52  ;;  %6936 = vmatprep.subr.bf16.mxu0 %v7466_v15  ;;  %v5414_v26 = vmax.f32 %v5412_v11, 0.0 }
0x233d   : > { %v5415_v27 = vmax.f32 %v5413_v25, 0.0  ;;  %6927 = vmatmul.mubr.msk.bf16.vlgmr.msra.gmra.mrb[28].mxu0 %vm4467_vm14, %v8243_v24 }
0x233e   : > { %6938 = vmatprep.mubr.msk.bf16.mxu0 %vm7467_vm12, %v7466_v15 }
0x233f   : > { %v5416_v29 = vpack.c.bf16 %v5415_v27, %v5414_v26 }
0x2341   : > { %6937 = vmatpush3.bf16.msra.mxu0 %v5416_v29 }
0x2342   : > { %6948 = vmatprep.subr.bf16.mxu0 %v7466_v15 }
0x2345   : > { %6939 = vmatmul.mubr.msk.bf16.vlgmr.msra.gmra.mrb[32].mxu0 %vm4467_vm14, %v8208_v60 }
0x2346   : > { %6949 = vmatpush3.bf16.msra.mxu0 %v5539_v22  ;;  %6950 = vmatprep.mubr.msk.bf16.mxu0 %vm7467_vm12, %v7466_v15  ;;  %v7338_v22 = vld [vmem:[%s7660_s8 + $0x38] sm:$0x1f]  }
0x234d   : > { %6951 = vmatmul.mubr.msk.bf16.vlgmr.msra.gmra.mrb[36].mxu0 %vm4381_vm13, %v8187_v30 }
0x234e   : > { %6962 = vmatprep.mubr.msk.bf16.mxu0 %vm4467_vm14, %v8220_v18 }
0x2410   : > { %v6928_v23 = vpop.f32.mrb[28].mxu0 }
0x2411   : > { %v5344_v32 = vsub.f32 %v6928_v23, %v8290_v0  ;;  %v5327_v34 = vpop.f32.mrb[29].mxu0  ;;  %v5711_v23 = vsel %vm4385_vm11, %v7338_v22, 0 }
0x2412   : > { %v5342_v36 = vsub.f32 %v5327_v34, %v8286_v2  ;;  %v6929_v16 = vpop.f32.mrb[30].mxu0 }
0x2413   : > { %v5348_v17 = vmul.f32 %v5344_v32, %v8301_v14  ;;  %v5345_v39 = vsub.f32 %v6929_v16, %v8292_v20  ;;  %v5330_v40 = vpop.f32.mrb[31].mxu0 }
0x2414   : > { %v5346_v41 = vmul.f32 %v5342_v36, %v8294_v21  ;;  %v5343_v28 = vsub.f32 %v5330_v40, %v8288_v63 }
0x2415   : > { %v5352_v37 = vmax.f32 %v5348_v17, 0.0  ;;  %v5349_v44 = vmul.f32 %v5345_v39, %v8306_v12 }
0x2416   : > { %v5350_v49 = vmax.f32 %v5346_v41, 0.0  ;;  %v5347_v55 = vmul.f32 %v5343_v28, %v8296_v1 }
0x2417   : > { %v5356_v56 = vmax.f32 %v5184_v50, %v5352_v37  ;;  %v5353_v33 = vmax.f32 %v5349_v44, 0.0 }
0x2418   : > { %v5354_v59 = vmax.f32 %v5182_v53, %v5350_v49  ;;  %v5351_v3 = vmax.f32 %v5347_v55, 0.0  ;;  %v5451_v5 = vpop.f32.mrb[32].mxu0 }
0x2419   : > { %v5357_v6 = vmax.f32 %v5185_v61, %v5353_v33  ;;  %v5458_v35 = vsub.f32 %v5451_v5, %v8226_v19  ;;  %v6940_v38 = vpop.f32.mrb[33].mxu0 }
0x241a   : > { %v5355_v8 = vmax.f32 %v5183_v4, %v5351_v3  ;;  %v5454_v43 = vpop.f32.mrb[34].mxu0 }
0x241b   : > { %v5460_v9 = vmul.f32 %v5458_v35, %v8231_v62  ;;  %v5459_v47 = vsub.f32 %v5454_v43, %v8228_v58  ;;  %v6941_v46 = vpop.f32.mrb[35].mxu0 }
0x241d   : > { %v5461_v10 = vmul.f32 %v5459_v47, %v8235_v7  ;;  %v5462_v54 = vmax.f32 %v5460_v9, 0.0 }
0x241f   : > { %v5463_v51 = vmax.f32 %v5461_v10, 0.0 }
0x2420   : > { %v5575_v50 = vpop.f32.mrb[36].mxu0 }
0x2421   : > { %v5582_v53 = vsub.f32 %v5575_v50, %v8193_v45  ;;  %v6952_v11 = vpop.f32.mrb[37].mxu0  ;;  %v5464_v61 = vpack.c.bf16 %v5463_v51, %v5462_v54 }
0x2422   : > { %v5578_v57 = vpop.f32.mrb[38].mxu0 }
0x2423   : > { %v5584_v13 = vmul.f32 %v5582_v53, %v8195_v48  ;;  %v5583_v4 = vsub.f32 %v5578_v57, %v8198_v42  ;;  %6942 = vmatprep.subr.bf16.mxu1 %v5464_v61  ;;  %v6953_v25 = vpop.f32.mrb[39].mxu0 }
0x2424   : > { %6943 = vmatpush3.bf16.msra.mxu1 %v5464_v61 }
0x2425   : > { %v5585_v26 = vmul.f32 %v5583_v4, %v8202_v52  ;;  %6954 = vmatprep.subr.bf16.mxu1 %v7466_v15  ;;  %v5586_v27 = vmax.f32 %v5584_v13, 0.0 }
0x2427   : > { %v5587_v29 = vmax.f32 %v5585_v26, 0.0  ;;  %6945 = vmatmul.mubr.msk.bf16.vlgmr.msra.gmra.mrb[32].mxu1 %vm4467_vm14, %v8243_v24 }
0x2428   : > { %6956 = vmatprep.mubr.msk.bf16.mxu1 %vm7467_vm12, %v7466_v15 }
0x2429   : > { %v5588_v31 = vpack.c.bf16 %v5587_v29, %v5586_v27 }
0x242b   : > { %6955 = vmatpush3.bf16.msra.mxu1 %v5588_v31 }
0x242c   : > { %6966 = vmatprep.subr.bf16.mxu1 %v7466_v15 }
0x242f   : > { %6957 = vmatmul.mubr.msk.bf16.vlgmr.msra.gmra.mrb[36].mxu1 %vm4467_vm14, %v8208_v60 }
0x2430   : > { %6967 = vmatpush3.bf16.msra.mxu1 %v5711_v23  ;;  %6968 = vmatprep.mubr.msk.bf16.mxu1 %vm7467_vm12, %v7466_v15 }
0x2437   : > { %6969 = vmatmul.mubr.msk.bf16.vlgmr.msra.gmra.mrb[40].mxu1 %vm4381_vm13, %v8187_v30 }
0x2438   : > { %6980 = vmatprep.mubr.msk.bf16.mxu1 %vm4467_vm14, %v8220_v18 }
0x24fa   : > { %v6946_v32 = vpop.f32.mrb[32].mxu1 }
0x24fb   : > { %v5516_v34 = vsub.f32 %v6946_v32, %v8290_v0  ;;  %v5499_v36 = vpop.f32.mrb[33].mxu1 }
0x24fc   : > { %v5514_v16 = vsub.f32 %v5499_v36, %v8286_v2  ;;  %v6947_v17 = vpop.f32.mrb[34].mxu1 }
0x24fd   : > { %v5520_v39 = vmul.f32 %v5516_v34, %v8301_v14  ;;  %v5517_v40 = vsub.f32 %v6947_v17, %v8292_v20  ;;  %v5502_v41 = vpop.f32.mrb[35].mxu1 }
0x24fe   : > { %v5518_v28 = vmul.f32 %v5514_v16, %v8294_v21  ;;  %v5515_v37 = vsub.f32 %v5502_v41, %v8288_v63 }
0x24ff   : > { %v5524_v30 = vmax.f32 %v5520_v39, 0.0  ;;  %v5521_v44 = vmul.f32 %v5517_v40, %v8306_v12 }
0x2500   : > { %v5522_v18 = vmax.f32 %v5518_v28, 0.0  ;;  %v5519_v49 = vmul.f32 %v5515_v37, %v8296_v1 }
0x2501   : > { %v5528_v55 = vmax.f32 %v5356_v56, %v5524_v30  ;;  %v5525_v33 = vmax.f32 %v5521_v44, 0.0 }
0x2502   : > { %v5526_v3 = vmax.f32 %v5354_v59, %v5522_v18  ;;  %v5523_v5 = vmax.f32 %v5519_v49, 0.0  ;;  %v5623_v35 = vpop.f32.mrb[36].mxu1 }
0x2503   : > { %v5529_v38 = vmax.f32 %v5357_v6, %v5525_v33  ;;  %v5630_v43 = vsub.f32 %v5623_v35, %v8226_v19  ;;  %v6958_v9 = vpop.f32.mrb[37].mxu1 }
0x2504   : > { %v5527_v47 = vmax.f32 %v5355_v8, %v5523_v5  ;;  %v5626_v46 = vpop.f32.mrb[38].mxu1 }
0x2505   : > { %v5632_v10 = vmul.f32 %v5630_v43, %v8231_v62  ;;  %v5631_v54 = vsub.f32 %v5626_v46, %v8228_v58  ;;  %v6959_v51 = vpop.f32.mrb[39].mxu1 }
0x2507   : > { %v5633_v50 = vmul.f32 %v5631_v54, %v8235_v7  ;;  %v5634_v53 = vmax.f32 %v5632_v10, 0.0 }
0x2509   : > { %v5635_v11 = vmax.f32 %v5633_v50, 0.0 }
0x250a   : > { %v5747_v56 = vpop.f32.mrb[40].mxu1 }
0x250b   : > { %v5754_v59 = vsub.f32 %v5747_v56, %v8193_v45  ;;  %v6970_v61 = vpop.f32.mrb[41].mxu1  ;;  %v5636_v57 = vpack.c.bf16 %v5635_v11, %v5634_v53 }
0x250c   : > { %v5750_v6 = vpop.f32.mrb[42].mxu1 }
0x250d   : > { %v5756_v13 = vmul.f32 %v5754_v59, %v8195_v48  ;;  %v5755_v8 = vsub.f32 %v5750_v6, %v8198_v42  ;;  %6960 = vmatprep.subr.bf16.mxu0 %v5636_v57  ;;  %v6971_v4 = vpop.f32.mrb[43].mxu1 }
0x250e   : > { %6961 = vmatpush3.bf16.msra.mxu0 %v5636_v57 }
0x250f   : > { %v5757_v25 = vmul.f32 %v5755_v8, %v8202_v52  ;;  %6972 = vmatprep.subr.bf16.mxu0 %v7466_v15  ;;  %v5758_v26 = vmax.f32 %v5756_v13, 0.0 }
0x2511   : > { %v5759_v27 = vmax.f32 %v5757_v25, 0.0  ;;  %6963 = vmatmul.mubr.msk.bf16.vlgmr.msra.gmra.mrb[40].mxu0 %vm4467_vm14, %v8243_v24 }
0x2512   : > { %6974 = vmatprep.mubr.msk.bf16.mxu0 %vm7467_vm12, %v7466_v15 }
0x2513   : > { %v5760_v45 = vpack.c.bf16 %v5759_v27, %v5758_v26 }
0x2515   : > { %6973 = vmatpush3.bf16.msra.mxu0 %v5760_v45 }
0x2519   : > { %6975 = vmatmul.mubr.msk.bf16.vlgmr.msra.gmra.mrb[44].mxu0 %vm4467_vm14, %v8208_v60 }
0x25e4   : > { %v6964_v48 = vpop.f32.mrb[40].mxu0 }
0x25e5   : > { %v5688_v42 = vsub.f32 %v6964_v48, %v8290_v0  ;;  %v5671_v29 = vpop.f32.mrb[41].mxu0 }
0x25e6   : > { %v5686_v52 = vsub.f32 %v5671_v29, %v8286_v2  ;;  %v6965_v31 = vpop.f32.mrb[42].mxu0 }
0x25e7   : > { %v5692_v22 = vmul.f32 %v5688_v42, %v8301_v14  ;;  %v5689_v23 = vsub.f32 %v6965_v31, %v8292_v20  ;;  %v5674_v32 = vpop.f32.mrb[43].mxu0 }
0x25e8   : > { %v5690_v34 = vmul.f32 %v5686_v52, %v8294_v21  ;;  %v5687_v15 = vsub.f32 %v5674_v32, %v8288_v63 }
0x25e9   : > { %v5696_v36 = vmax.f32 %v5692_v22, 0.0  ;;  %v5693_v16 = vmul.f32 %v5689_v23, %v8306_v12 }
0x25ea   : > { %v5694_v60 = vmax.f32 %v5690_v34, 0.0  ;;  %v5691_v17 = vmul.f32 %v5687_v15, %v8296_v1 }
0x25eb   : > { %v5700_v39 = vmax.f32 %v5528_v55, %v5696_v36  ;;  %v5697_v40 = vmax.f32 %v5693_v16, 0.0 }
0x25ec   : > { %v5698_v41 = vmax.f32 %v5526_v3, %v5694_v60  ;;  %v5695_v28 = vmax.f32 %v5691_v17, 0.0  ;;  %v5795_v37 = vpop.f32.mrb[44].mxu0 }
0x25ed   : > { %v5701_v30 = vmax.f32 %v5529_v38, %v5697_v40  ;;  %v5802_v44 = vsub.f32 %v5795_v37, %v8226_v19  ;;  %v6976_v18 = vpop.f32.mrb[45].mxu0 }
0x25ee   : > { %v5699_v49 = vmax.f32 %v5527_v47, %v5695_v28  ;;  %v5798_v33 = vpop.f32.mrb[46].mxu0 }
0x25ef   : > { %v5804_v5 = vmul.f32 %v5802_v44, %v8231_v62  ;;  %v5803_v35 = vsub.f32 %v5798_v33, %v8228_v58  ;;  %v6977_v43 = vpop.f32.mrb[47].mxu0 }
0x25f1   : > { %v5805_v9 = vmul.f32 %v5803_v35, %v8235_v7  ;;  %v5806_v46 = vmax.f32 %v5804_v5, 0.0 }
0x25f3   : > { %v5807_v10 = vmax.f32 %v5805_v9, 0.0 }
0x25f5   : > { %v5808_v55 = vpack.c.bf16 %v5807_v10, %v5806_v46 }
0x25f7   : > { %6978 = vmatprep.subr.bf16.mxu1 %v5808_v55 }
0x25f8   : > { %6979 = vmatpush3.bf16.msra.mxu1 %v5808_v55 }
0x25fb   : > { %6981 = vmatmul.mubr.msk.bf16.vlgmr.msra.gmra.mrb[44].mxu1 %vm4467_vm14, %v8243_v24 }
0x26ce   : > { %v6982_v3 = vpop.f32.mrb[44].mxu1 }
0x26cf   : > { %v5860_v19 = vsub.f32 %v6982_v3, %v8290_v0  ;;  %v5843_v38 = vpop.f32.mrb[45].mxu1 }
0x26d0   : > { %v5858_v62 = vsub.f32 %v5843_v38, %v8286_v2  ;;  %v6983_v47 = vpop.f32.mrb[46].mxu1 }
0x26d1   : > { %v5864_v58 = vmul.f32 %v5860_v19, %v8301_v14  ;;  %v5861_v7 = vsub.f32 %v6983_v47, %v8292_v20  ;;  %v5846_v54 = vpop.f32.mrb[47].mxu1 }
0x26d2   : > { %v5862_v51 = vmul.f32 %v5858_v62, %v8294_v21  ;;  %v5859_v24 = vsub.f32 %v5846_v54, %v8288_v63 }
0x26d3   : > { %v5868_v50 = vmax.f32 %v5864_v58, 0.0  ;;  %v5865_v0 = vmul.f32 %v5861_v7, %v8306_v12 }
0x26d4   : > { %v5866_v53 = vmax.f32 %v5862_v51, 0.0  ;;  %v5863_v11 = vmul.f32 %v5859_v24, %v8296_v1 }
0x26d5   : > { %v5872_v2 = vmax.f32 %v5700_v39, %v5868_v50  ;;  %v5869_v56 = vmax.f32 %v5865_v0, 0.0 }
0x26d6   : > { %v5870_v59 = vmax.f32 %v5698_v41, %v5866_v53  ;;  %v5867_v61 = vmax.f32 %v5863_v11, 0.0 }
0x26d7   : > { %5876 = vst [vmem:[%s7662_s30 + $0x10] sm:$0xff] %v5872_v2  ;;  %v5873_v14 = vmax.f32 %v5701_v30, %v5869_v56 }
0x26d8   : > { %5874 = vst [vmem:[%s7662_s30] sm:$0xff] %v5870_v59  ;;  %v5871_v20 = vmax.f32 %v5699_v49, %v5867_v61 }
0x26d9   : > { %5877 = vst [vmem:[%s7662_s30 + $0x18] sm:$0xff] %v5873_v14 }
0x26da   : > { %5875 = vst [vmem:[%s7662_s30 + $0x8] sm:$0xff] %v5871_v20 }
0x26db PF: > { %s6166_s0 = sshll.u32 %s7433_s20, 3  ;;  %s5893_s19 = sshll.u32 %s7662_s30, 4  ;;  %s8490_s19 = int_to_ptr.vmem [resolvable:$true] %s5893_s19 }
0x26dc   : > { %s5890_s1 = sadd.s32 %s7425_s18, %s6166_s0  ;;  %s5879_s12 = scalar_lea.sflag [#allocation13], %s7616_s29 }
0x26dd   : > { %s6167_s14 = sshll.u32 %s5890_s1, 7  ;;  %s7339_s13 = scalar_lea.vmem %s8490_s19, 512 }
0x26de   : > { %s8495_s10 = scalar_lea.hbm %s8559_s4, %s6167_s14  ;;  %p7340_p0 = scmp.ne.s32.totalorder %s8490_s19, %s7339_s13 }
0x26df   : > { %s7469_s20 = smov [#allocation12]  }
0x26e0   : > { %p7341_p1 = pnand %p7340_p0, %p7568_p7  ;;  %s7343_s18 = sshll.u32 %s7469_s20, 4  ;;  %s7344_s18 = int_to_ptr.vmem [resolvable:$false] %s7343_s18 }
0x26e1   : > { %s7345_s28 = scalar_lea.vmem %s7344_s18, 1024  ;;  %p7346_p3 = scmp.lt.s32.totalorder %s8490_s19, %s7344_s18 }
0x26e2   : > { %p7342_p2 = pneg %p7341_p1  ;;  %p7347_p4 = scmp.lt.s32.totalorder %s7345_s28, %s7339_s13 }
0x26e4   : > { %p7348_p5 = por %p7347_p4, %p7346_p3 }
0x26e6   : > { %p7349_p6 = pnand %p7348_p5, %p7342_p2 }
0x26e8   : > { %7352 = shalt.err (!%p7349_p6)
}
0x26e9   : > { %s7353_s6 = scalar_lea.hbm %s8495_s10, 512  ;;  %s7357_s0 = scalar_lea.hbm %s8559_s4, 2048 }
0x26ea   : > { %p7354_p8 = scmp.ne.s32.totalorder %s8495_s10, %s7353_s6  ;;  %p7358_p12 = scmp.lt.u32.totalorder %s8495_s10, %s8559_s4 }
0x26eb   : > { %p7359_p13 = scmp.lt.u32.totalorder %s7357_s0, %s7353_s6  ;;  %p7361_p1 = scmp.lt.u32.totalorder %s7353_s6, %s8495_s10 }
0x26ec   : > { %p7355_p9 = pnand %p7354_p8, %p7568_p7 }
0x26ed   : > { %p7360_p0 = por %p7359_p13, %p7358_p12 }
0x26ee   : > { %p7356_p11 = pneg %p7355_p9 }
0x26ef   : > { %p7362_p2 = por %p7361_p1, %p7360_p0 }
0x26f1   : > { %p7363_p3 = pnand %p7362_p2, %p7356_p11 }
0x26f3   : > { %7366 = shalt.err (!%p7363_p3)
}
0x26f4   : > { %s7470_s25 = smov 128   ;;  %s7471_s9 = smov 256  }
0x26f5   : > { %s7472_s13 = smov 8  }
0x26f6   : > { %7177 = dma.vmem_to_hbm [thread:$0]  (%p7568_p7), %s8490_s19, 512, %s8495_s10, %s5879_s12, %s7470_s25, %s7471_s9, %s7472_s13  }
0x26f7 PF: > { %p7183_p4 = scmp.ge.s32.totalorder %s7449_s24, 2  ;;  %s5908_s20 = sand.u32 1, %s7413_s15  }
0x26f8   : > { %s5909_s18 = scalar_lea.sflag [#allocation13], %s5908_s20 }
0x26f9   : > { %p7180_p5 = pnand %p7183_p4, %p7574_p10 }
0x26fb   : > { %7408 = dma.done.wait (!%p7180_p5), %s5909_s18, 512  }
0x26fc   : > { %7410 = vsyncadd (!%p7180_p5), %s5909_s18, 4294966784  ;;  %s17_s24 = sadd.s32 1, %s7449_s24   ;;  %s8569_s5 = sld [smem:[#allocation15_spill]] }
0x26fd   : > { %p14_p6 = scmp.ge.s32.totalorder %s17_s24, 18   ;;  %s8570_s15 = smov %s7417_s16 }
0x26fe   : > { %s8571_s16 = smov %s7421_s17  ;;  %s8572_s17 = smov %s7584_s11 }
0x26ff   : > { %s8573_s18 = smov %s7437_s21  ;;  %s8574_s19 = smov %s7441_s22 }
0x2700   : > { %s8575_s20 = smov %s7445_s23  ;;  %s8576_s21 = smov %s8580_s26 }
0x2701   : > { %s8577_s22 = smov %s8584_s27  ;;  %16 = sbr.rel (!%p14_p6) target bundleno = 9 (0x9), region = 194 }
0x2702   : > { %s8578_s23 = smov %s8569_s5 }
0x2708   :  { %5914 = vsyncpa [#allocation13], 1 }
0x2709   :  { %5916 = vsyncpa [#allocation13 + $0x1], 1 }

</bundles_post_ra>
